<compile_context>
chip_gen: v6e
topology: v6e:2x2x1
jax: 0.10.0
libtpu: 0.0.40
codegen_flags: <defaults>
</compile_context>

<pallas_src>
import functools

import jax
import jax.numpy as jnp
from jax.experimental import pallas as pl
from jax.experimental.pallas import tpu as pltpu

CP = 128  # padded channel count == TPU lane width (lane-dense everywhere)


# ----------------------------------------------------------------------------
# Pallas kernels
# ----------------------------------------------------------------------------
def _conv_bn_relu_pool_kernel(x_ref, w_ref, s_ref, b_ref, o_ref, acc_ref, *, H, W):
    """One sample: 3x3 conv (9 accumulated matmuls) + BN + ReLU + 2x2 maxpool.

    x_ref  : (1, H+2, W+2, CP) bf16  spatially zero-padded NHWC input
    w_ref  : (9, CP, CP)       bf16  per-tap weights, tap t = di*3 + dj, [cin, cout]
    s_ref  : (1, CP)           f32   folded BN scale
    b_ref  : (1, CP)           f32   folded BN shift (conv bias folded in)
    o_ref  : (1, (H//2)*(W//2), CP) bf16  pooled output (lane-dense)
    acc_ref: (H*W, CP)         f32   VMEM scratch accumulator
    """
    acc_ref[...] = jnp.zeros_like(acc_ref)
    for t in range(9):                                   # static, unrolled
        di, dj = divmod(t, 3)
        tap = x_ref[0, di:di + H, dj:dj + W, :].reshape(H * W, CP)
        acc_ref[...] += jnp.dot(tap, w_ref[t],
                                preferred_element_type=jnp.float32)
    # fused BN + ReLU epilogue in f32
    y = jnp.maximum(acc_ref[...] * s_ref[...] + b_ref[...], 0.0)   # (H*W, CP)
    # fused 2x2 / stride-2 max pool
    y = jnp.max(y.reshape(H, W // 2, 2, CP), axis=2)               # pool along W
    y = jnp.max(y.reshape(H // 2, 2, W // 2, CP), axis=1)          # pool along H
    o_ref[...] = y.reshape(1, (H // 2) * (W // 2), CP).astype(o_ref.dtype)


def _bilinear_kernel(a_ref, b_ref, o_ref, *, inv_l):
    """Whole batch in one step.  a_ref, b_ref: (N, L, C) bf16 features (NHWC-flat).

    G[n, i, j] = sum_l a[n, l, i] * b[n, l, j]  == bmm(init, fin^T) in PyTorch.
    Output: lane-dense (N, C*C) f32, sqrt(G/L + 1e-5) then L2-normalized.
    """
    a = a_ref[...]
    b = b_ref[...]
    n, _, c = a.shape
    g = jax.lax.dot_general(a, b, (((1,), (1,)), ((0,), (0,))),
                            preferred_element_type=jnp.float32)     # (N, C, C)
    v = jnp.sqrt(g * inv_l + 1e-5)          # safe: ReLU guarantees g >= 0
    v = v.reshape(n, c * c)                 # lane-dense slab (N, C*C)
    s = jnp.sum(v * v, axis=-1, keepdims=True)
    # F.normalize (eps=1e-12)  ==  v * rsqrt(max(|v|^2, 1e-24)); rsqrt -> EUP.
    o_ref[...] = v * jax.lax.rsqrt(jnp.maximum(s, 1e-24))


# ----------------------------------------------------------------------------
# Wrappers
# ----------------------------------------------------------------------------
def conv_bn_relu_pool(x_pad, w_taps, scale, shift, *, H, W):
    """x_pad: (N, H+2, W+2, CP) bf16 -> (N, (H//2)*(W//2), CP) bf16."""
    N = x_pad.shape[0]
    Ho, Wo = H // 2, W // 2
    kernel = functools.partial(_conv_bn_relu_pool_kernel, H=H, W=W)
    return pl.pallas_call(
        kernel,
        out_shape=jax.ShapeDtypeStruct((N, Ho * Wo, CP), jnp.bfloat16),
        grid_spec=pltpu.PrefetchScalarGridSpec(
            num_scalar_prefetch=0,
            grid=(N,),
            in_specs=[
                pl.BlockSpec((1, H + 2, W + 2, CP), lambda n: (n, 0, 0, 0)),
                pl.BlockSpec((9, CP, CP), lambda n: (0, 0, 0)),
                pl.BlockSpec((1, CP), lambda n: (0, 0)),
                pl.BlockSpec((1, CP), lambda n: (0, 0)),
            ],
            out_specs=pl.BlockSpec((1, Ho * Wo, CP), lambda n: (n, 0, 0)),
            scratch_shapes=[pltpu.VMEM((H * W, CP), jnp.float32)],
        ),
        compiler_params=pltpu.CompilerParams(dimension_semantics=("parallel",)),
    )(x_pad, w_taps, scale, shift)


def bilinear_pool(a, b, *, C):
    """a, b: (N, L, CP) bf16 features -> (N, C*C) f32 normalized bilinear vector."""
    N, L, _ = a.shape
    a = a[:, :, :C]                         # drop padded (all-zero) channels
    b = b[:, :, :C]
    kernel = functools.partial(_bilinear_kernel, inv_l=1.0 / L)
    return pl.pallas_call(
        kernel,
        out_shape=jax.ShapeDtypeStruct((N, C * C), jnp.float32),
        grid_spec=pltpu.PrefetchScalarGridSpec(
            num_scalar_prefetch=0,
            grid=(1,),
            in_specs=[
                pl.BlockSpec((N, L, C), lambda i: (0, 0, 0)),
                pl.BlockSpec((N, L, C), lambda i: (0, 0, 0)),
            ],
            out_specs=pl.BlockSpec((N, C * C), lambda i: (0, 0)),
        ),
    )(a, b)


def _prep_conv_params(weight, bias, gamma, beta, mean, var, eps=1e-5):
    """Fold conv bias + eval-mode BN into scale/shift; pad channels to CP; bf16 taps."""
    cout, cin, _, _ = weight.shape
    # (Cout, Cin, 3, 3) -> (3, 3, Cin, Cout) -> (9, Cin, Cout), tap t = di*3 + dj
    w_taps = jnp.transpose(weight, (2, 3, 1, 0)).reshape(9, cin, cout)
    w_pad = jnp.zeros((9, CP, CP), jnp.float32).at[:, :cin, :cout].set(w_taps)
    scale = gamma / jnp.sqrt(var + eps)
    shift = (bias - mean) * scale + beta
    s_pad = jnp.zeros((1, CP), jnp.float32).at[0, :cout].set(scale)
    b_pad = jnp.zeros((1, CP), jnp.float32).at[0, :cout].set(shift)
    return w_pad.astype(jnp.bfloat16), s_pad, b_pad


# ----------------------------------------------------------------------------
# BCNNEncoder
# ----------------------------------------------------------------------------
class BCNNEncoderPallas:
    """Reduced VGG-style encoder + bilinear pooling head (BCNN)."""

    def __init__(self, key, c1=16, c2=32):
        k = jax.random.split(key, 4)
        self.c1, self.c2 = c1, c2
        # stage 1: conv 3 -> c1, BN (identity stats), ReLU, maxpool
        w1 = 0.1 * jax.random.normal(k[0], (c1, 3, 3, 3), jnp.float32)
        b1 = 0.01 * jax.random.normal(k[1], (c1,), jnp.float32)
        self.w1, self.s1, self.sh1 = _prep_conv_params(
            w1, b1, jnp.ones((c1,)), jnp.zeros((c1,)), jnp.zeros((c1,)), jnp.ones((c1,)))
        # stage 2: conv c1 -> c2, BN, ReLU, maxpool
        w2 = 0.1 * jax.random.normal(k[2], (c2, c1, 3, 3), jnp.float32)
        b2 = 0.01 * jax.random.normal(k[3], (c2,), jnp.float32)
        self.w2, self.s2, self.sh2 = _prep_conv_params(
            w2, b2, jnp.ones((c2,)), jnp.zeros((c2,)), jnp.zeros((c2,)), jnp.ones((c2,)))

    def encode(self, x_nchw):
        """(N, Cin, H, W) NCHW -> (N, (H//4)*(W//4), CP) bf16 NHWC-flat features."""
        N, Cin, H, W = x_nchw.shape
        # one-time layout glue: NCHW -> NHWC, channel-pad to CP, spatial-pad by 1.
        x = jnp.transpose(x_nchw, (0, 2, 3, 1))
        x = jnp.pad(x, ((0, 0), (1, 1), (1, 1), (0, CP - Cin))).astype(jnp.bfloat16)
        y = conv_bn_relu_pool(x, self.w1, self.s1, self.sh1, H=H, W=W)
        H2, W2 = H // 2, W // 2
        y = jnp.pad(y.reshape(N, H2, W2, CP), ((0, 0), (1, 1), (1, 1), (0, 0)))
        z = conv_bn_relu_pool(y, self.w2, self.s2, self.sh2, H=H2, W=W2)
        return z  # real channels live in [..., :c2]; the rest are exact zeros

    def __call__(self, init, fin):
        a = self.encode(init)   # (N, L, CP)
        b = self.encode(fin)
        return bilinear_pool(a, b, C=self.c2)   # (N, c2*c2)


# ----------------------------------------------------------------------------
if __name__ == "__main__":
    key = jax.random.PRNGKey(0)
    k_model, k_init, k_fin = jax.random.split(key, 3)

    model = BCNNEncoderPallas(k_model)

    # NCHW inputs matching forward(init, fin): batch=2, channels=3, spatial 16x16
    # (encoder downsamples 16 -> 8 -> 4; features (2, 32, 4x4)).
    x_init = jax.random.normal(k_init, (2, 3, 16, 16), jnp.float32)
    x_fin = jax.random.normal(k_fin, (2, 3, 16, 16), jnp.float32)

    out = model(x_init, x_fin)
    out = jax.block_until_ready(out)

    assert out.shape == (2, 32 * 32)
    assert bool(jnp.all(jnp.isfinite(out)))
    print("KERNEL_OK")
</pallas_src>

<mosaic_0001>
module attributes {stable_mosaic.version = 11 : i64} {
  func.func @_conv_bn_relu_pool_kernel(%arg0: i32, %arg1: memref<1x18x18x128xbf16, #tpu.memory_space<vmem>>, %arg2: memref<9x128x128xbf16, #tpu.memory_space<vmem>>, %arg3: memref<1x128xf32, #tpu.memory_space<vmem>>, %arg4: memref<1x128xf32, #tpu.memory_space<vmem>>, %arg5: memref<1x64x128xbf16, #tpu.memory_space<vmem>>, %arg6: memref<256x128xf32, #tpu.memory_space<vmem>>) attributes {dimension_semantics = [#tpu.dimension_semantics<parallel>], iteration_bounds = array<i64: 2>, scalar_prefetch = 0 : i64, scratch_operands = 1 : i64, tpu.core_type = #tpu.core_type<tc>, window_params = [{transform_indices = @transform_0, window_bounds = array<i64: 1, 18, 18, 128>}, {pipeline_mode = #tpu.pipeline_mode<synchronous>, transform_indices = @transform_1, window_bounds = array<i64: 9, 128, 128>}, {pipeline_mode = #tpu.pipeline_mode<synchronous>, transform_indices = @transform_2, window_bounds = array<i64: 1, 128>}, {pipeline_mode = #tpu.pipeline_mode<synchronous>, transform_indices = @transform_3, window_bounds = array<i64: 1, 128>}, {transform_indices = @transform_4, window_bounds = array<i64: 1, 64, 128>}]} {
    %cst = arith.constant 0.000000e+00 : f32
    %0 = vector.broadcast %cst : f32 to vector<256x128xf32>
    %c0 = arith.constant 0 : index
    %c0_0 = arith.constant 0 : index
    %1 = vector.load %arg6[%c0, %c0_0] : memref<256x128xf32, #tpu.memory_space<vmem>>, vector<256x128xf32>
    tpu.vector_store %arg6[%c0, %c0_0], %0 {strides = array<i32>} : memref<256x128xf32, #tpu.memory_space<vmem>>, vector<256x128xf32>,
    %c0_1 = arith.constant 0 : index
    %c0_2 = arith.constant 0 : index
    %c0_3 = arith.constant 0 : index
    %c0_4 = arith.constant 0 : index
    %2 = vector.load %arg1[%c0_1, %c0_2, %c0_3, %c0_4] : memref<1x18x18x128xbf16, #tpu.memory_space<vmem>>, vector<1x16x16x128xbf16>
    %3 = vector.shape_cast %2 : vector<1x16x16x128xbf16> to vector<16x16x128xbf16>
    %4 = vector.shape_cast %3 : vector<16x16x128xbf16> to vector<256x128xbf16>
    %c0_5 = arith.constant 0 : index
    %c0_6 = arith.constant 0 : index
    %5 = vector.load %arg6[%c0_5, %c0_6] : memref<256x128xf32, #tpu.memory_space<vmem>>, vector<256x128xf32>
    %c0_7 = arith.constant 0 : index
    %c0_8 = arith.constant 0 : index
    %c0_9 = arith.constant 0 : index
    %6 = vector.load %arg2[%c0_7, %c0_8, %c0_9] : memref<9x128x128xbf16, #tpu.memory_space<vmem>>, vector<1x128x128xbf16>
    %7 = vector.shape_cast %6 : vector<1x128x128xbf16> to vector<128x128xbf16>
    %cst_10 = arith.constant dense<0.000000e+00> : vector<256x128xf32>
    %8 = tpu.matmul %4, %7, %cst_10 {dimension_numbers = #tpu.dot_dimension_numbers<[1], [0], [0], [1], [0, 0, 1, 1], [], []>} : vector<256x128xbf16>, vector<128x128xbf16>, vector<256x128xf32> -> vector<256x128xf32>
    %9 = arith.addf %5, %8 : vector<256x128xf32>
    %c0_11 = arith.constant 0 : index
    %c0_12 = arith.constant 0 : index
    %10 = vector.load %arg6[%c0_11, %c0_12] : memref<256x128xf32, #tpu.memory_space<vmem>>, vector<256x128xf32>
    tpu.vector_store %arg6[%c0_11, %c0_12], %9 {strides = array<i32>} : memref<256x128xf32, #tpu.memory_space<vmem>>, vector<256x128xf32>,
    %c0_13 = arith.constant 0 : index
    %c0_14 = arith.constant 0 : index
    %c1 = arith.constant 1 : index
    %c0_15 = arith.constant 0 : index
    %11 = vector.load %arg1[%c0_13, %c0_14, %c1, %c0_15] : memref<1x18x18x128xbf16, #tpu.memory_space<vmem>>, vector<1x16x16x128xbf16>
    %12 = vector.shape_cast %11 : vector<1x16x16x128xbf16> to vector<16x16x128xbf16>
    %13 = vector.shape_cast %12 : vector<16x16x128xbf16> to vector<256x128xbf16>
    %c0_16 = arith.constant 0 : index
    %c0_17 = arith.constant 0 : index
    %14 = vector.load %arg6[%c0_16, %c0_17] : memref<256x128xf32, #tpu.memory_space<vmem>>, vector<256x128xf32>
    %c1_18 = arith.constant 1 : index
    %c0_19 = arith.constant 0 : index
    %c0_20 = arith.constant 0 : index
    %15 = vector.load %arg2[%c1_18, %c0_19, %c0_20] : memref<9x128x128xbf16, #tpu.memory_space<vmem>>, vector<1x128x128xbf16>
    %16 = vector.shape_cast %15 : vector<1x128x128xbf16> to vector<128x128xbf16>
    %cst_21 = arith.constant dense<0.000000e+00> : vector<256x128xf32>
    %17 = tpu.matmul %13, %16, %cst_21 {dimension_numbers = #tpu.dot_dimension_numbers<[1], [0], [0], [1], [0, 0, 1, 1], [], []>} : vector<256x128xbf16>, vector<128x128xbf16>, vector<256x128xf32> -> vector<256x128xf32>
    %18 = arith.addf %14, %17 : vector<256x128xf32>
    %c0_22 = arith.constant 0 : index
    %c0_23 = arith.constant 0 : index
    %19 = vector.load %arg6[%c0_22, %c0_23] : memref<256x128xf32, #tpu.memory_space<vmem>>, vector<256x128xf32>
    tpu.vector_store %arg6[%c0_22, %c0_23], %18 {strides = array<i32>} : memref<256x128xf32, #tpu.memory_space<vmem>>, vector<256x128xf32>,
    %c0_24 = arith.constant 0 : index
    %c0_25 = arith.constant 0 : index
    %c2 = arith.constant 2 : index
    %c0_26 = arith.constant 0 : index
    %20 = vector.load %arg1[%c0_24, %c0_25, %c2, %c0_26] : memref<1x18x18x128xbf16, #tpu.memory_space<vmem>>, vector<1x16x16x128xbf16>
    %21 = vector.shape_cast %20 : vector<1x16x16x128xbf16> to vector<16x16x128xbf16>
    %22 = vector.shape_cast %21 : vector<16x16x128xbf16> to vector<256x128xbf16>
    %c0_27 = arith.constant 0 : index
    %c0_28 = arith.constant 0 : index
    %23 = vector.load %arg6[%c0_27, %c0_28] : memref<256x128xf32, #tpu.memory_space<vmem>>, vector<256x128xf32>
    %c2_29 = arith.constant 2 : index
    %c0_30 = arith.constant 0 : index
    %c0_31 = arith.constant 0 : index
    %24 = vector.load %arg2[%c2_29, %c0_30, %c0_31] : memref<9x128x128xbf16, #tpu.memory_space<vmem>>, vector<1x128x128xbf16>
    %25 = vector.shape_cast %24 : vector<1x128x128xbf16> to vector<128x128xbf16>
    %cst_32 = arith.constant dense<0.000000e+00> : vector<256x128xf32>
    %26 = tpu.matmul %22, %25, %cst_32 {dimension_numbers = #tpu.dot_dimension_numbers<[1], [0], [0], [1], [0, 0, 1, 1], [], []>} : vector<256x128xbf16>, vector<128x128xbf16>, vector<256x128xf32> -> vector<256x128xf32>
    %27 = arith.addf %23, %26 : vector<256x128xf32>
    %c0_33 = arith.constant 0 : index
    %c0_34 = arith.constant 0 : index
    %28 = vector.load %arg6[%c0_33, %c0_34] : memref<256x128xf32, #tpu.memory_space<vmem>>, vector<256x128xf32>
    tpu.vector_store %arg6[%c0_33, %c0_34], %27 {strides = array<i32>} : memref<256x128xf32, #tpu.memory_space<vmem>>, vector<256x128xf32>,
    %c0_35 = arith.constant 0 : index
    %c1_36 = arith.constant 1 : index
    %c0_37 = arith.constant 0 : index
    %c0_38 = arith.constant 0 : index
    %29 = vector.load %arg1[%c0_35, %c1_36, %c0_37, %c0_38] : memref<1x18x18x128xbf16, #tpu.memory_space<vmem>>, vector<1x16x16x128xbf16>
    %30 = vector.shape_cast %29 : vector<1x16x16x128xbf16> to vector<16x16x128xbf16>
    %31 = vector.shape_cast %30 : vector<16x16x128xbf16> to vector<256x128xbf16>
    %c0_39 = arith.constant 0 : index
    %c0_40 = arith.constant 0 : index
    %32 = vector.load %arg6[%c0_39, %c0_40] : memref<256x128xf32, #tpu.memory_space<vmem>>, vector<256x128xf32>
    %c3 = arith.constant 3 : index
    %c0_41 = arith.constant 0 : index
    %c0_42 = arith.constant 0 : index
    %33 = vector.load %arg2[%c3, %c0_41, %c0_42] : memref<9x128x128xbf16, #tpu.memory_space<vmem>>, vector<1x128x128xbf16>
    %34 = vector.shape_cast %33 : vector<1x128x128xbf16> to vector<128x128xbf16>
    %cst_43 = arith.constant dense<0.000000e+00> : vector<256x128xf32>
    %35 = tpu.matmul %31, %34, %cst_43 {dimension_numbers = #tpu.dot_dimension_numbers<[1], [0], [0], [1], [0, 0, 1, 1], [], []>} : vector<256x128xbf16>, vector<128x128xbf16>, vector<256x128xf32> -> vector<256x128xf32>
    %36 = arith.addf %32, %35 : vector<256x128xf32>
    %c0_44 = arith.constant 0 : index
    %c0_45 = arith.constant 0 : index
    %37 = vector.load %arg6[%c0_44, %c0_45] : memref<256x128xf32, #tpu.memory_space<vmem>>, vector<256x128xf32>
    tpu.vector_store %arg6[%c0_44, %c0_45], %36 {strides = array<i32>} : memref<256x128xf32, #tpu.memory_space<vmem>>, vector<256x128xf32>,
    %c0_46 = arith.constant 0 : index
    %c1_47 = arith.constant 1 : index
    %c1_48 = arith.constant 1 : index
    %c0_49 = arith.constant 0 : index
    %38 = vector.load %arg1[%c0_46, %c1_47, %c1_48, %c0_49] : memref<1x18x18x128xbf16, #tpu.memory_space<vmem>>, vector<1x16x16x128xbf16>
    %39 = vector.shape_cast %38 : vector<1x16x16x128xbf16> to vector<16x16x128xbf16>
    %40 = vector.shape_cast %39 : vector<16x16x128xbf16> to vector<256x128xbf16>
    %c0_50 = arith.constant 0 : index
    %c0_51 = arith.constant 0 : index
    %41 = vector.load %arg6[%c0_50, %c0_51] : memref<256x128xf32, #tpu.memory_space<vmem>>, vector<256x128xf32>
    %c4 = arith.constant 4 : index
    %c0_52 = arith.constant 0 : index
    %c0_53 = arith.constant 0 : index
    %42 = vector.load %arg2[%c4, %c0_52, %c0_53] : memref<9x128x128xbf16, #tpu.memory_space<vmem>>, vector<1x128x128xbf16>
    %43 = vector.shape_cast %42 : vector<1x128x128xbf16> to vector<128x128xbf16>
    %cst_54 = arith.constant dense<0.000000e+00> : vector<256x128xf32>
    %44 = tpu.matmul %40, %43, %cst_54 {dimension_numbers = #tpu.dot_dimension_numbers<[1], [0], [0], [1], [0, 0, 1, 1], [], []>} : vector<256x128xbf16>, vector<128x128xbf16>, vector<256x128xf32> -> vector<256x128xf32>
    %45 = arith.addf %41, %44 : vector<256x128xf32>
    %c0_55 = arith.constant 0 : index
    %c0_56 = arith.constant 0 : index
    %46 = vector.load %arg6[%c0_55, %c0_56] : memref<256x128xf32, #tpu.memory_space<vmem>>, vector<256x128xf32>
    tpu.vector_store %arg6[%c0_55, %c0_56], %45 {strides = array<i32>} : memref<256x128xf32, #tpu.memory_space<vmem>>, vector<256x128xf32>,
    %c0_57 = arith.constant 0 : index
    %c1_58 = arith.constant 1 : index
    %c2_59 = arith.constant 2 : index
    %c0_60 = arith.constant 0 : index
    %47 = vector.load %arg1[%c0_57, %c1_58, %c2_59, %c0_60] : memref<1x18x18x128xbf16, #tpu.memory_space<vmem>>, vector<1x16x16x128xbf16>
    %48 = vector.shape_cast %47 : vector<1x16x16x128xbf16> to vector<16x16x128xbf16>
    %49 = vector.shape_cast %48 : vector<16x16x128xbf16> to vector<256x128xbf16>
    %c0_61 = arith.constant 0 : index
    %c0_62 = arith.constant 0 : index
    %50 = vector.load %arg6[%c0_61, %c0_62] : memref<256x128xf32, #tpu.memory_space<vmem>>, vector<256x128xf32>
    %c5 = arith.constant 5 : index
    %c0_63 = arith.constant 0 : index
    %c0_64 = arith.constant 0 : index
    %51 = vector.load %arg2[%c5, %c0_63, %c0_64] : memref<9x128x128xbf16, #tpu.memory_space<vmem>>, vector<1x128x128xbf16>
    %52 = vector.shape_cast %51 : vector<1x128x128xbf16> to vector<128x128xbf16>
    %cst_65 = arith.constant dense<0.000000e+00> : vector<256x128xf32>
    %53 = tpu.matmul %49, %52, %cst_65 {dimension_numbers = #tpu.dot_dimension_numbers<[1], [0], [0], [1], [0, 0, 1, 1], [], []>} : vector<256x128xbf16>, vector<128x128xbf16>, vector<256x128xf32> -> vector<256x128xf32>
    %54 = arith.addf %50, %53 : vector<256x128xf32>
    %c0_66 = arith.constant 0 : index
    %c0_67 = arith.constant 0 : index
    %55 = vector.load %arg6[%c0_66, %c0_67] : memref<256x128xf32, #tpu.memory_space<vmem>>, vector<256x128xf32>
    tpu.vector_store %arg6[%c0_66, %c0_67], %54 {strides = array<i32>} : memref<256x128xf32, #tpu.memory_space<vmem>>, vector<256x128xf32>,
    %c0_68 = arith.constant 0 : index
    %c2_69 = arith.constant 2 : index
    %c0_70 = arith.constant 0 : index
    %c0_71 = arith.constant 0 : index
    %56 = vector.load %arg1[%c0_68, %c2_69, %c0_70, %c0_71] : memref<1x18x18x128xbf16, #tpu.memory_space<vmem>>, vector<1x16x16x128xbf16>
    %57 = vector.shape_cast %56 : vector<1x16x16x128xbf16> to vector<16x16x128xbf16>
    %58 = vector.shape_cast %57 : vector<16x16x128xbf16> to vector<256x128xbf16>
    %c0_72 = arith.constant 0 : index
    %c0_73 = arith.constant 0 : index
    %59 = vector.load %arg6[%c0_72, %c0_73] : memref<256x128xf32, #tpu.memory_space<vmem>>, vector<256x128xf32>
    %c6 = arith.constant 6 : index
    %c0_74 = arith.constant 0 : index
    %c0_75 = arith.constant 0 : index
    %60 = vector.load %arg2[%c6, %c0_74, %c0_75] : memref<9x128x128xbf16, #tpu.memory_space<vmem>>, vector<1x128x128xbf16>
    %61 = vector.shape_cast %60 : vector<1x128x128xbf16> to vector<128x128xbf16>
    %cst_76 = arith.constant dense<0.000000e+00> : vector<256x128xf32>
    %62 = tpu.matmul %58, %61, %cst_76 {dimension_numbers = #tpu.dot_dimension_numbers<[1], [0], [0], [1], [0, 0, 1, 1], [], []>} : vector<256x128xbf16>, vector<128x128xbf16>, vector<256x128xf32> -> vector<256x128xf32>
    %63 = arith.addf %59, %62 : vector<256x128xf32>
    %c0_77 = arith.constant 0 : index
    %c0_78 = arith.constant 0 : index
    %64 = vector.load %arg6[%c0_77, %c0_78] : memref<256x128xf32, #tpu.memory_space<vmem>>, vector<256x128xf32>
    tpu.vector_store %arg6[%c0_77, %c0_78], %63 {strides = array<i32>} : memref<256x128xf32, #tpu.memory_space<vmem>>, vector<256x128xf32>,
    %c0_79 = arith.constant 0 : index
    %c2_80 = arith.constant 2 : index
    %c1_81 = arith.constant 1 : index
    %c0_82 = arith.constant 0 : index
    %65 = vector.load %arg1[%c0_79, %c2_80, %c1_81, %c0_82] : memref<1x18x18x128xbf16, #tpu.memory_space<vmem>>, vector<1x16x16x128xbf16>
    %66 = vector.shape_cast %65 : vector<1x16x16x128xbf16> to vector<16x16x128xbf16>
    %67 = vector.shape_cast %66 : vector<16x16x128xbf16> to vector<256x128xbf16>
    %c0_83 = arith.constant 0 : index
    %c0_84 = arith.constant 0 : index
    %68 = vector.load %arg6[%c0_83, %c0_84] : memref<256x128xf32, #tpu.memory_space<vmem>>, vector<256x128xf32>
    %c7 = arith.constant 7 : index
    %c0_85 = arith.constant 0 : index
    %c0_86 = arith.constant 0 : index
    %69 = vector.load %arg2[%c7, %c0_85, %c0_86] : memref<9x128x128xbf16, #tpu.memory_space<vmem>>, vector<1x128x128xbf16>
    %70 = vector.shape_cast %69 : vector<1x128x128xbf16> to vector<128x128xbf16>
    %cst_87 = arith.constant dense<0.000000e+00> : vector<256x128xf32>
    %71 = tpu.matmul %67, %70, %cst_87 {dimension_numbers = #tpu.dot_dimension_numbers<[1], [0], [0], [1], [0, 0, 1, 1], [], []>} : vector<256x128xbf16>, vector<128x128xbf16>, vector<256x128xf32> -> vector<256x128xf32>
    %72 = arith.addf %68, %71 : vector<256x128xf32>
    %c0_88 = arith.constant 0 : index
    %c0_89 = arith.constant 0 : index
    %73 = vector.load %arg6[%c0_88, %c0_89] : memref<256x128xf32, #tpu.memory_space<vmem>>, vector<256x128xf32>
    tpu.vector_store %arg6[%c0_88, %c0_89], %72 {strides = array<i32>} : memref<256x128xf32, #tpu.memory_space<vmem>>, vector<256x128xf32>,
    %c0_90 = arith.constant 0 : index
    %c2_91 = arith.constant 2 : index
    %c2_92 = arith.constant 2 : index
    %c0_93 = arith.constant 0 : index
    %74 = vector.load %arg1[%c0_90, %c2_91, %c2_92, %c0_93] : memref<1x18x18x128xbf16, #tpu.memory_space<vmem>>, vector<1x16x16x128xbf16>
    %75 = vector.shape_cast %74 : vector<1x16x16x128xbf16> to vector<16x16x128xbf16>
    %76 = vector.shape_cast %75 : vector<16x16x128xbf16> to vector<256x128xbf16>
    %c0_94 = arith.constant 0 : index
    %c0_95 = arith.constant 0 : index
    %77 = vector.load %arg6[%c0_94, %c0_95] : memref<256x128xf32, #tpu.memory_space<vmem>>, vector<256x128xf32>
    %c8 = arith.constant 8 : index
    %c0_96 = arith.constant 0 : index
    %c0_97 = arith.constant 0 : index
    %78 = vector.load %arg2[%c8, %c0_96, %c0_97] : memref<9x128x128xbf16, #tpu.memory_space<vmem>>, vector<1x128x128xbf16>
    %79 = vector.shape_cast %78 : vector<1x128x128xbf16> to vector<128x128xbf16>
    %cst_98 = arith.constant dense<0.000000e+00> : vector<256x128xf32>
    %80 = tpu.matmul %76, %79, %cst_98 {dimension_numbers = #tpu.dot_dimension_numbers<[1], [0], [0], [1], [0, 0, 1, 1], [], []>} : vector<256x128xbf16>, vector<128x128xbf16>, vector<256x128xf32> -> vector<256x128xf32>
    %81 = arith.addf %77, %80 : vector<256x128xf32>
    %c0_99 = arith.constant 0 : index
    %c0_100 = arith.constant 0 : index
    %82 = vector.load %arg6[%c0_99, %c0_100] : memref<256x128xf32, #tpu.memory_space<vmem>>, vector<256x128xf32>
    tpu.vector_store %arg6[%c0_99, %c0_100], %81 {strides = array<i32>} : memref<256x128xf32, #tpu.memory_space<vmem>>, vector<256x128xf32>,
    %c0_101 = arith.constant 0 : index
    %c0_102 = arith.constant 0 : index
    %83 = vector.load %arg6[%c0_101, %c0_102] : memref<256x128xf32, #tpu.memory_space<vmem>>, vector<256x128xf32>
    %c0_103 = arith.constant 0 : index
    %c0_104 = arith.constant 0 : index
    %84 = vector.load %arg3[%c0_103, %c0_104] : memref<1x128xf32, #tpu.memory_space<vmem>>, vector<1x128xf32>
    %85 = vector.broadcast %84 : vector<1x128xf32> to vector<256x128xf32>
    %86 = arith.mulf %83, %85 : vector<256x128xf32>
    %c0_105 = arith.constant 0 : index
    %c0_106 = arith.constant 0 : index
    %87 = vector.load %arg4[%c0_105, %c0_106] : memref<1x128xf32, #tpu.memory_space<vmem>>, vector<1x128xf32>
    %88 = vector.broadcast %87 : vector<1x128xf32> to vector<256x128xf32>
    %89 = arith.addf %86, %88 : vector<256x128xf32>
    %cst_107 = arith.constant 0.000000e+00 : f32
    %90 = vector.broadcast %cst_107 : f32 to vector<256x128xf32>
    %91 = arith.maximumf %89, %90 : vector<256x128xf32>
    %92 = vector.shape_cast %91 : vector<256x128xf32> to vector<16x8x2x128xf32>
    %cst_108 = arith.constant dense<0xFF800000> : vector<16x8x128xf32>
    %93 = vector.multi_reduction <maximumf>, %92, %cst_108 [2] : vector<16x8x2x128xf32> to vector<16x8x128xf32>
    %94 = vector.shape_cast %93 : vector<16x8x128xf32> to vector<8x2x8x128xf32>
    %cst_109 = arith.constant dense<0xFF800000> : vector<8x8x128xf32>
    %95 = vector.multi_reduction <maximumf>, %94, %cst_109 [1] : vector<8x2x8x128xf32> to vector<8x8x128xf32>
    %96 = vector.shape_cast %95 : vector<8x8x128xf32> to vector<1x64x128xf32>
    %97 = arith.truncf %96 : vector<1x64x128xf32> to vector<1x64x128xbf16>
    %c0_110 = arith.constant 0 : index
    %c0_111 = arith.constant 0 : index
    %c0_112 = arith.constant 0 : index
    %98 = vector.load %arg5[%c0_110, %c0_111, %c0_112] : memref<1x64x128xbf16, #tpu.memory_space<vmem>>, vector<1x64x128xbf16>
    tpu.vector_store %arg5[%c0_110, %c0_111, %c0_112], %97 {strides = array<i32>} : memref<1x64x128xbf16, #tpu.memory_space<vmem>>, vector<1x64x128xbf16>,
    return
  }
  func.func @transform_0(%arg0: i32) -> (i32, i32, i32, i32) {
    %c0_i32 = arith.constant 0 : i32
    %c0_i32_0 = arith.constant 0 : i32
    %c0_i32_1 = arith.constant 0 : i32
    %c0_i32_2 = arith.constant 0 : i32
    return %arg0, %c0_i32, %c0_i32_0, %c0_i32_1 : i32, i32, i32, i32
  }
  func.func @transform_1(%arg0: i32) -> (i32, i32, i32) {
    %c0_i32 = arith.constant 0 : i32
    %c0_i32_0 = arith.constant 0 : i32
    %c0_i32_1 = arith.constant 0 : i32
    %c0_i32_2 = arith.constant 0 : i32
    return %c0_i32, %c0_i32_0, %c0_i32_1 : i32, i32, i32
  }
  func.func @transform_2(%arg0: i32) -> (i32, i32) {
    %c0_i32 = arith.constant 0 : i32
    %c0_i32_0 = arith.constant 0 : i32
    %c0_i32_1 = arith.constant 0 : i32
    return %c0_i32, %c0_i32_0 : i32, i32
  }
  func.func @transform_3(%arg0: i32) -> (i32, i32) {
    %c0_i32 = arith.constant 0 : i32
    %c0_i32_0 = arith.constant 0 : i32
    %c0_i32_1 = arith.constant 0 : i32
    return %c0_i32, %c0_i32_0 : i32, i32
  }
  func.func @transform_4(%arg0: i32) -> (i32, i32, i32) {
    %c0_i32 = arith.constant 0 : i32
    %c0_i32_0 = arith.constant 0 : i32
    %c0_i32_1 = arith.constant 0 : i32
    return %arg0, %c0_i32, %c0_i32_0 : i32, i32, i32
  }
}

</mosaic_0001>

<bundles_post_ra>
// kernel: tpu_custom_call.1
= control target key start
LH: loop header
LB: loop body
LE: loop exit
PB: predicated region body
PF: predicated region fallthrough
CT: control target
= control target key end

     0   :  { %9 = vsyncpa [#allocation4], 0  ;;  %s12223_s0 = inlined_call_operand.vmem [shape: bf16[2,18,18,128], index: 0, kind: input, shape index: {}]   ;;  %s12224_s1 = inlined_call_operand.vmem [shape: bf16[9,128,128], index: 1, kind: input, shape index: {}]   ;;  %s12225_s2 = inlined_call_operand.vmem [shape: f32[1,128], index: 2, kind: input, shape index: {}]   ;;  %s12226_s3 = inlined_call_operand.vmem [shape: f32[1,128], index: 3, kind: input, shape index: {}]   ;;  %s12227_s4 = inlined_call_operand.hbm [shape: bf16[2,64,128], index: 4, kind: output, shape index: {}]  }
   0x1   :  { %11 = vsyncpa [#allocation4 + $0x1], 0  ;;  %s9824_s15 = smov 0   ;;  %s9826_s16 = smov 0  }
   0x2   :  { %s9828_s17 = smov 0   ;;  %s9830_s18 = smov 0  }
   0x3 LB: > { %s9845_s19 = sadd.s32 4294967295, %s9793_s18   ;;  %s8112_s20 = sadd.s32 4294967294, %s9793_s18   ;;  %s9793_s18 = sphi %s9830_s18, %s12316_s18   ;;  %s9789_s17 = sphi %s9828_s17, %s12315_s17   ;;  %s9785_s16 = sphi %s9826_s16, %s12314_s16   ;;  %s9781_s15 = sphi %s9824_s15, %s12313_s15  }
   0x4   : > { %s9849_s21 = sadd.s32 1, %s9793_s18   ;;  %s113_s22 = sadd.s32 1, %s9789_s17 }
   0x5   : > { %s110_s23 = ssub.s32 %s9793_s18, %s9849_s21  ;;  %p123_p0 = scmp.ne.s32.totalorder %s9789_s17, %s9785_s16 }
   0x6   : > { %p111_p1 = scmp.eq.s32.totalorder %s110_s23, 0  ;;  %p124_p2 = scmp.eq.s32.totalorder %s9845_s19, 1 }
   0x7   : > { %p129_p3 = scmp.ne.s32.totalorder %s9785_s16, %s9781_s15  ;;  %p130_p4 = scmp.eq.s32.totalorder %s8112_s20, 1 }
   0x8   : > { %s9860_s24 = scalar_select %p111_p1, %s9789_s17, %s113_s22  }
   0x9   : > { %p9862_p5 = por %p124_p2, %p123_p0  ;;  %p9866_p6 = por %p130_p4, %p129_p3 }
   0xa   : > { %p8115_p7 = scmp.ge.s32.totalorder %s9793_s18, 1  ;;  %p165_p8 = scmp.lt.s32.totalorder %s9793_s18, 3 }
   0xc   : > { %p166_p9 = pnand %p8115_p7, %p165_p8 }
   0xe   : > { %169 = sbr.rel (%p166_p9) target bundleno = 896 (0x380), region = 36 }
  0x13   : > { %v9609_v0 = vld [vmem:[%s12224_s1 + $0x38] sm:$0xff]   ;;  %p191_p10 = scmp.lt.s32.totalorder %s9845_s19, 1  ;;  %v9610_v1 = vld [vmem:[%s12224_s1 + $0x30] sm:$0xff]   ;;  %v9611_v2 = vld [vmem:[%s12224_s1 + $0x28] sm:$0xff]   ;;  %vm1595_vm0 = vcmask 1042432   ;;  %vm1596_vm1 = vcmask 1046532  }
  0x14   : > { %9118 = vmatprep.subr.bf16.mxu0 %v9609_v0  ;;  %9550 = vmatprep.subr.bf16.mxu1 %v9609_v0  ;;  %v9612_v3 = vld [vmem:[%s12224_s1 + $0x20] sm:$0xff]   ;;  %v9613_v6 = vld [vmem:[%s12224_s1 + $0x18] sm:$0xff]   ;;  %v9614_v7 = vld [vmem:[%s12224_s1 + $0x10] sm:$0xff]   ;;  %vm726_vm2 = vsmask.f32 3328  ;;  %vm6668_vm6 = vcmask 1041408  }
  0x15   : > { %s192_s5 = scalar_select %p191_p10, %s9845_s19, 1  ;;  %9119 = vmatpush3.bf16.msra.mxu0 %v9609_v0  ;;  %9558 = vmatpush3.bf16.msra.mxu1 %v9609_v0  ;;  %v9615_v8 = vld [vmem:[%s12224_s1 + $0x8] sm:$0xff]   ;;  %v9616_v9 = vld [vmem:[%s12224_s1] sm:$0xff]   ;;  %v9621_v10 = vld [vmem:[%s12224_s1 + $0x78] sm:$0xff]   ;;  %vm727_vm3 = vsmask.f32 7440 }
  0x16   : > { %9120 = vmatprep.subr.bf16.mxu0 %v9610_v1  ;;  %9551 = vmatprep.subr.bf16.mxu1 %v9610_v1  ;;  %v9622_v12 = vld [vmem:[%s12224_s1 + $0xb8] sm:$0xff]   ;;  %v9623_v14 = vld [vmem:[%s12224_s1 + $0x70] sm:$0xff]   ;;  %v9629_v18 = vld [vmem:[%s12224_s1 + $0x68] sm:$0xff]   ;;  %vm7949_vm7 = vcmask 1041409   ;;  %vm7951_vm8 = vcmask 1042434   ;;  %vm7953_vm9 = vcmask 1043459  }
  0x17   : > { %s9566_s8 = smul.u32 216, %s192_s5  ;;  %v9624_v15 = vld [vmem:[%s12224_s1 + $0xb0] sm:$0xff]   ;;  %v9630_v20 = vld [vmem:[%s12224_s1 + $0xa8] sm:$0xff]   ;;  %v9631_v22 = vld [vmem:[%s12224_s1 + $0x60] sm:$0xff]   ;;  %vm7955_vm10 = vcmask 1044484   ;;  %vm7957_vm11 = vcmask 1045509  }
  0x18   : > { %v9632_v23 = vld [vmem:[%s12224_s1 + $0xa0] sm:$0xff]   ;;  %v9943_v31 = vld [vmem:[%s12224_s1 + $0x58] sm:$0xff]   ;;  %vm9957_vm4 = vmor %vm1595_vm0, %vm1596_vm1  ;;  %vm7959_vm12 = vcmask 1046534   ;;  %vm7961_vm13 = vcmask 1047559   ;;  %s8901_s29 = sshll.u32 %s9845_s19, 9 }
  0x19   : > { %s9886_s11 = scalar_lea.vmem %s12223_s0, %s9566_s8  ;;  %9121 = vmatpush3.bf16.msra.mxu0 %v9610_v1  ;;  %9559 = vmatpush3.bf16.msra.mxu1 %v9610_v1  ;;  %v9948_v32 = vld [vmem:[%s12224_s1 + $0x98] sm:$0xff]   ;;  %v9967_v54 = vld [vmem:[%s12224_s1 + $0x50] sm:$0xff]   ;;  %vm9976_vm5 = vmor %vm726_vm2, %vm727_vm3  ;;  %s188_s8 = sand.u32 1, %s9785_s16  }
  0x1a   : > { %9122 = vmatprep.subr.bf16.mxu0 %v9611_v2  ;;  %9552 = vmatprep.subr.bf16.mxu1 %v9611_v2  ;;  %v9617_v4 = vld [vmem:[%s9886_s11] sm:$0xff]   ;;  %v9619_v11 = vld [vmem:[%s9886_s11 + $0xc] sm:$0xff]   ;;  %v9625_v16 = vld [vmem:[%s9886_s11 + $0x18] sm:$0xff]   ;;  %s8116_s9 = sshll.u32 %s188_s8, 5  ;;  %s12176_s6 = scalar_lea.hbm %s12227_s4, %s8901_s29 }
  0x1b   : > { %v9618_v5 = vld [vmem:[%s9886_s11 + $0x60] sm:$0xff]   ;;  %9134 = vmatprep.mubr.bf16.mxu0 %v9617_v4  ;;  %v9620_v13 = vld [vmem:[%s9886_s11 + $0x6c] sm:$0xff]   ;;  %v9626_v17 = vld [vmem:[%s9886_s11 + $0x78] sm:$0xff]   ;;  %s11657_s10 = scalar_lea.vmem [#allocation3], %s8116_s9  ;;  %s12183_s19 = scalar_lea.sflag [#allocation4], %s188_s8 }
  0x1c   : > { %9150 = vmatprep.mubr.bf16.mxu1 %v9618_v5  ;;  %v9627_v19 = vld [vmem:[%s9886_s11 + $0x24] sm:$0xff]   ;;  %v9633_v24 = vld [vmem:[%s9886_s11 + $0x30] sm:$0xff]   ;;  %v678_v26 = vld [vmem:[%s9886_s11] sm:$0xf]  ;;  %s8050_s30 = sshll.u32 %s11657_s10, 4  ;;  %s9796_s9 = smov [#allocation3]   ;;  %s12178_s30 = int_to_ptr.vmem [resolvable:$true] %s8050_s30 }
  0x1d   : > { %9123 = vmatpush3.bf16.msra.mxu0 %v9611_v2  ;;  %9560 = vmatpush3.bf16.msra.mxu1 %v9611_v2  ;;  %v9628_v21 = vld [vmem:[%s9886_s11 + $0x84] sm:$0xff]   ;;  %v9634_v25 = vld [vmem:[%s9886_s11 + $0x90] sm:$0xff]   ;;  %v730_v29 = vshrl.u32 %v678_v26, 16  ;;  %v733_v30 = vshll.u32 %v678_v26, 16  ;;  %v1499_v36 = vld [vmem:[%s9886_s11] sm:$0xe] }
  0x1e   : > { %9124 = vmatprep.subr.bf16.mxu0 %v9612_v3  ;;  %9553 = vmatprep.subr.bf16.mxu1 %v9612_v3  ;;  %v679_v27 = vld [vmem:[%s9886_s11 + $0x4] sm:$0xf]  ;;  %v680_v28 = vld [vmem:[%s9886_s11 + $0x8] sm:$0x1]  ;;  %v9635_v41 = vld [vmem:[%s9886_s11 + $0x3c] sm:$0xff]   ;;  %v8182_v47 = vrot.slane %v1499_v36, 9 }
  0x1f   : > { %v739_v33 = vshll.u32 %v679_v27, 16  ;;  %v743_v34 = vshrl.u32 %v679_v27, 16  ;;  %v749_v35 = vshll.u32 %v680_v28, 16  ;;  %v732_v37 = vrot.slane %v730_v29, 4  ;;  %v1500_v39 = vld [vmem:[%s9886_s11 + $0x4] sm:$0xf] }
  0x20   : > { %v735_v38 = vrot.slane %v733_v30, 5  ;;  %v1501_v40 = vld [vmem:[%s9886_s11 + $0x8] sm:$0x1]  ;;  %v9636_v42 = vld [vmem:[%s9886_s11 + $0x9c] sm:$0xff]   ;;  %v681_v48 = vld [vmem:[%s9886_s11 + $0xc] sm:$0xf] }
  0x21   : > { %9125 = vmatpush3.bf16.msra.mxu0 %v9612_v3  ;;  %9561 = vmatpush3.bf16.msra.mxu1 %v9612_v3  ;;  %v741_v43 = vrot.slane %v739_v33, 5  ;;  %v745_v44 = vrot.slane %v743_v34, 4  ;;  %v751_v45 = vrot.slane %v749_v35, 5  ;;  %v1600_v50 = vrot.slane %v1500_v39, 5  ;;  %v682_v52 = vld [vmem:[%s9886_s11 + $0x10] sm:$0xf] }
  0x22   : > { %9126 = vmatprep.subr.bf16.mxu0 %v9613_v6  ;;  %9554 = vmatprep.subr.bf16.mxu1 %v9613_v6  ;;  %v736_v49 = vor.u32 %v735_v38, %v732_v37  ;;  %v1603_v51 = vrot.slane %v1501_v40, 5  ;;  %v683_v53 = vld [vmem:[%s9886_s11 + $0x14] sm:$0x1]  ;;  %v754_v58 = vshrl.u32 %v681_v48, 16  ;;  %v757_v59 = vshll.u32 %v681_v48, 16  ;;  %v9641_v62 = vld [vmem:[%s9886_s11 + $0x48] sm:$0xff]  }
  0x23   : > { %v9972_v55 = vld [vmem:[%s12224_s1 + $0x90] sm:$0xff]   ;;  %v746_v57 = vor.u32 %v745_v44, %v741_v43  ;;  %v763_v60 = vshll.u32 %v682_v52, 16  ;;  %v1502_v61 = vld [vmem:[%s9886_s11 + $0xc] sm:$0xe]  ;;  %v9985_v1 = vsel %vm9957_vm4, %v8182_v47, %v1600_v50  ;;  %v1602_v2 = vrot.slane %v1600_v50, 4  ;;  %v9647_v38 = vld [vmem:[%s12224_s1 + $0x40] sm:$0xff]  }
  0x24   : > { %v9642_v63 = vld [vmem:[%s9886_s11 + $0xa8] sm:$0xff]   ;;  %v737_v0 = vrot.slane %v736_v49, 4  ;;  %v767_v3 = vshrl.u32 %v682_v52, 16  ;;  %v1503_v4 = vld [vmem:[%s9886_s11 + $0x10] sm:$0xf]  ;;  %v9643_v26 = vld [vmem:[%s9886_s11 + $0x54] sm:$0xff]  }
  0x25   : > { %9127 = vmatpush3.bf16.msra.mxu0 %v9613_v6  ;;  %9562 = vmatpush3.bf16.msra.mxu1 %v9613_v6  ;;  %v747_v5 = vrot.slane %v746_v57, 4  ;;  %v756_v6 = vrot.slane %v754_v58, 4  ;;  %v686_v29 = vld [vmem:[%s9886_s11 + $0x20] sm:$0x1]  ;;  %v1505_v37 = vld [vmem:[%s9886_s11 + $0x18] sm:$0xe] }
  0x26   : > { %9128 = vmatprep.subr.bf16.mxu0 %v9614_v7  ;;  %9555 = vmatprep.subr.bf16.mxu1 %v9614_v7  ;;  %v797_v48 = vshll.u32 %v686_v29, 16  ;;  %v1507_v49 = vld [vmem:[%s9886_s11 + $0x20] sm:$0x1]  ;;  %v687_v50 = vld [vmem:[%s9886_s11 + $0x24] sm:$0xf]  ;;  %s9733_s7 = scalar_lea.vmem %s12178_s30, 512 }
  0x27   : > { %v688_v57 = vld [vmem:[%s9886_s11 + $0x28] sm:$0xf]  ;;  %v689_v58 = vld [vmem:[%s9886_s11 + $0x2c] sm:$0x1]  ;;  %v690_v29 = vld [vmem:[%s9886_s11 + $0x30] sm:$0xf]  ;;  %p9734_p11 = scmp.ne.s32.totalorder %s12178_s30, %s9733_s7 }
  0x28   : > { %s9737_s12 = sshll.u32 %s9796_s9, 4  ;;  %s9738_s12 = int_to_ptr.vmem [resolvable:$false] %s9737_s12 }
  0x29   : > { %9129 = vmatpush3.bf16.msra.mxu0 %v9614_v7  ;;  %9563 = vmatpush3.bf16.msra.mxu1 %v9614_v7  ;;  %v759_v7 = vrot.slane %v757_v59, 5  ;;  %v799_v59 = vrot.slane %v797_v48, 5  ;;  %p9735_p12 = pnand %p9734_p11, %p9862_p5  ;;  %s9739_s13 = scalar_lea.vmem %s9738_s12, 1024 }
  0x2a   : > { %9130 = vmatprep.subr.bf16.mxu0 %v9615_v8  ;;  %9556 = vmatprep.subr.bf16.mxu1 %v9615_v8  ;;  %p9740_p0 = scmp.lt.s32.totalorder %s12178_s30, %s9738_s12  ;;  %p9741_p1 = scmp.lt.s32.totalorder %s9739_s13, %s9733_s7 }
  0x2b   : > { %p9736_p13 = pneg %p9735_p12 }
  0x2c   : > { %p9742_p2 = por %p9741_p1, %p9740_p0 }
  0x2d   : > { %9131 = vmatpush3.bf16.msra.mxu0 %v9615_v8  ;;  %9564 = vmatpush3.bf16.msra.mxu1 %v9615_v8  ;;  %v765_v8 = vrot.slane %v763_v60, 5  ;;  %v8184_v60 = vrot.slane %v1505_v37, 9 }
  0x2e   : > { %9132 = vmatprep.subr.bf16.mxu0 %v9616_v9  ;;  %9557 = vmatprep.subr.bf16.mxu1 %v9616_v9  ;;  %p9743_p3 = pnand %p9742_p2, %p9736_p13 }
  0x31   : > { %9133 = vmatpush3.bf16.msra.mxu0 %v9616_v9  ;;  %9565 = vmatpush3.bf16.msra.mxu1 %v9616_v9  ;;  %v1504_v9 = vld [vmem:[%s9886_s11 + $0x14] sm:$0x1] }
  0x32   : > { %9166 = vmatprep.subr.bf16.mxu1 %v9621_v10  ;;  %9214 = vmatprep.subr.bf16.mxu0 %v9622_v12  ;;  %v1610_v28 = vrot.slane %v1504_v9, 5  ;;  %v811_v9 = vshll.u32 %v688_v57, 16 }
  0x34   : > { %9135 = vmatmul.mubr.bf16.vlgmr.msra.gmra.mxu0 %v9619_v11  ;;  %9151 = vmatmul.mubr.bf16.vlgmr.msra.gmra.mxu1 %v9620_v13  ;;  %v9995_v11 = vsel %vm9957_vm4, %v1602_v2, %v1603_v51  ;;  %v773_v13 = vshll.u32 %v683_v53, 16  ;;  %v9648_v51 = vld [vmem:[%s12224_s1 + $0x80] sm:$0xff]  }
  0x35   : > { %9167 = vmatpush3.bf16.msra.mxu1 %v9621_v10  ;;  %9215 = vmatpush3.bf16.msra.mxu0 %v9622_v12  ;;  %v742_v10 = vsel %vm9976_vm5, %v737_v0, %v741_v43  ;;  %v769_v12 = vrot.slane %v767_v3, 4  ;;  %v1506_v43 = vld [vmem:[%s9886_s11 + $0x1c] sm:$0xf]  ;;  %v802_v3 = vshrl.u32 %v687_v50, 16 }
  0x36   : > { %9168 = vmatprep.subr.bf16.mxu1 %v9623_v14  ;;  %9216 = vmatprep.subr.bf16.mxu0 %v9624_v15 }
  0x37   : > { %9138 = vmatprep.mubr.bf16.mxu0 %v9625_v16  ;;  %9154 = vmatprep.mubr.bf16.mxu1 %v9626_v17  ;;  %v752_v16 = vsel %vm9976_vm5, %v747_v5, %v751_v45  ;;  %v8214_v17 = vcombine.low %v9985_v1, %v9995_v11  ;;  %v1509_v5 = vld [vmem:[%s9886_s11 + $0x28] sm:$0xf] }
  0x39   : > { %9169 = vmatpush3.bf16.msra.mxu1 %v9623_v14  ;;  %9217 = vmatpush3.bf16.msra.mxu0 %v9624_v15  ;;  %v10000_v14 = vld [vmem:[%s12224_s1 + $0x48] sm:$0xff]  }
  0x3a   : > { %9170 = vmatprep.subr.bf16.mxu1 %v9629_v18  ;;  %9218 = vmatprep.subr.bf16.mxu0 %v9630_v20  ;;  %v10005_v15 = vld [vmem:[%s12224_s1 + $0x88] sm:$0xff]  }
  0x3c   : > { %9139 = vmatmul.mubr.bf16.gmra.mxu0 %v9627_v19  ;;  %9155 = vmatmul.mubr.bf16.gmra.mxu1 %v9628_v21  ;;  %v8183_v19 = vrot.slane %v1502_v61, 9  ;;  %v770_v21 = vor.u32 %v769_v12, %v765_v8  ;;  %v1614_v61 = vrot.slane %v1506_v43, 5  ;;  %v1510_v12 = vld [vmem:[%s9886_s11 + $0x2c] sm:$0x1] }
  0x3d   : > { %9171 = vmatpush3.bf16.msra.mxu1 %v9629_v18  ;;  %9219 = vmatpush3.bf16.msra.mxu0 %v9630_v20  ;;  %v760_v18 = vor.u32 %v759_v7, %v756_v6  ;;  %v10013_v20 = vcombine.low %v742_v10, %v752_v16  ;;  %v9649_v6 = vld [vmem:[%s12224_s1 + $0xf8] sm:$0xff]   ;;  %v815_v10 = vshrl.u32 %v688_v57, 16  ;;  %v804_v16 = vrot.slane %v802_v3, 4 }
  0x3e   : > { %9172 = vmatprep.subr.bf16.mxu1 %v9631_v22  ;;  %9220 = vmatprep.subr.bf16.mxu0 %v9632_v23  ;;  %v771_v33 = vrot.slane %v770_v21, 4  ;;  %v1615_v7 = vsel %vm9957_vm4, %v8184_v60, %v1614_v61  ;;  %v813_v21 = vrot.slane %v811_v9, 5  ;;  %v694_v60 = vld [vmem:[%s9886_s11 + $0x40] sm:$0xf] }
  0x3f   : > { %9142 = vmatprep.mubr.bf16.mxu0 %v9633_v24  ;;  %9158 = vmatprep.mubr.bf16.mxu1 %v9634_v25  ;;  %v684_v24 = vld [vmem:[%s9886_s11 + $0x18] sm:$0xf]  ;;  %v685_v25 = vld [vmem:[%s9886_s11 + $0x1c] sm:$0xf]  ;;  %v761_v27 = vrot.slane %v760_v18, 4 }
  0x40   : > { %v778_v30 = vshrl.u32 %v684_v24, 16  ;;  %v787_v36 = vshll.u32 %v685_v25, 16  ;;  %v1515_v9 = vld [vmem:[%s9886_s11 + $0x40] sm:$0xf] }
  0x41   : > { %9173 = vmatpush3.bf16.msra.mxu1 %v9631_v22  ;;  %9221 = vmatpush3.bf16.msra.mxu0 %v9632_v23  ;;  %v775_v22 = vrot.slane %v773_v13, 5  ;;  %v1607_v23 = vrot.slane %v1503_v4, 5  ;;  %v766_v39 = vsel %vm9976_vm5, %v761_v27, %v765_v8  ;;  %v805_v4 = vshll.u32 %v687_v50, 16  ;;  %v9650_v13 = vld [vmem:[%s12224_s1 + $0x138] sm:$0xff]   ;;  %v9653_v50 = vld [vmem:[%s12224_s1 + $0xe8] sm:$0xff]  }
  0x42   : > { %9174 = vmatprep.subr.bf16.mxu1 %v9943_v31  ;;  %9222 = vmatprep.subr.bf16.mxu0 %v9948_v32  ;;  %v780_v40 = vrot.slane %v778_v30, 4  ;;  %v789_v47 = vrot.slane %v787_v36, 5  ;;  %v1616_v8 = vrot.slane %v1614_v61, 4  ;;  %v691_v30 = vld [vmem:[%s9886_s11 + $0x34] sm:$0xf]  ;;  %v829_v36 = vshll.u32 %v690_v29, 16 }
  0x43   : > { %v10024_v34 = vsel %vm9957_vm4, %v8183_v19, %v1607_v23  ;;  %v1609_v35 = vrot.slane %v1607_v23, 4  ;;  %v776_v44 = vsel %vm9976_vm5, %v771_v33, %v775_v22  ;;  %v807_v18 = vrot.slane %v805_v4, 5  ;;  %v692_v33 = vld [vmem:[%s9886_s11 + $0x38] sm:$0x1]  ;;  %v695_v61 = vld [vmem:[%s9886_s11 + $0x44] sm:$0x1] }
  0x44   : > { %9143 = vmatmul.mubr.bf16.gmra.mxu0 %v9635_v41  ;;  %9159 = vmatmul.mubr.bf16.gmra.mxu1 %v9636_v42  ;;  %v791_v42 = vshrl.u32 %v685_v25, 16  ;;  %v10048_v52 = vcombine.low %v766_v39, %v776_v44  ;;  %v817_v22 = vrot.slane %v815_v10, 4  ;;  %v821_v23 = vshll.u32 %v689_v58, 16  ;;  %v1514_v4 = vld [vmem:[%s9886_s11 + $0x3c] sm:$0xe] }
  0x45   : > { %9175 = vmatpush3.bf16.msra.mxu1 %v9943_v31  ;;  %9223 = vmatpush3.bf16.msra.mxu0 %v9948_v32  ;;  %v781_v31 = vshll.u32 %v684_v24, 16  ;;  %v9644_v32 = vld [vmem:[%s9886_s11 + $0xb4] sm:$0xff]   ;;  %v10039_v45 = vsel %vm9957_vm4, %v1609_v35, %v1610_v28  ;;  %v826_v35 = vshrl.u32 %v690_v29, 16  ;;  %v839_v48 = vshrl.u32 %v691_v30, 16 }
  0x46   : > { %9176 = vmatprep.subr.bf16.mxu1 %v9967_v54  ;;  %9224 = vmatprep.subr.bf16.mxu0 %v9972_v55  ;;  %v8215_v53 = vcombine.low %v10024_v34, %v10039_v45  ;;  %v818_v1 = vor.u32 %v817_v22, %v813_v21  ;;  %v823_v11 = vrot.slane %v821_v23, 5  ;;  %v9651_v28 = vld [vmem:[%s12224_s1 + $0xf0] sm:$0xff]   ;;  %v9655_v22 = vld [vmem:[%s12224_s1 + $0xe0] sm:$0xff]   ;;  %v10135_v29 = vld [vmem:[%s12224_s1 + $0x118] sm:$0xff]  }
  0x47   : > { %9146 = vmatprep.mubr.bf16.mxu0 %v9641_v62  ;;  %9162 = vmatprep.mubr.bf16.mxu1 %v9642_v63  ;;  %v783_v41 = vrot.slane %v781_v31, 5  ;;  %v1617_v62 = vrot.slane %v1507_v49, 5  ;;  %v1508_v63 = vld [vmem:[%s9886_s11 + $0x24] sm:$0xe]  ;;  %v828_v44 = vrot.slane %v826_v35, 4 }
  0x48   : > { %v8185_v27 = vrot.slane %v1508_v63, 9  ;;  %v819_v37 = vrot.slane %v818_v1, 4  ;;  %v1512_v49 = vld [vmem:[%s9886_s11 + $0x34] sm:$0xf]  ;;  %v696_v35 = vld [vmem:[%s9886_s11 + $0x48] sm:$0xf] }
  0x49   : > { %9177 = vmatpush3.bf16.msra.mxu1 %v9967_v54  ;;  %9225 = vmatpush3.bf16.msra.mxu0 %v9972_v55  ;;  %v784_v54 = vor.u32 %v783_v41, %v780_v40  ;;  %v793_v55 = vrot.slane %v791_v42, 4  ;;  %v1618_v19 = vsel %vm9957_vm4, %v1616_v8, %v1617_v62  ;;  %v9652_v40 = vld [vmem:[%s12224_s1 + $0x130] sm:$0xff]   ;;  %v835_v41 = vshll.u32 %v691_v30, 16  ;;  %v9654_v62 = vld [vmem:[%s12224_s1 + $0x128] sm:$0xff]  }
  0x4a   : > { %9178 = vmatprep.subr.bf16.mxu1 %v10000_v14  ;;  %9226 = vmatprep.subr.bf16.mxu0 %v10005_v15  ;;  %v8216_v25 = vcombine.low %v1615_v7, %v1618_v19  ;;  %v1511_v42 = vld [vmem:[%s9886_s11 + $0x30] sm:$0xe] }
  0x4b   : > { %v785_v0 = vrot.slane %v784_v54, 4  ;;  %v794_v2 = vor.u32 %v793_v55, %v789_v47  ;;  %v837_v45 = vrot.slane %v835_v41, 5  ;;  %v693_v54 = vld [vmem:[%s9886_s11 + $0x3c] sm:$0xf]  ;;  %v877_v41 = vshll.u32 %v696_v35, 16 }
  0x4c   : > { %9147 = vmatmul.mubr.bf16.gmra.mxu0 %v9643_v26  ;;  %9163 = vmatmul.mubr.bf16.gmra.mxu1 %v9644_v32  ;;  %v808_v26 = vor.u32 %v807_v18, %v804_v16  ;;  %v1624_v32 = vrot.slane %v1510_v12, 5  ;;  %v850_v7 = vshrl.u32 %v693_v54, 16  ;;  %v853_v8 = vshll.u32 %v693_v54, 16 }
  0x4d   : > { %9179 = vmatpush3.bf16.msra.mxu1 %v10000_v14  ;;  %9227 = vmatpush3.bf16.msra.mxu0 %v10005_v15  ;;  %v790_v14 = vsel %vm9976_vm5, %v785_v0, %v789_v47  ;;  %v795_v15 = vrot.slane %v794_v2, 4  ;;  %v831_v47 = vrot.slane %v829_v36, 5  ;;  %v8186_v0 = vrot.slane %v1511_v42, 9  ;;  %v697_v36 = vld [vmem:[%s9886_s11 + $0x4c] sm:$0xf] }
  0x4e   : > { %9180 = vmatprep.subr.bf16.mxu1 %v9647_v38  ;;  %9228 = vmatprep.subr.bf16.mxu0 %v9648_v51  ;;  %v809_v31 = vrot.slane %v808_v26, 4  ;;  %v1628_v2 = vrot.slane %v1512_v49, 5  ;;  %v852_v19 = vrot.slane %v850_v7, 4  ;;  %v869_v26 = vshll.u32 %v695_v61, 16 }
  0x4f   : > { %9182 = vmatprep.mubr.bf16.mxu1 %v10013_v20  ;;  %9230 = vmatprep.mubr.bf16.mxu0 %v8214_v17  ;;  %v800_v24 = vsel %vm9976_vm5, %v795_v15, %v799_v59  ;;  %v1621_v17 = vrot.slane %v1509_v5, 5  ;;  %v832_v58 = vor.u32 %v831_v47, %v828_v44  ;;  %v841_v59 = vrot.slane %v839_v48, 4  ;;  %v1516_v15 = vld [vmem:[%s9886_s11 + $0x44] sm:$0x1]  ;;  %v1517_v48 = vld [vmem:[%s9886_s11 + $0x48] sm:$0xe] }
  0x50   : > { %v8160_v20 = vcombine.low %v790_v14, %v800_v24  ;;  %v814_v43 = vsel %vm9976_vm5, %v809_v31, %v813_v21  ;;  %v1629_v10 = vsel %vm9957_vm4, %v8186_v0, %v1628_v2  ;;  %v1630_v12 = vrot.slane %v1628_v2, 4  ;;  %v700_v0 = vld [vmem:[%s9886_s11 + $0x58] sm:$0xf]  ;;  %v701_v2 = vld [vmem:[%s9886_s11 + $0x5c] sm:$0x1] }
  0x51   : > { %9181 = vmatpush3.bf16.msra.mxu1 %v9647_v38  ;;  %9229 = vmatpush3.bf16.msra.mxu0 %v9648_v51  ;;  %v1622_v38 = vsel %vm9957_vm4, %v8185_v27, %v1621_v17  ;;  %v1623_v39 = vrot.slane %v1621_v17, 4  ;;  %v824_v51 = vsel %vm9976_vm5, %v819_v37, %v823_v11  ;;  %v833_v5 = vrot.slane %v832_v58, 4  ;;  %v9656_v27 = vld [vmem:[%s12224_s1 + $0x120] sm:$0xff]   ;;  %v1519_v58 = vld [vmem:[%s9886_s11 + $0x50] sm:$0x1] }
  0x52   : > { %9262 = vmatprep.subr.bf16.mxu1 %v9649_v6  ;;  %9310 = vmatprep.subr.bf16.mxu0 %v9650_v13  ;;  %v8161_v55 = vcombine.low %v814_v43, %v824_v51  ;;  %v863_v14 = vshrl.u32 %v694_v60, 16  ;;  %v855_v21 = vrot.slane %v853_v8, 5  ;;  %v8187_v17 = vrot.slane %v1514_v4, 9  ;;  %v1520_v8 = vld [vmem:[%s9886_s11 + $0x54] sm:$0xe] }
  0x53   : > { %v1625_v34 = vsel %vm9957_vm4, %v1623_v39, %v1624_v32  ;;  %v838_v16 = vsel %vm9976_vm5, %v833_v5, %v837_v45  ;;  %v871_v32 = vrot.slane %v869_v26, 5  ;;  %v698_v39 = vld [vmem:[%s9886_s11 + $0x50] sm:$0x1]  ;;  %v883_v47 = vshll.u32 %v697_v36, 16  ;;  %v9661_v26 = vld [vmem:[%s12224_s1 + $0xc8] sm:$0xff]  }
  0x54   : > { %9183 = vmatmul.mubr.bf16.vlgmr.msra.gmra.mxu1 %v10048_v52  ;;  %9231 = vmatmul.mubr.bf16.vlgmr.msra.gmra.mxu0 %v8215_v53  ;;  %v845_v52 = vshll.u32 %v692_v33, 16  ;;  %v1513_v53 = vld [vmem:[%s9886_s11 + $0x38] sm:$0x1]  ;;  %v8217_v57 = vcombine.low %v1622_v38, %v1625_v34  ;;  %v856_v11 = vor.u32 %v855_v21, %v852_v19  ;;  %v1635_v33 = vrot.slane %v1515_v9, 5  ;;  %v1522_v21 = vld [vmem:[%s9886_s11 + $0x5c] sm:$0x1] }
  0x55   : > { %9263 = vmatpush3.bf16.msra.mxu1 %v9649_v6  ;;  %9311 = vmatpush3.bf16.msra.mxu0 %v9650_v13  ;;  %v1631_v3 = vrot.slane %v1513_v53, 5  ;;  %v842_v6 = vor.u32 %v841_v59, %v837_v45  ;;  %v859_v13 = vshll.u32 %v694_v60, 16  ;;  %v1638_v38 = vrot.slane %v1516_v15, 5  ;;  %v1518_v45 = vld [vmem:[%s9886_s11 + $0x4c] sm:$0xf] }
  0x56   : > { %9186 = vmatprep.mubr.bf16.mxu1 %v8160_v20  ;;  %9234 = vmatprep.mubr.bf16.mxu0 %v8216_v25  ;;  %v847_v63 = vrot.slane %v845_v52, 5  ;;  %v865_v25 = vrot.slane %v863_v14, 4  ;;  %v857_v37 = vrot.slane %v856_v11, 4  ;;  %v1636_v43 = vsel %vm9957_vm4, %v8187_v17, %v1635_v33  ;;  %v9659_v52 = vld [vmem:[%s12224_s1 + $0xd0] sm:$0xff]   ;;  %v1521_v14 = vld [vmem:[%s9886_s11 + $0x58] sm:$0xf] }
  0x57   : > { %9264 = vmatprep.subr.bf16.mxu1 %v9651_v28  ;;  %9312 = vmatprep.subr.bf16.mxu0 %v9652_v40  ;;  %v843_v18 = vrot.slane %v842_v6, 4  ;;  %v1632_v23 = vsel %vm9957_vm4, %v1630_v12, %v1631_v3  ;;  %v861_v24 = vrot.slane %v859_v13, 5  ;;  %v1637_v44 = vrot.slane %v1635_v33, 4  ;;  %v699_v59 = vld [vmem:[%s9886_s11 + $0x54] sm:$0xf]  ;;  %v9662_v17 = vld [vmem:[%s12224_s1 + $0x108] sm:$0xff]  }
  0x58   : > { %v8218_v1 = vcombine.low %v1629_v10, %v1632_v23  ;;  %v879_v51 = vrot.slane %v877_v41, 5  ;;  %v887_v34 = vshrl.u32 %v697_v36, 16  ;;  %v9660_v3 = vld [vmem:[%s12224_s1 + $0x110] sm:$0xff]   ;;  %v8188_v5 = vrot.slane %v1517_v48, 9  ;;  %v10189_v33 = vld [vmem:[%s12224_s1 + $0x100] sm:$0xff]  }
  0x59   : > { %9265 = vmatpush3.bf16.msra.mxu1 %v9651_v28  ;;  %9313 = vmatpush3.bf16.msra.mxu0 %v9652_v40  ;;  %v848_v20 = vsel %vm9976_vm5, %v843_v18, %v847_v63  ;;  %v10130_v28 = vld [vmem:[%s12224_s1 + $0xd8] sm:$0xff]   ;;  %v866_v31 = vor.u32 %v865_v25, %v861_v24  ;;  %v874_v40 = vshrl.u32 %v696_v35, 16  ;;  %v862_v49 = vsel %vm9976_vm5, %v857_v37, %v861_v24 }
  0x5a   : > { %9266 = vmatprep.subr.bf16.mxu1 %v9653_v50  ;;  %9314 = vmatprep.subr.bf16.mxu0 %v9654_v62  ;;  %v8162_v30 = vcombine.low %v838_v16, %v848_v20  ;;  %v1639_v54 = vsel %vm9957_vm4, %v1637_v44, %v1638_v38  ;;  %v889_v63 = vrot.slane %v887_v34, 4  ;;  %v1642_v6 = vrot.slane %v1518_v45, 5  ;;  %v1523_v34 = vld [vmem:[%s9886_s11 + $0x60] sm:$0xe] }
  0x5b   : > { %v867_v42 = vrot.slane %v866_v31, 4  ;;  %v8219_v61 = vcombine.low %v1636_v43, %v1639_v54  ;;  %v1645_v7 = vrot.slane %v1519_v58, 5  ;;  %v898_v12 = vshrl.u32 %v699_v59, 16  ;;  %v704_v43 = vld [vmem:[%s9886_s11 + $0x68] sm:$0x1] }
  0x5c   : > { %9187 = vmatmul.mubr.bf16.gmra.mxu1 %v8161_v55  ;;  %9235 = vmatmul.mubr.bf16.gmra.mxu0 %v8217_v57  ;;  %v885_v55 = vrot.slane %v883_v47, 5  ;;  %v893_v57 = vshll.u32 %v698_v39, 16  ;;  %v901_v13 = vshll.u32 %v699_v59, 16  ;;  %v1643_v15 = vsel %vm9957_vm4, %v8188_v5, %v1642_v6  ;;  %v702_v39 = vld [vmem:[%s9886_s11 + $0x60] sm:$0xf] }
  0x5d   : > { %9267 = vmatpush3.bf16.msra.mxu1 %v9653_v50  ;;  %9315 = vmatpush3.bf16.msra.mxu0 %v9654_v62  ;;  %v876_v50 = vrot.slane %v874_v40, 4  ;;  %v872_v53 = vsel %vm9976_vm5, %v867_v42, %v871_v32  ;;  %v1644_v16 = vrot.slane %v1642_v6, 4  ;;  %v907_v18 = vshll.u32 %v700_v0, 16  ;;  %v10184_v32 = vld [vmem:[%s12224_s1 + $0xc0] sm:$0xff]   ;;  %v706_v5 = vld [vmem:[%s9886_s11 + $0x70] sm:$0xf] }
  0x5e   : > { %9238 = vmatprep.mubr.bf16.mxu0 %v8218_v1  ;;  %9268 = vmatprep.subr.bf16.mxu1 %v9655_v22  ;;  %v8163_v60 = vcombine.low %v862_v49, %v872_v53  ;;  %v895_v4 = vrot.slane %v893_v57, 5  ;;  %v890_v10 = vor.u32 %v889_v63, %v885_v55  ;;  %v911_v19 = vshrl.u32 %v700_v0, 16  ;;  %v703_v40 = vld [vmem:[%s9886_s11 + $0x64] sm:$0xf]  ;;  %v10203_v57 = vld [vmem:[%s12224_s1 + $0x178] sm:$0xff]  }
  0x5f   : > { %9190 = vmatprep.mubr.bf16.mxu1 %v8162_v30  ;;  %9316 = vmatprep.subr.bf16.mxu0 %v9656_v27  ;;  %v880_v62 = vor.u32 %v879_v51, %v876_v50  ;;  %v900_v24 = vrot.slane %v898_v12, 4  ;;  %v903_v25 = vrot.slane %v901_v13, 5  ;;  %v909_v20 = vrot.slane %v907_v18, 5  ;;  %v705_v63 = vld [vmem:[%s9886_s11 + $0x6c] sm:$0xf] }
  0x60   : > { %v891_v23 = vrot.slane %v890_v10, 4  ;;  %v913_v1 = vrot.slane %v911_v19, 4  ;;  %v917_v11 = vshll.u32 %v701_v2, 16  ;;  %v8189_v31 = vrot.slane %v1520_v8, 9  ;;  %v707_v6 = vld [vmem:[%s9886_s11 + $0x74] sm:$0x1] }
  0x61   : > { %9269 = vmatpush3.bf16.msra.mxu1 %v9655_v22  ;;  %9317 = vmatpush3.bf16.msra.mxu0 %v9656_v27  ;;  %v881_v9 = vrot.slane %v880_v62, 4  ;;  %v1646_v27 = vsel %vm9957_vm4, %v1644_v16, %v1645_v7  ;;  %v904_v30 = vor.u32 %v903_v25, %v900_v24  ;;  %v1649_v38 = vrot.slane %v1521_v14, 5  ;;  %v1525_v62 = vld [vmem:[%s9886_s11 + $0x68] sm:$0x1]  ;;  %v10218_v7 = vld [vmem:[%s12224_s1 + $0x1b8] sm:$0xff]  }
  0x62   : > { %9270 = vmatprep.subr.bf16.mxu1 %v10130_v28  ;;  %9318 = vmatprep.subr.bf16.mxu0 %v10135_v29  ;;  %v914_v36 = vor.u32 %v913_v1, %v909_v20  ;;  %v919_v37 = vrot.slane %v917_v11, 5  ;;  %v1652_v42 = vrot.slane %v1522_v21, 5  ;;  %v922_v44 = vshrl.u32 %v702_v39, 16  ;;  %v1526_v13 = vld [vmem:[%s9886_s11 + $0x6c] sm:$0xe] }
  0x63   : > { %v886_v22 = vsel %vm9976_vm5, %v881_v9, %v885_v55  ;;  %v905_v41 = vrot.slane %v904_v30, 4  ;;  %v925_v47 = vshll.u32 %v702_v39, 16  ;;  %v1650_v49 = vsel %vm9957_vm4, %v8189_v31, %v1649_v38  ;;  %v1524_v55 = vld [vmem:[%s9886_s11 + $0x64] sm:$0xf]  ;;  %v1527_v19 = vld [vmem:[%s9886_s11 + $0x70] sm:$0xf] }
  0x64   : > { %9191 = vmatmul.mubr.bf16.gmra.mxu1 %v8163_v60  ;;  %9239 = vmatmul.mubr.bf16.gmra.mxu0 %v8219_v61  ;;  %v915_v48 = vrot.slane %v914_v36, 4  ;;  %v1651_v50 = vrot.slane %v1649_v38, 4  ;;  %v931_v51 = vshll.u32 %v703_v40, 16  ;;  %v935_v54 = vshrl.u32 %v703_v40, 16  ;;  %v1528_v25 = vld [vmem:[%s9886_s11 + $0x74] sm:$0x1] }
  0x65   : > { %9271 = vmatpush3.bf16.msra.mxu1 %v10130_v28  ;;  %9319 = vmatpush3.bf16.msra.mxu0 %v10135_v29  ;;  %v896_v28 = vsel %vm9976_vm5, %v891_v23, %v895_v4  ;;  %v8220_v29 = vcombine.low %v1643_v15, %v1646_v27  ;;  %v910_v45 = vsel %vm9976_vm5, %v905_v41, %v909_v20  ;;  %v927_v53 = vrot.slane %v925_v47, 5  ;;  %v708_v39 = vld [vmem:[%s9886_s11 + $0x78] sm:$0xf]  ;;  %v709_v40 = vld [vmem:[%s9886_s11 + $0x7c] sm:$0xf] }
  0x66   : > { %9272 = vmatprep.subr.bf16.mxu1 %v9659_v52  ;;  %9320 = vmatprep.subr.bf16.mxu0 %v9660_v3  ;;  %v8164_v35 = vcombine.low %v886_v22, %v896_v28  ;;  %v920_v58 = vsel %vm9976_vm5, %v915_v48, %v919_v37  ;;  %v1653_v59 = vsel %vm9957_vm4, %v1651_v50, %v1652_v42  ;;  %v933_v60 = vrot.slane %v931_v51, 5 }
  0x67   : > { %9242 = vmatprep.mubr.bf16.mxu0 %v8220_v29  ;;  %v941_v61 = vshll.u32 %v704_v43, 16  ;;  %v8165_v0 = vcombine.low %v910_v45, %v920_v58  ;;  %v8221_v2 = vcombine.low %v1650_v49, %v1653_v59  ;;  %v937_v4 = vrot.slane %v935_v54, 4  ;;  %v710_v43 = vld [vmem:[%s9886_s11 + $0x80] sm:$0x1] }
  0x68   : > { %9194 = vmatprep.mubr.bf16.mxu1 %v8164_v35  ;;  %v8190_v9 = vrot.slane %v1523_v34, 9  ;;  %v1656_v10 = vrot.slane %v1524_v55, 5  ;;  %v1659_v12 = vrot.slane %v1525_v62, 5  ;;  %v946_v16 = vshrl.u32 %v705_v63, 16  ;;  %v1529_v34 = vld [vmem:[%s9886_s11 + $0x78] sm:$0xe] }
  0x69   : > { %9273 = vmatpush3.bf16.msra.mxu1 %v9659_v52  ;;  %9321 = vmatpush3.bf16.msra.mxu0 %v9660_v3  ;;  %v924_v52 = vrot.slane %v922_v44, 4  ;;  %v943_v8 = vrot.slane %v941_v61, 5  ;;  %v938_v15 = vor.u32 %v937_v4, %v933_v60  ;;  %v949_v18 = vshll.u32 %v705_v63, 16  ;;  %v1530_v55 = vld [vmem:[%s9886_s11 + $0x7c] sm:$0xf] }
  0x6a   : > { %9274 = vmatprep.subr.bf16.mxu1 %v9661_v26  ;;  %9322 = vmatprep.subr.bf16.mxu0 %v9662_v17  ;;  %v1657_v21 = vsel %vm9957_vm4, %v8190_v9, %v1656_v10  ;;  %v1658_v22 = vrot.slane %v1656_v10, 4  ;;  %v955_v23 = vshll.u32 %v706_v5, 16  ;;  %v959_v24 = vshrl.u32 %v706_v5, 16  ;;  %v1531_v62 = vld [vmem:[%s9886_s11 + $0x80] sm:$0x1] }
  0x6b   : > { %v928_v3 = vor.u32 %v927_v53, %v924_v52  ;;  %v939_v27 = vrot.slane %v938_v15, 4  ;;  %v948_v20 = vrot.slane %v946_v16, 4  ;;  %v951_v1 = vrot.slane %v949_v18, 5  ;;  %v711_v63 = vld [vmem:[%s9886_s11 + $0x84] sm:$0xf] }
  0x6c   : > { %9195 = vmatmul.mubr.bf16.gmra.mxu1 %v8165_v0  ;;  %9243 = vmatmul.mubr.bf16.gmra.mxu0 %v8221_v2  ;;  %v1660_v11 = vsel %vm9957_vm4, %v1658_v22, %v1659_v12  ;;  %v961_v28 = vrot.slane %v959_v24, 4  ;;  %v965_v29 = vshll.u32 %v707_v6, 16  ;;  %v1663_v38 = vrot.slane %v1527_v19, 5  ;;  %v712_v5 = vld [vmem:[%s9886_s11 + $0x88] sm:$0xf] }
  0x6d   : > { %9275 = vmatpush3.bf16.msra.mxu1 %v9661_v26  ;;  %9323 = vmatpush3.bf16.msra.mxu0 %v9662_v17  ;;  %v929_v14 = vrot.slane %v928_v3, 4  ;;  %v957_v17 = vrot.slane %v955_v23, 5  ;;  %v944_v30 = vsel %vm9976_vm5, %v939_v27, %v943_v8  ;;  %v8222_v31 = vcombine.low %v1657_v21, %v1660_v11  ;;  %v713_v6 = vld [vmem:[%s9886_s11 + $0x8c] sm:$0x1]  ;;  %v1533_v19 = vld [vmem:[%s9886_s11 + $0x88] sm:$0xf] }
  0x6e   : > { %9276 = vmatprep.subr.bf16.mxu1 %v10184_v32  ;;  %9324 = vmatprep.subr.bf16.mxu0 %v10189_v33  ;;  %v967_v37 = vrot.slane %v965_v29, 5  ;;  %v1666_v42 = vrot.slane %v1528_v25, 5  ;;  %v970_v44 = vshrl.u32 %v708_v39, 16  ;;  %v973_v47 = vshll.u32 %v708_v39, 16  ;;  %v1534_v25 = vld [vmem:[%s9886_s11 + $0x8c] sm:$0x1] }
  0x6f   : > { %v934_v26 = vsel %vm9976_vm5, %v929_v14, %v933_v60  ;;  %v962_v36 = vor.u32 %v961_v28, %v957_v17  ;;  %9246 = vmatprep.mubr.bf16.mxu0 %v8222_v31  ;;  %v1665_v50 = vrot.slane %v1663_v38, 4  ;;  %v979_v51 = vshll.u32 %v709_v40, 16  ;;  %v714_v39 = vld [vmem:[%s9886_s11 + $0x90] sm:$0xf] }
  0x70   : > { %v8166_v35 = vcombine.low %v934_v26, %v944_v30  ;;  %v972_v52 = vrot.slane %v970_v44, 4  ;;  %v975_v53 = vrot.slane %v973_v47, 5  ;;  %v983_v54 = vshrl.u32 %v709_v40, 16  ;;  %v715_v40 = vld [vmem:[%s9886_s11 + $0x94] sm:$0xf] }
  0x71   : > { %9277 = vmatpush3.bf16.msra.mxu1 %v10184_v32  ;;  %9325 = vmatpush3.bf16.msra.mxu0 %v10189_v33  ;;  %v952_v32 = vor.u32 %v951_v1, %v948_v20  ;;  %v8191_v33 = vrot.slane %v1526_v13, 9  ;;  %v963_v48 = vrot.slane %v962_v36, 4  ;;  %v1667_v59 = vsel %vm9957_vm4, %v1665_v50, %v1666_v42  ;;  %v1532_v13 = vld [vmem:[%s9886_s11 + $0x84] sm:$0xe] }
  0x72   : > { %9358 = vmatprep.subr.bf16.mxu1 %v10203_v57  ;;  %9406 = vmatprep.subr.bf16.mxu0 %v10218_v7  ;;  %v981_v60 = vrot.slane %v979_v51, 5  ;;  %v989_v61 = vshll.u32 %v710_v43, 16  ;;  %v976_v3 = vor.u32 %v975_v53, %v972_v52  ;;  %v985_v4 = vrot.slane %v983_v54, 4  ;;  %v716_v43 = vld [vmem:[%s9886_s11 + $0x98] sm:$0x1] }
  0x73   : > { %v953_v41 = vrot.slane %v952_v32, 4  ;;  %9198 = vmatprep.mubr.bf16.mxu1 %v8166_v35  ;;  %v1664_v49 = vsel %vm9957_vm4, %v8191_v33, %v1663_v38  ;;  %v968_v58 = vsel %vm9976_vm5, %v963_v48, %v967_v37  ;;  %v8192_v9 = vrot.slane %v1529_v34, 9  ;;  %v1535_v34 = vld [vmem:[%s9886_s11 + $0x90] sm:$0xe] }
  0x74   : > { %v8223_v2 = vcombine.low %v1664_v49, %v1667_v59  ;;  %v991_v8 = vrot.slane %v989_v61, 5  ;;  %v1670_v10 = vrot.slane %v1530_v55, 5  ;;  %v1673_v12 = vrot.slane %v1531_v62, 5  ;;  %v1536_v55 = vld [vmem:[%s9886_s11 + $0x94] sm:$0xf] }
  0x75   : > { %v958_v45 = vsel %vm9976_vm5, %v953_v41, %v957_v17  ;;  %v977_v14 = vrot.slane %v976_v3, 4  ;;  %v986_v15 = vor.u32 %v985_v4, %v981_v60  ;;  %v994_v16 = vshrl.u32 %v711_v63, 16  ;;  %v1537_v62 = vld [vmem:[%s9886_s11 + $0x98] sm:$0x1] }
  0x76   : > { %v8167_v0 = vcombine.low %v958_v45, %v968_v58  ;;  %9247 = vmatmul.mubr.bf16.gmra.mxu0 %v8223_v2  ;;  %v997_v18 = vshll.u32 %v711_v63, 16  ;;  %v1671_v21 = vsel %vm9957_vm4, %v8192_v9, %v1670_v10  ;;  %v1672_v22 = vrot.slane %v1670_v10, 4  ;;  %v717_v63 = vld [vmem:[%s9886_s11 + $0x9c] sm:$0xf] }
  0x77   : > { %v1003_v23 = vshll.u32 %v712_v5, 16  ;;  %v1007_v24 = vshrl.u32 %v712_v5, 16  ;;  %v982_v26 = vsel %vm9976_vm5, %v977_v14, %v981_v60  ;;  %v987_v27 = vrot.slane %v986_v15, 4  ;;  %v718_v5 = vld [vmem:[%s9886_s11 + $0xa0] sm:$0xf] }
  0x78   : > { %9199 = vmatmul.mubr.bf16.gmra.mxu1 %v8167_v0  ;;  %v996_v20 = vrot.slane %v994_v16, 4  ;;  %v999_v1 = vrot.slane %v997_v18, 5  ;;  %v1674_v11 = vsel %vm9957_vm4, %v1672_v22, %v1673_v12  ;;  %v1013_v29 = vshll.u32 %v713_v6, 16  ;;  %v719_v6 = vld [vmem:[%s9886_s11 + $0xa4] sm:$0x1] }
  0x79   : > { %v1005_v17 = vrot.slane %v1003_v23, 5  ;;  %v1009_v28 = vrot.slane %v1007_v24, 4  ;;  %v992_v30 = vsel %vm9976_vm5, %v987_v27, %v991_v8  ;;  %v8224_v31 = vcombine.low %v1671_v21, %v1674_v11 }
  0x7a   : > { %v1000_v32 = vor.u32 %v999_v1, %v996_v20  ;;  %v8193_v33 = vrot.slane %v1532_v13, 9  ;;  %v8168_v35 = vcombine.low %v982_v26, %v992_v30  ;;  %v1015_v37 = vrot.slane %v1013_v29, 5  ;;  %v1538_v13 = vld [vmem:[%s9886_s11 + $0x9c] sm:$0xe] }
  0x7b   : > { %v1010_v36 = vor.u32 %v1009_v28, %v1005_v17  ;;  %v1677_v38 = vrot.slane %v1533_v19, 5  ;;  %9250 = vmatprep.mubr.bf16.mxu0 %v8224_v31  ;;  %v1680_v42 = vrot.slane %v1534_v25, 5  ;;  %v1018_v44 = vshrl.u32 %v714_v39, 16  ;;  %v1539_v19 = vld [vmem:[%s9886_s11 + $0xa0] sm:$0xf] }
  0x7c   : > { %v1001_v41 = vrot.slane %v1000_v32, 4  ;;  %v1021_v47 = vshll.u32 %v714_v39, 16  ;;  %9202 = vmatprep.mubr.bf16.mxu1 %v8168_v35  ;;  %v1027_v51 = vshll.u32 %v715_v40, 16  ;;  %v1031_v54 = vshrl.u32 %v715_v40, 16  ;;  %v1540_v25 = vld [vmem:[%s9886_s11 + $0xa4] sm:$0x1] }
  0x7d   : > { %v1011_v48 = vrot.slane %v1010_v36, 4  ;;  %v1678_v49 = vsel %vm9957_vm4, %v8193_v33, %v1677_v38  ;;  %v1679_v50 = vrot.slane %v1677_v38, 4  ;;  %v1020_v52 = vrot.slane %v1018_v44, 4  ;;  %v720_v39 = vld [vmem:[%s9886_s11 + $0xa8] sm:$0xf] }
  0x7e   : > { %v1006_v45 = vsel %vm9976_vm5, %v1001_v41, %v1005_v17  ;;  %v1023_v53 = vrot.slane %v1021_v47, 5  ;;  %v1029_v60 = vrot.slane %v1027_v51, 5  ;;  %v1037_v61 = vshll.u32 %v716_v43, 16  ;;  %v721_v40 = vld [vmem:[%s9886_s11 + $0xac] sm:$0xf] }
  0x7f   : > { %v1016_v58 = vsel %vm9976_vm5, %v1011_v48, %v1015_v37  ;;  %v1681_v59 = vsel %vm9957_vm4, %v1679_v50, %v1680_v42  ;;  %v1033_v4 = vrot.slane %v1031_v54, 4  ;;  %v8194_v9 = vrot.slane %v1535_v34, 9  ;;  %v722_v43 = vld [vmem:[%s9886_s11 + $0xb0] sm:$0x1]  ;;  %v1541_v34 = vld [vmem:[%s9886_s11 + $0xa8] sm:$0xe] }
  0x80   : > { %v8169_v0 = vcombine.low %v1006_v45, %v1016_v58  ;;  %v8225_v2 = vcombine.low %v1678_v49, %v1681_v59  ;;  %v1024_v3 = vor.u32 %v1023_v53, %v1020_v52  ;;  %v1039_v8 = vrot.slane %v1037_v61, 5 }
  0x81   : > { %v1684_v10 = vrot.slane %v1536_v55, 5  ;;  %v1687_v12 = vrot.slane %v1537_v62, 5  ;;  %v1034_v15 = vor.u32 %v1033_v4, %v1029_v60  ;;  %v1042_v16 = vshrl.u32 %v717_v63, 16  ;;  %v1542_v55 = vld [vmem:[%s9886_s11 + $0xac] sm:$0xf] }
  0x82   : > { %9203 = vmatmul.mubr.bf16.gmra.mxu1 %v8169_v0  ;;  %9251 = vmatmul.mubr.bf16.gmra.mxu0 %v8225_v2  ;;  %v1025_v14 = vrot.slane %v1024_v3, 4  ;;  %v1045_v18 = vshll.u32 %v717_v63, 16  ;;  %v1051_v23 = vshll.u32 %v718_v5, 16  ;;  %v1055_v24 = vshrl.u32 %v718_v5, 16  ;;  %v1543_v62 = vld [vmem:[%s9886_s11 + $0xb0] sm:$0x1] }
  0x83   : > { %v1685_v21 = vsel %vm9957_vm4, %v8194_v9, %v1684_v10  ;;  %v1686_v22 = vrot.slane %v1684_v10, 4  ;;  %v1035_v27 = vrot.slane %v1034_v15, 4  ;;  %v1044_v20 = vrot.slane %v1042_v16, 4  ;;  %v723_v63 = vld [vmem:[%s9886_s11 + $0xb4] sm:$0xf] }
  0x84   : > { %v1030_v26 = vsel %vm9976_vm5, %v1025_v14, %v1029_v60  ;;  %v1047_v1 = vrot.slane %v1045_v18, 5  ;;  %v1053_v17 = vrot.slane %v1051_v23, 5  ;;  %v1057_v28 = vrot.slane %v1055_v24, 4  ;;  %v724_v5 = vld [vmem:[%s9886_s11 + $0xb8] sm:$0xf] }
  0x85   : > { %v1688_v11 = vsel %vm9957_vm4, %v1686_v22, %v1687_v12  ;;  %v1061_v29 = vshll.u32 %v719_v6, 16  ;;  %v1040_v30 = vsel %vm9976_vm5, %v1035_v27, %v1039_v8  ;;  %v8195_v33 = vrot.slane %v1538_v13, 9  ;;  %v725_v6 = vld [vmem:[%s9886_s11 + $0xbc] sm:$0x1]  ;;  %v1544_v13 = vld [vmem:[%s9886_s11 + $0xb4] sm:$0xe] }
  0x86   : > { %v8226_v31 = vcombine.low %v1685_v21, %v1688_v11  ;;  %v1048_v32 = vor.u32 %v1047_v1, %v1044_v20  ;;  %v8170_v35 = vcombine.low %v1030_v26, %v1040_v30  ;;  %v1058_v36 = vor.u32 %v1057_v28, %v1053_v17 }
  0x87   : > { %v1063_v37 = vrot.slane %v1061_v29, 5  ;;  %v1691_v38 = vrot.slane %v1539_v19, 5  ;;  %v1694_v42 = vrot.slane %v1540_v25, 5  ;;  %v1066_v44 = vshrl.u32 %v720_v39, 16  ;;  %v1545_v19 = vld [vmem:[%s9886_s11 + $0xb8] sm:$0xf] }
  0x88   : > { %9254 = vmatprep.mubr.bf16.mxu0 %v8226_v31  ;;  %v1049_v41 = vrot.slane %v1048_v32, 4  ;;  %v1069_v47 = vshll.u32 %v720_v39, 16  ;;  %9206 = vmatprep.mubr.bf16.mxu1 %v8170_v35  ;;  %v1059_v48 = vrot.slane %v1058_v36, 4  ;;  %v1075_v51 = vshll.u32 %v721_v40, 16  ;;  %v1546_v25 = vld [vmem:[%s9886_s11 + $0xbc] sm:$0x1] }
  0x89   : > { %v1692_v49 = vsel %vm9957_vm4, %v8195_v33, %v1691_v38  ;;  %v1693_v50 = vrot.slane %v1691_v38, 4  ;;  %v1068_v52 = vrot.slane %v1066_v44, 4  ;;  %v1079_v54 = vshrl.u32 %v721_v40, 16 }
  0x8a   : > { %v1054_v45 = vsel %vm9976_vm5, %v1049_v41, %v1053_v17  ;;  %v1071_v53 = vrot.slane %v1069_v47, 5  ;;  %v1064_v58 = vsel %vm9976_vm5, %v1059_v48, %v1063_v37  ;;  %v1077_v60 = vrot.slane %v1075_v51, 5  ;;  %v8310_v41 = vld [vmem:[%s9886_s11 + $0xc] sm:$0xf]  ;;  %v8312_v48 = vld [vmem:[%s9886_s11 + $0x14] sm:$0x1] }
  0x8b   : > { %v1695_v59 = vsel %vm9957_vm4, %v1693_v50, %v1694_v42  ;;  %v1085_v61 = vshll.u32 %v722_v43, 16  ;;  %v8171_v0 = vcombine.low %v1054_v45, %v1064_v58  ;;  %v1081_v4 = vrot.slane %v1079_v54, 4  ;;  %v8311_v42 = vld [vmem:[%s9886_s11 + $0x10] sm:$0xf] }
  0x8c   : > { %v8227_v2 = vcombine.low %v1692_v49, %v1695_v59  ;;  %v1072_v3 = vor.u32 %v1071_v53, %v1068_v52  ;;  %v8196_v9 = vrot.slane %v1541_v34, 9  ;;  %v1698_v10 = vrot.slane %v1542_v55, 5  ;;  %v9665_v51 = vld [vmem:[%s9886_s11 + $0xc] sm:$0xff]   ;;  %v8313_v59 = vld [vmem:[%s9886_s11 + $0x18] sm:$0xf] }
  0x8d   : > { %v1087_v8 = vrot.slane %v1085_v61, 5  ;;  %v1701_v12 = vrot.slane %v1543_v62, 5  ;;  %9207 = vmatmul.mubr.bf16.gmra.mxu1 %v8171_v0  ;;  %v1082_v15 = vor.u32 %v1081_v4, %v1077_v60  ;;  %v1090_v16 = vshrl.u32 %v723_v63, 16  ;;  %v8314_v0 = vld [vmem:[%s9886_s11 + $0x1c] sm:$0xf] }
  0x8e   : > { %9255 = vmatmul.mubr.bf16.gmra.mxu0 %v8227_v2  ;;  %v1073_v14 = vrot.slane %v1072_v3, 4  ;;  %v1093_v18 = vshll.u32 %v723_v63, 16  ;;  %v1699_v21 = vsel %vm9957_vm4, %v8196_v9, %v1698_v10  ;;  %v1700_v22 = vrot.slane %v1698_v10, 4  ;;  %v8315_v2 = vld [vmem:[%s9886_s11 + $0x20] sm:$0x1] }
  0x8f   : > { %v1099_v23 = vshll.u32 %v724_v5, 16  ;;  %v1103_v24 = vshrl.u32 %v724_v5, 16  ;;  %v1083_v27 = vrot.slane %v1082_v15, 4  ;;  %v1092_v20 = vrot.slane %v1090_v16, 4 }
  0x90   : > { %v1078_v26 = vsel %vm9976_vm5, %v1073_v14, %v1077_v60  ;;  %v1095_v1 = vrot.slane %v1093_v18, 5  ;;  %v1702_v11 = vsel %vm9957_vm4, %v1700_v22, %v1701_v12  ;;  %v1109_v29 = vshll.u32 %v725_v6, 16  ;;  %v9666_v18 = vld [vmem:[%s9886_s11 + $0x18] sm:$0xff]  }
  0x91   : > { %v1101_v17 = vrot.slane %v1099_v23, 5  ;;  %v1105_v28 = vrot.slane %v1103_v24, 4  ;;  %v1088_v30 = vsel %vm9976_vm5, %v1083_v27, %v1087_v8  ;;  %v8228_v31 = vcombine.low %v1699_v21, %v1702_v11 }
  0x92   : > { %v1096_v32 = vor.u32 %v1095_v1, %v1092_v20  ;;  %v8197_v33 = vrot.slane %v1544_v13, 9  ;;  %v8172_v35 = vcombine.low %v1078_v26, %v1088_v30  ;;  %v1111_v37 = vrot.slane %v1109_v29, 5  ;;  %v8317_v20 = vld [vmem:[%s9886_s11 + $0x28] sm:$0xf]  ;;  %v8318_v1 = vld [vmem:[%s9886_s11 + $0x2c] sm:$0x1] }
  0x93   : > { %v1106_v36 = vor.u32 %v1105_v28, %v1101_v17  ;;  %v1705_v38 = vrot.slane %v1545_v19, 5  ;;  %9258 = vmatprep.mubr.bf16.mxu0 %v8228_v31  ;;  %v1708_v40 = vrot.slane %v1546_v25, 5  ;;  %v2596_v49 = vshrl.u32 %v8310_v41, 16  ;;  %v8316_v25 = vld [vmem:[%s9886_s11 + $0x24] sm:$0xf] }
  0x94   : > { %v1097_v39 = vrot.slane %v1096_v32, 4  ;;  %9210 = vmatprep.mubr.bf16.mxu1 %v8172_v35  ;;  %v2599_v34 = vshll.u32 %v8310_v41, 16  ;;  %v2605_v45 = vshll.u32 %v8311_v42, 16  ;;  %v2609_v52 = vshrl.u32 %v8311_v42, 16  ;;  %v9669_v30 = vld [vmem:[%s9886_s11 + $0x24] sm:$0xff]  }
  0x95   : > { %v1107_v43 = vrot.slane %v1106_v36, 4  ;;  %v1706_v44 = vsel %vm9957_vm4, %v8197_v33, %v1705_v38  ;;  %v1707_v47 = vrot.slane %v1705_v38, 4  ;;  %v2598_v55 = vrot.slane %v2596_v49, 4  ;;  %v9671_v38 = vld [vmem:[%s12224_s1 + $0x170] sm:$0xff]  }
  0x96   : > { %v1102_v50 = vsel %vm9976_vm5, %v1097_v39, %v1101_v17  ;;  %v2615_v58 = vshll.u32 %v8312_v48, 16  ;;  %v2601_v62 = vrot.slane %v2599_v34, 5  ;;  %v2607_v63 = vrot.slane %v2605_v45, 5  ;;  %v8320_v49 = vld [vmem:[%s9886_s11 + $0x34] sm:$0xf]  ;;  %v9675_v45 = vld [vmem:[%s12224_s1 + $0x168] sm:$0xff]  }
  0x97   : > { %v1112_v53 = vsel %vm9976_vm5, %v1107_v43, %v1111_v37  ;;  %v1709_v54 = vsel %vm9957_vm4, %v1707_v47, %v1708_v40  ;;  %v2611_v3 = vrot.slane %v2609_v52, 4  ;;  %v2620_v5 = vshrl.u32 %v8313_v59, 16  ;;  %v8319_v43 = vld [vmem:[%s9886_s11 + $0x30] sm:$0xf] }
  0x98   : > { %v8173_v60 = vcombine.low %v1102_v50, %v1112_v53  ;;  %v8229_v61 = vcombine.low %v1706_v44, %v1709_v54  ;;  %v2617_v4 = vrot.slane %v2615_v58, 5  ;;  %v2623_v6 = vshll.u32 %v8313_v59, 16  ;;  %v9672_v44 = vld [vmem:[%s12224_s1 + $0x1b0] sm:$0xff]   ;;  %v8321_v50 = vld [vmem:[%s9886_s11 + $0x38] sm:$0x1] }
  0x99   : > { %v2602_v8 = vor.u32 %v2601_v62, %v2598_v55  ;;  %v2629_v9 = vshll.u32 %v8314_v0, 16  ;;  %v2633_v10 = vshrl.u32 %v8314_v0, 16  ;;  %v2639_v12 = vshll.u32 %v8315_v2, 16  ;;  %v9670_v59 = vld [vmem:[%s9886_s11 + $0x30] sm:$0xff]  }
  0x9a   : > { %9211 = vmatmul.mubr.bf16.gmra.mxu1 %v8173_v60  ;;  %9259 = vmatmul.mubr.bf16.gmra.mxu0 %v8229_v61  ;;  %v2612_v13 = vor.u32 %v2611_v3, %v2607_v63  ;;  %v2622_v14 = vrot.slane %v2620_v5, 4  ;;  %v2625_v15 = vrot.slane %v2623_v6, 5  ;;  %v2644_v11 = vshrl.u32 %v8316_v25, 16  ;;  %v9673_v3 = vld [vmem:[%s9886_s11 + $0x3c] sm:$0xff]   ;;  %v9676_v6 = vld [vmem:[%s12224_s1 + $0x1a8] sm:$0xff]  }
  0x9b   : > { %9278 = vmatprep.mubr.bf16.mxu1 %v9665_v51  ;;  %v2603_v16 = vrot.slane %v2602_v8, 4  ;;  %v2631_v19 = vrot.slane %v2629_v9, 5  ;;  %v2635_v21 = vrot.slane %v2633_v10, 4  ;;  %v2641_v24 = vrot.slane %v2639_v12, 5  ;;  %v8322_v10 = vld [vmem:[%s9886_s11 + $0x3c] sm:$0xf] }
  0x9c   : > { %v2613_v22 = vrot.slane %v2612_v13, 4  ;;  %v2626_v23 = vor.u32 %v2625_v15, %v2622_v14  ;;  %v2647_v17 = vshll.u32 %v8316_v25, 16  ;;  %v2653_v31 = vshll.u32 %v8317_v20, 16  ;;  %v8323_v12 = vld [vmem:[%s9886_s11 + $0x40] sm:$0xf] }
  0x9d   : > { %v2608_v26 = vsel %vm9976_vm5, %v2603_v16, %v2607_v63  ;;  %v2636_v27 = vor.u32 %v2635_v21, %v2631_v19  ;;  %v2657_v32 = vshrl.u32 %v8317_v20, 16  ;;  %v2646_v36 = vrot.slane %v2644_v11, 4  ;;  %v8324_v16 = vld [vmem:[%s9886_s11 + $0x44] sm:$0x1]  ;;  %v8326_v20 = vld [vmem:[%s9886_s11 + $0x4c] sm:$0xf] }
  0x9e   : > { %v2618_v28 = vsel %vm9976_vm5, %v2613_v22, %v2617_v4  ;;  %v2627_v29 = vrot.slane %v2626_v23, 4  ;;  %v2649_v37 = vrot.slane %v2647_v17, 5  ;;  %v2655_v40 = vrot.slane %v2653_v31, 5  ;;  %v9674_v31 = vld [vmem:[%s9886_s11 + $0x48] sm:$0xff]  }
  0x9f   : > { %v8374_v33 = vcombine.low %v2608_v26, %v2618_v28  ;;  %v2637_v35 = vrot.slane %v2636_v27, 4  ;;  %v2659_v41 = vrot.slane %v2657_v32, 4  ;;  %v2663_v42 = vshll.u32 %v8318_v1, 16  ;;  %v8325_v27 = vld [vmem:[%s9886_s11 + $0x48] sm:$0xf] }
  0xa0   : > { %v2632_v39 = vsel %vm9976_vm5, %v2627_v29, %v2631_v19  ;;  %v2650_v48 = vor.u32 %v2649_v37, %v2646_v36  ;;  %v2668_v51 = vshrl.u32 %v8319_v43, 16  ;;  %v2671_v34 = vshll.u32 %v8319_v43, 16  ;;  %v8327_v29 = vld [vmem:[%s9886_s11 + $0x50] sm:$0x1]  ;;  %v9680_v36 = vld [vmem:[%s12224_s1 + $0x1a0] sm:$0xff]  }
  0xa1   : > { %9326 = vmatprep.mubr.bf16.mxu0 %v8374_v33  ;;  %v2642_v47 = vsel %vm9976_vm5, %v2637_v35, %v2641_v24  ;;  %v2660_v53 = vor.u32 %v2659_v41, %v2655_v40  ;;  %v2665_v54 = vrot.slane %v2663_v42, 5  ;;  %v2677_v55 = vshll.u32 %v8320_v49, 16  ;;  %v9683_v41 = vld [vmem:[%s12224_s1 + $0x158] sm:$0xff]  }
  0xa2   : > { %9279 = vmatmul.mubr.bf16.vlgmr.msra.gmra.mxu1 %v9666_v18  ;;  %v8375_v52 = vcombine.low %v2632_v39, %v2642_v47  ;;  %v2651_v58 = vrot.slane %v2650_v48, 4  ;;  %v2670_v60 = vrot.slane %v2668_v51, 4  ;;  %v2673_v61 = vrot.slane %v2671_v34, 5  ;;  %v9677_v51 = vld [vmem:[%s9886_s11 + $0x54] sm:$0xff]  }
  0xa3   : > { %9359 = vmatpush3.bf16.msra.mxu1 %v10203_v57  ;;  %9282 = vmatprep.mubr.bf16.mxu1 %v9669_v30  ;;  %v2681_v62 = vshrl.u32 %v8320_v49, 16  ;;  %v2661_v63 = vrot.slane %v2660_v53, 4  ;;  %v2679_v0 = vrot.slane %v2677_v55, 5  ;;  %v2687_v2 = vshll.u32 %v8321_v50, 16 }
  0xa4   : > { %9360 = vmatprep.subr.bf16.mxu1 %v9671_v38  ;;  %9327 = vmatmul.mubr.bf16.vlgmr.msra.gmra.mxu0 %v8375_v52  ;;  %v2656_v57 = vsel %vm9976_vm5, %v2651_v58, %v2655_v40  ;;  %v2674_v4 = vor.u32 %v2673_v61, %v2670_v60  ;;  %v2692_v18 = vshrl.u32 %v8322_v10, 16  ;;  %v2695_v19 = vshll.u32 %v8322_v10, 16  ;;  %v8328_v52 = vld [vmem:[%s9886_s11 + $0x54] sm:$0xf]  ;;  %v8329_v58 = vld [vmem:[%s9886_s11 + $0x58] sm:$0xf] }
  0xa5   : > { %9407 = vmatpush3.bf16.msra.mxu0 %v10218_v7  ;;  %v2683_v5 = vrot.slane %v2681_v62, 4  ;;  %v2666_v8 = vsel %vm9976_vm5, %v2661_v63, %v2665_v54  ;;  %v2689_v9 = vrot.slane %v2687_v2, 5  ;;  %v9679_v7 = vld [vmem:[%s12224_s1 + $0x160] sm:$0xff]   ;;  %v2701_v21 = vshll.u32 %v8323_v12, 16  ;;  %v9684_v61 = vld [vmem:[%s12224_s1 + $0x198] sm:$0xff]  }
  0xa6   : > { %9408 = vmatprep.subr.bf16.mxu0 %v9672_v44  ;;  %v8376_v13 = vcombine.low %v2656_v57, %v2666_v8  ;;  %v2675_v14 = vrot.slane %v2674_v4, 4  ;;  %v2705_v22 = vshrl.u32 %v8323_v12, 16  ;;  %v2711_v23 = vshll.u32 %v8324_v16, 16  ;;  %v9678_v12 = vld [vmem:[%s9886_s11 + $0x60] sm:$0xff]  }
  0xa7   : > { %9361 = vmatpush3.bf16.msra.mxu1 %v9671_v38  ;;  %v2684_v15 = vor.u32 %v2683_v5, %v2679_v0  ;;  %v2694_v26 = vrot.slane %v2692_v18, 4  ;;  %v2697_v1 = vrot.slane %v2695_v19, 5  ;;  %v2703_v11 = vrot.slane %v2701_v21, 5  ;;  %v8333_v18 = vld [vmem:[%s9886_s11 + $0x68] sm:$0x1]  ;;  %v9681_v21 = vld [vmem:[%s9886_s11 + $0x6c] sm:$0xff]  }
  0xa8   : > { %9362 = vmatprep.subr.bf16.mxu1 %v9675_v45  ;;  %9330 = vmatprep.mubr.bf16.mxu0 %v8376_v13  ;;  %v2680_v24 = vsel %vm9976_vm5, %v2675_v14, %v2679_v0  ;;  %v2707_v17 = vrot.slane %v2705_v22, 4  ;;  %v2713_v28 = vrot.slane %v2711_v23, 5  ;;  %v2716_v32 = vshrl.u32 %v8325_v27, 16  ;;  %v8332_v13 = vld [vmem:[%s9886_s11 + $0x64] sm:$0xf]  ;;  %v9688_v22 = vld [vmem:[%s12224_s1 + $0x190] sm:$0xff]  }
  0xa9   : > { %v2685_v25 = vrot.slane %v2684_v15, 4  ;;  %9409 = vmatpush3.bf16.msra.mxu0 %v9672_v44  ;;  %v2719_v33 = vshll.u32 %v8325_v27, 16  ;;  %v2725_v35 = vshll.u32 %v8326_v20, 16  ;;  %v2698_v38 = vor.u32 %v2697_v1, %v2694_v26 }
  0xaa   : > { %9283 = vmatmul.mubr.bf16.gmra.mxu1 %v9670_v59  ;;  %9410 = vmatprep.subr.bf16.mxu0 %v9676_v6  ;;  %v2708_v39 = vor.u32 %v2707_v17, %v2703_v11  ;;  %v2729_v40 = vshrl.u32 %v8326_v20, 16  ;;  %v2718_v42 = vrot.slane %v2716_v32, 4  ;;  %v2735_v47 = vshll.u32 %v8327_v29, 16  ;;  %v8330_v59 = vld [vmem:[%s9886_s11 + $0x5c] sm:$0x1]  ;;  %v9691_v17 = vld [vmem:[%s12224_s1 + $0x148] sm:$0xff]  }
  0xab   : > { %9286 = vmatprep.mubr.bf16.mxu1 %v9673_v3  ;;  %v2690_v30 = vsel %vm9976_vm5, %v2685_v25, %v2689_v9  ;;  %9363 = vmatpush3.bf16.msra.mxu1 %v9675_v45  ;;  %v2721_v43 = vrot.slane %v2719_v33, 5  ;;  %v2727_v44 = vrot.slane %v2725_v35, 5  ;;  %v2699_v48 = vrot.slane %v2698_v38, 4  ;;  %v9687_v3 = vld [vmem:[%s12224_s1 + $0x150] sm:$0xff]  }
  0xac   : > { %v8377_v37 = vcombine.low %v2680_v24, %v2690_v30  ;;  %9364 = vmatprep.subr.bf16.mxu1 %v9679_v7  ;;  %v2709_v49 = vrot.slane %v2708_v39, 4  ;;  %v2731_v50 = vrot.slane %v2729_v40, 4  ;;  %v2737_v45 = vrot.slane %v2735_v47, 5  ;;  %v8334_v39 = vld [vmem:[%s9886_s11 + $0x6c] sm:$0xf] }
  0xad   : > { %v2722_v34 = vor.u32 %v2721_v43, %v2718_v42  ;;  %9411 = vmatpush3.bf16.msra.mxu0 %v9676_v6  ;;  %v2704_v53 = vsel %vm9976_vm5, %v2699_v48, %v2703_v11  ;;  %v2740_v60 = vshrl.u32 %v8328_v52, 16  ;;  %v2743_v0 = vshll.u32 %v8328_v52, 16  ;;  %v8335_v40 = vld [vmem:[%s9886_s11 + $0x70] sm:$0xf]  ;;  %v8336_v43 = vld [vmem:[%s9886_s11 + $0x74] sm:$0x1] }
  0xae   : > { %9331 = vmatmul.mubr.bf16.gmra.mxu0 %v8377_v37  ;;  %v2714_v54 = vsel %vm9976_vm5, %v2709_v49, %v2713_v28  ;;  %v2732_v55 = vor.u32 %v2731_v50, %v2727_v44  ;;  %9412 = vmatprep.subr.bf16.mxu0 %v9680_v36  ;;  %v2749_v2 = vshll.u32 %v8329_v58, 16  ;;  %v2753_v5 = vshrl.u32 %v8329_v58, 16  ;;  %v9685_v58 = vld [vmem:[%s9886_s11 + $0x84] sm:$0xff]  }
  0xaf   : > { %9365 = vmatpush3.bf16.msra.mxu1 %v9679_v7  ;;  %v8378_v62 = vcombine.low %v2704_v53, %v2714_v54  ;;  %v2723_v63 = vrot.slane %v2722_v34, 4  ;;  %v2742_v4 = vrot.slane %v2740_v60, 4  ;;  %v2759_v6 = vshll.u32 %v8330_v59, 16  ;;  %v8331_v7 = vld [vmem:[%s9886_s11 + $0x60] sm:$0xf]  ;;  %v9682_v34 = vld [vmem:[%s9886_s11 + $0x78] sm:$0xff]  }
  0xb0   : > { %9366 = vmatprep.subr.bf16.mxu1 %v9683_v41  ;;  %v2733_v57 = vrot.slane %v2732_v55, 4  ;;  %v2745_v9 = vrot.slane %v2743_v0, 5  ;;  %v2751_v10 = vrot.slane %v2749_v2, 5  ;;  %v2755_v15 = vrot.slane %v2753_v5, 4  ;;  %v8337_v55 = vld [vmem:[%s9886_s11 + $0x78] sm:$0xf] }
  0xb1   : > { %9334 = vmatprep.mubr.bf16.mxu0 %v8378_v62  ;;  %v2728_v8 = vsel %vm9976_vm5, %v2723_v63, %v2727_v44  ;;  %9413 = vmatpush3.bf16.msra.mxu0 %v9680_v36  ;;  %v2761_v16 = vrot.slane %v2759_v6, 5  ;;  %v2764_v19 = vshrl.u32 %v8331_v7, 16  ;;  %v2767_v25 = vshll.u32 %v8331_v7, 16  ;;  %v9695_v36 = vld [vmem:[%s12224_s1 + $0x140] sm:$0xff]   ;;  %v8338_v63 = vld [vmem:[%s9886_s11 + $0x7c] sm:$0xf] }
  0xb2   : > { %9287 = vmatmul.mubr.bf16.gmra.mxu1 %v9674_v31  ;;  %v2738_v14 = vsel %vm9976_vm5, %v2733_v57, %v2737_v45  ;;  %9414 = vmatprep.subr.bf16.mxu0 %v9684_v61  ;;  %v2746_v24 = vor.u32 %v2745_v9, %v2742_v4  ;;  %v2773_v26 = vshll.u32 %v8332_v13, 16  ;;  %v2756_v27 = vor.u32 %v2755_v15, %v2751_v10  ;;  %v9692_v31 = vld [vmem:[%s12224_s1 + $0x188] sm:$0xff]   ;;  %v9696_v59 = vld [vmem:[%s12224_s1 + $0x180] sm:$0xff]   ;;  %v10445_v2 = vld [vmem:[%s12224_s1 + $0x1f8] sm:$0xff]  }
  0xb3   : > { %9290 = vmatprep.mubr.bf16.mxu1 %v9677_v51  ;;  %9367 = vmatpush3.bf16.msra.mxu1 %v9683_v41  ;;  %v8379_v23 = vcombine.low %v2728_v8, %v2738_v14  ;;  %v2766_v20 = vrot.slane %v2764_v19, 4  ;;  %v2777_v1 = vshrl.u32 %v8332_v13, 16  ;;  %v2783_v11 = vshll.u32 %v8333_v18, 16  ;;  %v8339_v0 = vld [vmem:[%s9886_s11 + $0x80] sm:$0x1]  ;;  %v10452_v19 = vld [vmem:[%s12224_s1 + $0x238] sm:$0xff]  }
  0xb4   : > { %9368 = vmatprep.subr.bf16.mxu1 %v9687_v3  ;;  %v2747_v28 = vrot.slane %v2746_v24, 4  ;;  %v2769_v29 = vrot.slane %v2767_v25, 5  ;;  %v2775_v30 = vrot.slane %v2773_v26, 5  ;;  %v2757_v32 = vrot.slane %v2756_v27, 4  ;;  %v8340_v24 = vld [vmem:[%s9886_s11 + $0x84] sm:$0xf] }
  0xb5   : > { %v2779_v33 = vrot.slane %v2777_v1, 4  ;;  %v2785_v35 = vrot.slane %v2783_v11, 5  ;;  %9415 = vmatpush3.bf16.msra.mxu0 %v9684_v61  ;;  %v2788_v44 = vshrl.u32 %v8334_v39, 16  ;;  %v2791_v47 = vshll.u32 %v8334_v39, 16  ;;  %v8341_v25 = vld [vmem:[%s9886_s11 + $0x88] sm:$0xf] }
  0xb6   : > { %9335 = vmatmul.mubr.bf16.gmra.mxu0 %v8379_v23  ;;  %v2752_v37 = vsel %vm9976_vm5, %v2747_v28, %v2751_v10  ;;  %v2770_v38 = vor.u32 %v2769_v29, %v2766_v20  ;;  %9416 = vmatprep.subr.bf16.mxu0 %v9688_v22  ;;  %v2762_v41 = vsel %vm9976_vm5, %v2757_v32, %v2761_v16  ;;  %v2797_v50 = vshll.u32 %v8335_v40, 16  ;;  %v8342_v20 = vld [vmem:[%s9886_s11 + $0x8c] sm:$0x1]  ;;  %v8343_v32 = vld [vmem:[%s9886_s11 + $0x90] sm:$0xf] }
  0xb7   : > { %9369 = vmatpush3.bf16.msra.mxu1 %v9687_v3  ;;  %v2780_v42 = vor.u32 %v2779_v33, %v2775_v30  ;;  %v8380_v48 = vcombine.low %v2752_v37, %v2762_v41  ;;  %v2801_v51 = vshrl.u32 %v8335_v40, 16  ;;  %v2790_v52 = vrot.slane %v2788_v44, 4  ;;  %v9689_v33 = vld [vmem:[%s9886_s11 + $0x9c] sm:$0xff]   ;;  %v8344_v39 = vld [vmem:[%s9886_s11 + $0x94] sm:$0xf] }
  0xb8   : > { %9370 = vmatprep.subr.bf16.mxu1 %v9691_v17  ;;  %v2771_v49 = vrot.slane %v2770_v38, 4  ;;  %v2793_v53 = vrot.slane %v2791_v47, 5  ;;  %v2807_v54 = vshll.u32 %v8336_v43, 16  ;;  %v2799_v61 = vrot.slane %v2797_v50, 5  ;;  %v8345_v43 = vld [vmem:[%s9886_s11 + $0x98] sm:$0x1] }
  0xb9   : > { %v2781_v45 = vrot.slane %v2780_v42, 4  ;;  %9417 = vmatpush3.bf16.msra.mxu0 %v9688_v22  ;;  %9338 = vmatprep.mubr.bf16.mxu0 %v8380_v48  ;;  %v2803_v62 = vrot.slane %v2801_v51, 4  ;;  %v2812_v5 = vshrl.u32 %v8337_v55, 16  ;;  %v2815_v9 = vshll.u32 %v8337_v55, 16 }
  0xba   : > { %9291 = vmatmul.mubr.bf16.gmra.mxu1 %v9678_v12  ;;  %v2776_v60 = vsel %vm9976_vm5, %v2771_v49, %v2775_v30  ;;  %9418 = vmatprep.subr.bf16.mxu0 %v9692_v31  ;;  %v2794_v57 = vor.u32 %v2793_v53, %v2790_v52  ;;  %v2809_v4 = vrot.slane %v2807_v54, 5  ;;  %v2821_v10 = vshll.u32 %v8338_v63, 16 }
  0xbb   : > { %9294 = vmatprep.mubr.bf16.mxu1 %v9681_v21  ;;  %9371 = vmatpush3.bf16.msra.mxu1 %v9691_v17  ;;  %v2786_v3 = vsel %vm9976_vm5, %v2781_v45, %v2785_v35  ;;  %v2804_v8 = vor.u32 %v2803_v62, %v2799_v61  ;;  %v2814_v7 = vrot.slane %v2812_v5, 4  ;;  %v2825_v13 = vshrl.u32 %v8338_v63, 16  ;;  %v9686_v17 = vld [vmem:[%s9886_s11 + $0x90] sm:$0xff]  }
  0xbc   : > { %9372 = vmatprep.subr.bf16.mxu1 %v9695_v36  ;;  %v8381_v6 = vcombine.low %v2776_v60, %v2786_v3  ;;  %v2795_v12 = vrot.slane %v2794_v57, 4  ;;  %v2831_v14 = vshll.u32 %v8339_v0, 16  ;;  %v2817_v16 = vrot.slane %v2815_v9, 5  ;;  %v8346_v3 = vld [vmem:[%s9886_s11 + $0x9c] sm:$0xf] }
  0xbd   : > { %9419 = vmatpush3.bf16.msra.mxu0 %v9692_v31  ;;  %v2805_v15 = vrot.slane %v2804_v8, 4  ;;  %v2823_v18 = vrot.slane %v2821_v10, 5  ;;  %v2827_v22 = vrot.slane %v2825_v13, 4  ;;  %v2836_v1 = vshrl.u32 %v8340_v24, 16  ;;  %v8347_v57 = vld [vmem:[%s9886_s11 + $0xa0] sm:$0xf] }
  0xbe   : > { %9339 = vmatmul.mubr.bf16.gmra.mxu0 %v8381_v6  ;;  %v2800_v21 = vsel %vm9976_vm5, %v2795_v12, %v2799_v61  ;;  %v2833_v23 = vrot.slane %v2831_v14, 5  ;;  %9420 = vmatprep.subr.bf16.mxu0 %v9696_v59  ;;  %v2818_v27 = vor.u32 %v2817_v16, %v2814_v7  ;;  %v2839_v11 = vshll.u32 %v8340_v24, 16  ;;  %v8348_v8 = vld [vmem:[%s9886_s11 + $0xa4] sm:$0x1]  ;;  %v9693_v12 = vld [vmem:[%s9886_s11 + $0xb4] sm:$0xff]  }
  0xbf   : > { %9373 = vmatpush3.bf16.msra.mxu1 %v9695_v36  ;;  %v2810_v26 = vsel %vm9976_vm5, %v2805_v15, %v2809_v4  ;;  %v2828_v29 = vor.u32 %v2827_v22, %v2823_v18  ;;  %v2845_v30 = vshll.u32 %v8341_v25, 16  ;;  %v2849_v31 = vshrl.u32 %v8341_v25, 16  ;;  %v9690_v4 = vld [vmem:[%s9886_s11 + $0xa8] sm:$0xff]  }
  0xc0   : > { %9454 = vmatprep.subr.bf16.mxu1 %v10445_v2  ;;  %v8382_v28 = vcombine.low %v2800_v21, %v2810_v26  ;;  %v2819_v35 = vrot.slane %v2818_v27, 4  ;;  %v2838_v36 = vrot.slane %v2836_v1, 4  ;;  %v2841_v37 = vrot.slane %v2839_v11, 5  ;;  %v8350_v27 = vld [vmem:[%s9886_s11 + $0xac] sm:$0xf] }
  0xc1   : > { %9421 = vmatpush3.bf16.msra.mxu0 %v9696_v59  ;;  %v2855_v38 = vshll.u32 %v8342_v20, 16  ;;  %v2829_v40 = vrot.slane %v2828_v29, 4  ;;  %v2847_v41 = vrot.slane %v2845_v30, 5  ;;  %v2851_v42 = vrot.slane %v2849_v31, 4  ;;  %v8351_v20 = vld [vmem:[%s9886_s11 + $0xb0] sm:$0x1] }
  0xc2   : > { %9295 = vmatmul.mubr.bf16.gmra.mxu1 %v9682_v34  ;;  %9502 = vmatprep.subr.bf16.mxu0 %v10452_v19  ;;  %v2860_v44 = vshrl.u32 %v8343_v32, 16  ;;  %v2824_v47 = vsel %vm9976_vm5, %v2819_v35, %v2823_v18  ;;  %v2842_v48 = vor.u32 %v2841_v37, %v2838_v36  ;;  %v2863_v50 = vshll.u32 %v8343_v32, 16 }
  0xc3   : > { %9298 = vmatprep.mubr.bf16.mxu1 %v9685_v58  ;;  %9342 = vmatprep.mubr.bf16.mxu0 %v8382_v28  ;;  %v2857_v49 = vrot.slane %v2855_v38, 5  ;;  %v2834_v51 = vsel %vm9976_vm5, %v2829_v40, %v2833_v23  ;;  %v2852_v34 = vor.u32 %v2851_v42, %v2847_v41  ;;  %v2869_v52 = vshll.u32 %v8344_v39, 16  ;;  %v8349_v23 = vld [vmem:[%s9886_s11 + $0xa8] sm:$0xf] }
  0xc4   : > { %v2862_v45 = vrot.slane %v2860_v44, 4  ;;  %v8383_v53 = vcombine.low %v2824_v47, %v2834_v51  ;;  %v2843_v54 = vrot.slane %v2842_v48, 4  ;;  %v2865_v55 = vrot.slane %v2863_v50, 5  ;;  %v8352_v44 = vld [vmem:[%s9886_s11 + $0xb4] sm:$0xf]  ;;  %v9694_v47 = vld [vmem:[%s9886_s11 + $0xc0] sm:$0xff]  }
  0xc5   : > { %v2873_v58 = vshrl.u32 %v8344_v39, 16  ;;  %v2853_v59 = vrot.slane %v2852_v34, 4  ;;  %v2871_v60 = vrot.slane %v2869_v52, 5  ;;  %v2879_v61 = vshll.u32 %v8345_v43, 16  ;;  %v8353_v51 = vld [vmem:[%s9886_s11 + $0xb8] sm:$0xf] }
  0xc6   : > { %9343 = vmatmul.mubr.bf16.gmra.mxu0 %v8383_v53  ;;  %v2848_v62 = vsel %vm9976_vm5, %v2843_v54, %v2847_v41  ;;  %v2866_v63 = vor.u32 %v2865_v55, %v2862_v45  ;;  %v2884_v9 = vshrl.u32 %v8346_v3, 16  ;;  %v2887_v10 = vshll.u32 %v8346_v3, 16  ;;  %v8354_v34 = vld [vmem:[%s9886_s11 + $0xbc] sm:$0x1] }
  0xc7   : > { %v2875_v0 = vrot.slane %v2873_v58, 4  ;;  %v2858_v5 = vsel %vm9976_vm5, %v2853_v59, %v2857_v49  ;;  %v2881_v6 = vrot.slane %v2879_v61, 5  ;;  %v2893_v15 = vshll.u32 %v8347_v57, 16 }
  0xc8   : > { %v8384_v7 = vcombine.low %v2848_v62, %v2858_v5  ;;  %v2867_v13 = vrot.slane %v2866_v63, 4  ;;  %v2886_v16 = vrot.slane %v2884_v9, 4  ;;  %v2889_v18 = vrot.slane %v2887_v10, 5 }
  0xc9   : > { %v2876_v14 = vor.u32 %v2875_v0, %v2871_v60  ;;  %v2897_v21 = vshrl.u32 %v8347_v57, 16  ;;  %v2903_v22 = vshll.u32 %v8348_v8, 16  ;;  %v2895_v26 = vrot.slane %v2893_v15, 5  ;;  %v8355_v57 = vld [vmem:[%s9886_s11 + $0xc0] sm:$0xf] }
  0xca   : > { %9299 = vmatmul.mubr.bf16.gmra.mxu1 %v9686_v17  ;;  %9346 = vmatprep.mubr.bf16.mxu0 %v8384_v7  ;;  %v2872_v24 = vsel %vm9976_vm5, %v2867_v13, %v2871_v60  ;;  %v2890_v1 = vor.u32 %v2889_v18, %v2886_v16  ;;  %v2908_v28 = vshrl.u32 %v8349_v23, 16  ;;  %v2911_v30 = vshll.u32 %v8349_v23, 16  ;;  %v8357_v8 = vld [vmem:[%s9886_s11 + $0xc8] sm:$0x1] }
  0xcb   : > { %9302 = vmatprep.mubr.bf16.mxu1 %v9689_v33  ;;  %v2877_v25 = vrot.slane %v2876_v14, 4  ;;  %v2899_v11 = vrot.slane %v2897_v21, 4  ;;  %v2905_v17 = vrot.slane %v2903_v22, 5  ;;  %v2917_v31 = vshll.u32 %v8350_v27, 16 }
  0xcc   : > { %v2921_v32 = vshrl.u32 %v8350_v27, 16  ;;  %v2891_v35 = vrot.slane %v2890_v1, 4  ;;  %v2910_v37 = vrot.slane %v2908_v28, 4  ;;  %v2913_v38 = vrot.slane %v2911_v30, 5  ;;  %v8399_v1 = vld [vmem:[%s9886_s11 + $0x10] sm:$0xf] }
  0xcd   : > { %v2882_v29 = vsel %vm9976_vm5, %v2877_v25, %v2881_v6  ;;  %v2900_v36 = vor.u32 %v2899_v11, %v2895_v26  ;;  %v2919_v39 = vrot.slane %v2917_v31, 5  ;;  %v2927_v41 = vshll.u32 %v8351_v20, 16  ;;  %v8356_v6 = vld [vmem:[%s9886_s11 + $0xc4] sm:$0xf]  ;;  %v8398_v20 = vld [vmem:[%s9886_s11 + $0xc] sm:$0xe] }
  0xce   : > { %v8385_v33 = vcombine.low %v2872_v24, %v2882_v29  ;;  %v2923_v40 = vrot.slane %v2921_v32, 4  ;;  %v2896_v42 = vsel %vm9976_vm5, %v2891_v35, %v2895_v26  ;;  %v2914_v48 = vor.u32 %v2913_v38, %v2910_v37  ;;  %v8400_v29 = vld [vmem:[%s9886_s11 + $0x14] sm:$0x1]  ;;  %v8402_v38 = vld [vmem:[%s9886_s11 + $0x1c] sm:$0xf] }
  0xcf   : > { %v2901_v43 = vrot.slane %v2900_v36, 4  ;;  %v2929_v50 = vrot.slane %v2927_v41, 5  ;;  %v2932_v45 = vshrl.u32 %v8352_v44, 16  ;;  %v2935_v53 = vshll.u32 %v8352_v44, 16  ;;  %v8401_v36 = vld [vmem:[%s9886_s11 + $0x18] sm:$0xe] }
  0xd0   : > { %9347 = vmatmul.mubr.bf16.gmra.mxu0 %v8385_v33  ;;  %v2924_v49 = vor.u32 %v2923_v40, %v2919_v39  ;;  %v2941_v54 = vshll.u32 %v8353_v51, 16  ;;  %v2945_v55 = vshrl.u32 %v8353_v51, 16  ;;  %v2915_v59 = vrot.slane %v2914_v48, 4 }
  0xd1   : > { %v2906_v52 = vsel %vm9976_vm5, %v2901_v43, %v2905_v17  ;;  %v2934_v61 = vrot.slane %v2932_v45, 4  ;;  %v2937_v62 = vrot.slane %v2935_v53, 5  ;;  %v2951_v3 = vshll.u32 %v8354_v34, 16  ;;  %v8404_v34 = vld [vmem:[%s9886_s11 + $0x24] sm:$0xe] }
  0xd2   : > { %9303 = vmatmul.mubr.bf16.gmra.mxu1 %v9690_v4  ;;  %v8386_v58 = vcombine.low %v2896_v42, %v2906_v52  ;;  %v2925_v60 = vrot.slane %v2924_v49, 4  ;;  %v2943_v63 = vrot.slane %v2941_v54, 5  ;;  %v2947_v0 = vrot.slane %v2945_v55, 4  ;;  %v8405_v55 = vld [vmem:[%s9886_s11 + $0x28] sm:$0xf] }
  0xd3   : > { %9306 = vmatprep.mubr.bf16.mxu1 %v9693_v12  ;;  %v2920_v4 = vsel %vm9976_vm5, %v2915_v59, %v2919_v39  ;;  %v2956_v9 = vshrl.u32 %v8355_v57, 16  ;;  %v2959_v10 = vshll.u32 %v8355_v57, 16  ;;  %v2938_v7 = vor.u32 %v2937_v62, %v2934_v61  ;;  %v8403_v39 = vld [vmem:[%s9886_s11 + $0x20] sm:$0x1]  ;;  %v9703_v62 = vld [vmem:[%s12224_s1 + $0x1f0] sm:$0xff]  }
  0xd4   : > { %9350 = vmatprep.mubr.bf16.mxu0 %v8386_v58  ;;  %v2930_v5 = vsel %vm9976_vm5, %v2925_v60, %v2929_v50  ;;  %v2948_v13 = vor.u32 %v2947_v0, %v2943_v63  ;;  %v2953_v14 = vrot.slane %v2951_v3, 5  ;;  %v2965_v18 = vshll.u32 %v8356_v6, 16  ;;  %v8406_v58 = vld [vmem:[%s9886_s11 + $0x2c] sm:$0x1]  ;;  %v8407_v0 = vld [vmem:[%s9886_s11 + $0x30] sm:$0xe] }
  0xd5   : > { %v8387_v12 = vcombine.low %v2920_v4, %v2930_v5  ;;  %v2958_v15 = vrot.slane %v2956_v9, 4  ;;  %v2961_v16 = vrot.slane %v2959_v10, 5  ;;  %v2969_v21 = vshrl.u32 %v8356_v6, 16  ;;  %v8408_v3 = vld [vmem:[%s9886_s11 + $0x34] sm:$0xf]  ;;  %v9698_v9 = vld [vmem:[%s9886_s11 + $0x24] sm:$0xff]  }
  0xd6   : > { %v2939_v22 = vrot.slane %v2938_v7, 4  ;;  %v2949_v23 = vrot.slane %v2948_v13, 4  ;;  %v2975_v24 = vshll.u32 %v8357_v8, 16  ;;  %v2967_v26 = vrot.slane %v2965_v18, 5  ;;  %v8409_v6 = vld [vmem:[%s9886_s11 + $0x38] sm:$0x1] }
  0xd7   : > { %v2962_v25 = vor.u32 %v2961_v16, %v2958_v15  ;;  %v2971_v27 = vrot.slane %v2969_v21, 4  ;;  %v8446_v30 = vrot.slane %v8398_v20, 9  ;;  %v3463_v35 = vrot.slane %v8399_v1, 5  ;;  %v9701_v13 = vld [vmem:[%s9886_s11 + $0x30] sm:$0xff]   ;;  %v8410_v21 = vld [vmem:[%s9886_s11 + $0x3c] sm:$0xe] }
  0xd8   : > { %9351 = vmatmul.mubr.bf16.gmra.mxu0 %v8387_v12  ;;  %v2944_v11 = vsel %vm9976_vm5, %v2939_v22, %v2943_v63  ;;  %v2954_v17 = vsel %vm9976_vm5, %v2949_v23, %v2953_v14  ;;  %v2977_v28 = vrot.slane %v2975_v24, 5  ;;  %v3466_v37 = vrot.slane %v8400_v29, 5  ;;  %v9704_v18 = vld [vmem:[%s12224_s1 + $0x230] sm:$0xff]   ;;  %v8411_v22 = vld [vmem:[%s9886_s11 + $0x40] sm:$0xf]  ;;  %v9707_v20 = vld [vmem:[%s12224_s1 + $0x1e8] sm:$0xff]  }
  0xd9   : > { %v8388_v31 = vcombine.low %v2944_v11, %v2954_v17  ;;  %v2963_v32 = vrot.slane %v2962_v25, 4  ;;  %v2972_v33 = vor.u32 %v2971_v27, %v2967_v26  ;;  %v8447_v40 = vrot.slane %v8401_v36, 9  ;;  %v8412_v23 = vld [vmem:[%s9886_s11 + $0x44] sm:$0x1]  ;;  %v8413_v27 = vld [vmem:[%s9886_s11 + $0x48] sm:$0xe] }
  0xda   : > { %9307 = vmatmul.mubr.bf16.gmra.mxu1 %v9694_v47  ;;  %v3464_v43 = vsel %vm9957_vm4, %v8446_v30, %v3463_v35  ;;  %v3465_v44 = vrot.slane %v3463_v35, 4  ;;  %v9697_v47 = vld [vmem:[%s9886_s11 + $0x18] sm:$0xff]   ;;  %v3470_v48 = vrot.slane %v8402_v38, 5  ;;  %v3473_v49 = vrot.slane %v8403_v39, 5  ;;  %v8415_v29 = vld [vmem:[%s9886_s11 + $0x50] sm:$0x1] }
  0xdb   : > { %9354 = vmatprep.mubr.bf16.mxu0 %v8388_v31  ;;  %v2968_v41 = vsel %vm9976_vm5, %v2963_v32, %v2967_v26  ;;  %v2973_v42 = vrot.slane %v2972_v33, 4  ;;  %v8448_v59 = vrot.slane %v8404_v34, 9  ;;  %v3477_v60 = vrot.slane %v8405_v55, 5  ;;  %v9711_v31 = vld [vmem:[%s12224_s1 + $0x1e0] sm:$0xff]  }
  0xdc   : > { %v3467_v51 = vsel %vm9957_vm4, %v3465_v44, %v3466_v37  ;;  %v3471_v53 = vsel %vm9957_vm4, %v8447_v40, %v3470_v48  ;;  %v3472_v54 = vrot.slane %v3470_v48, 4  ;;  %v3480_v61 = vrot.slane %v8406_v58, 5  ;;  %v9702_v40 = vld [vmem:[%s9886_s11 + $0x3c] sm:$0xff]   ;;  %v8416_v44 = vld [vmem:[%s9886_s11 + $0x54] sm:$0xe] }
  0xdd   : > { %v2978_v50 = vsel %vm9976_vm5, %v2973_v42, %v2977_v28  ;;  %v8478_v52 = vcombine.low %v3464_v43, %v3467_v51  ;;  %v3478_v4 = vsel %vm9957_vm4, %v8448_v59, %v3477_v60  ;;  %v3479_v5 = vrot.slane %v3477_v60, 4  ;;  %v8414_v28 = vld [vmem:[%s9886_s11 + $0x4c] sm:$0xf]  ;;  %v8418_v48 = vld [vmem:[%s9886_s11 + $0x5c] sm:$0x1] }
  0xde   : > { %v8389_v45 = vcombine.low %v2968_v41, %v2978_v50  ;;  %v3474_v63 = vsel %vm9957_vm4, %v3472_v54, %v3473_v49  ;;  %v8449_v8 = vrot.slane %v8407_v0, 9  ;;  %v3484_v10 = vrot.slane %v8408_v3, 5  ;;  %v9708_v43 = vld [vmem:[%s12224_s1 + $0x228] sm:$0xff]   ;;  %v8419_v54 = vld [vmem:[%s9886_s11 + $0x60] sm:$0xe]  ;;  %v9715_v3 = vld [vmem:[%s12224_s1 + $0x1d8] sm:$0xff]  }
  0xdf   : > { %9374 = vmatprep.mubr.bf16.mxu1 %v8478_v52  ;;  %v8479_v57 = vcombine.low %v3471_v53, %v3474_v63  ;;  %v3487_v12 = vrot.slane %v8409_v6, 5  ;;  %v3481_v7 = vsel %vm9957_vm4, %v3479_v5, %v3480_v61  ;;  %v8450_v24 = vrot.slane %v8410_v21, 9  ;;  %v8420_v55 = vld [vmem:[%s9886_s11 + $0x64] sm:$0xf]  ;;  %v8421_v58 = vld [vmem:[%s9886_s11 + $0x68] sm:$0x1] }
  0xe0   : > { %9355 = vmatmul.mubr.bf16.gmra.mxu0 %v8389_v45  ;;  %v8480_v14 = vcombine.low %v3478_v4, %v3481_v7  ;;  %v3485_v15 = vsel %vm9957_vm4, %v8449_v8, %v3484_v10  ;;  %v3486_v16 = vrot.slane %v3484_v10, 4  ;;  %v3491_v25 = vrot.slane %v8411_v22, 5  ;;  %v9712_v0 = vld [vmem:[%s12224_s1 + $0x220] sm:$0xff]   ;;  %v9719_v8 = vld [vmem:[%s12224_s1 + $0x1d0] sm:$0xff]   ;;  %v9716_v7 = vld [vmem:[%s12224_s1 + $0x218] sm:$0xff]  }
  0xe1   : > { %9422 = vmatprep.mubr.bf16.mxu0 %v9697_v47  ;;  %v3494_v26 = vrot.slane %v8412_v23, 5  ;;  %v8451_v30 = vrot.slane %v8413_v27, 9  ;;  %v3498_v35 = vrot.slane %v8414_v28, 5  ;;  %v3501_v36 = vrot.slane %v8415_v29, 5  ;;  %v8417_v47 = vld [vmem:[%s9886_s11 + $0x58] sm:$0xf] }
  0xe2   : > { %9375 = vmatmul.mubr.bf16.vlgmr.msra.gmra.mxu1 %v8479_v57  ;;  %v3492_v11 = vsel %vm9957_vm4, %v8450_v24, %v3491_v25  ;;  %v3493_v17 = vrot.slane %v3491_v25, 4  ;;  %v8452_v49 = vrot.slane %v8416_v44, 9  ;;  %v3505_v52 = vrot.slane %v8417_v47, 5  ;;  %v9706_v21 = vld [vmem:[%s9886_s11 + $0x54] sm:$0xff]   ;;  %v9709_v25 = vld [vmem:[%s9886_s11 + $0x60] sm:$0xff]  }
  0xe3   : > { %9455 = vmatpush3.bf16.msra.mxu1 %v10445_v2  ;;  %9378 = vmatprep.mubr.bf16.mxu1 %v8480_v14  ;;  %v3488_v2 = vsel %vm9957_vm4, %v3486_v16, %v3487_v12  ;;  %v3500_v42 = vrot.slane %v3498_v35, 4  ;;  %v3499_v34 = vsel %vm9957_vm4, %v8451_v30, %v3498_v35  ;;  %v3508_v53 = vrot.slane %v8418_v48, 5  ;;  %v8422_v14 = vld [vmem:[%s9886_s11 + $0x6c] sm:$0xe]  ;;  %v8424_v22 = vld [vmem:[%s9886_s11 + $0x74] sm:$0x1] }
  0xe4   : > { %9456 = vmatprep.subr.bf16.mxu1 %v9703_v62  ;;  %v8481_v1 = vcombine.low %v3485_v15, %v3488_v2  ;;  %v3495_v37 = vsel %vm9957_vm4, %v3493_v17, %v3494_v26  ;;  %v3506_v61 = vsel %vm9957_vm4, %v8452_v49, %v3505_v52  ;;  %v3512_v63 = vrot.slane %v8420_v55, 5  ;;  %v8423_v15 = vld [vmem:[%s9886_s11 + $0x70] sm:$0xf]  ;;  %v8425_v26 = vld [vmem:[%s9886_s11 + $0x78] sm:$0xe]  ;;  %v9727_v49 = vld [vmem:[%s12224_s1 + $0x1c0] sm:$0xff]  }
  0xe5   : > { %v8482_v41 = vcombine.low %v3492_v11, %v3495_v37  ;;  %v3502_v45 = vsel %vm9957_vm4, %v3500_v42, %v3501_v36  ;;  %v8453_v4 = vrot.slane %v8419_v54, 9  ;;  %v3515_v12 = vrot.slane %v8421_v58, 5  ;;  %v8426_v28 = vld [vmem:[%s9886_s11 + $0x7c] sm:$0xf]  ;;  %v8427_v29 = vld [vmem:[%s9886_s11 + $0x80] sm:$0x1] }
  0xe6   : > { %v8483_v57 = vcombine.low %v3499_v34, %v3502_v45  ;;  %v3514_v10 = vrot.slane %v3512_v63, 4  ;;  %v8454_v23 = vrot.slane %v8422_v14, 9  ;;  %v3519_v24 = vrot.slane %v8423_v15, 5  ;;  %v9720_v30 = vld [vmem:[%s12224_s1 + $0x210] sm:$0xff]   ;;  %v9724_v55 = vld [vmem:[%s12224_s1 + $0x208] sm:$0xff]   ;;  %v9728_v15 = vld [vmem:[%s12224_s1 + $0x200] sm:$0xff]  }
  0xe7   : > { %9457 = vmatpush3.bf16.msra.mxu1 %v9703_v62  ;;  %v3507_v62 = vrot.slane %v3505_v52, 4  ;;  %v3522_v2 = vrot.slane %v8424_v22, 5  ;;  %v3526_v35 = vrot.slane %v8426_v28, 5  ;;  %v3529_v44 = vrot.slane %v8427_v29, 5  ;;  %v8429_v52 = vld [vmem:[%s9886_s11 + $0x88] sm:$0xf] }
  0xe8   : > { %9423 = vmatmul.mubr.bf16.vlgmr.msra.gmra.mxu0 %v9698_v9  ;;  %9458 = vmatprep.subr.bf16.mxu1 %v9707_v20  ;;  %v3516_v11 = vsel %vm9957_vm4, %v3514_v10, %v3515_v12  ;;  %v3521_v17 = vrot.slane %v3519_v24, 4  ;;  %v3533_v58 = vrot.slane %v8429_v52, 5  ;;  %v8436_v28 = vld [vmem:[%s9886_s11 + $0xa4] sm:$0x1] }
  0xe9   : > { %9503 = vmatpush3.bf16.msra.mxu0 %v10452_v19  ;;  %9426 = vmatprep.mubr.bf16.mxu0 %v9701_v13  ;;  %v9705_v19 = vld [vmem:[%s9886_s11 + $0x48] sm:$0xff]   ;;  %v3509_v9 = vsel %vm9957_vm4, %v3507_v62, %v3508_v53  ;;  %v3528_v45 = vrot.slane %v3526_v35, 4 }
  0xea   : > { %9504 = vmatprep.subr.bf16.mxu0 %v9704_v18  ;;  %9379 = vmatmul.mubr.bf16.gmra.mxu1 %v8481_v1  ;;  %v8484_v13 = vcombine.low %v3506_v61, %v3509_v9  ;;  %v3513_v1 = vsel %vm9957_vm4, %v8453_v4, %v3512_v63  ;;  %v8430_v53 = vld [vmem:[%s9886_s11 + $0x8c] sm:$0x1]  ;;  %v3535_v9 = vrot.slane %v3533_v58, 4 }
  0xeb   : > { %9382 = vmatprep.mubr.bf16.mxu1 %v8482_v41  ;;  %9459 = vmatpush3.bf16.msra.mxu1 %v9707_v20  ;;  %v3523_v41 = vsel %vm9957_vm4, %v3521_v17, %v3522_v2  ;;  %v8485_v42 = vcombine.low %v3513_v1, %v3516_v11  ;;  %v3536_v61 = vrot.slane %v8430_v53, 5  ;;  %v9710_v4 = vld [vmem:[%s9886_s11 + $0x6c] sm:$0xff]   ;;  %v3530_v14 = vsel %vm9957_vm4, %v3528_v45, %v3529_v44  ;;  %v8435_v1 = vld [vmem:[%s9886_s11 + $0xa0] sm:$0xf] }
  0xec   : > { %9460 = vmatprep.subr.bf16.mxu1 %v9711_v31  ;;  %v3547_v29 = vrot.slane %v8435_v1, 5  ;;  %v8438_v44 = vld [vmem:[%s9886_s11 + $0xac] sm:$0xf] }
  0xed   : > { %9505 = vmatpush3.bf16.msra.mxu0 %v9704_v18  ;;  %v3537_v22 = vsel %vm9957_vm4, %v3535_v9, %v3536_v61  ;;  %v3554_v53 = vrot.slane %v8438_v44, 5  ;;  %v9717_v9 = vld [vmem:[%s9886_s11 + $0x90] sm:$0xff]  }
  0xee   : > { %9506 = vmatprep.subr.bf16.mxu0 %v9708_v43 }
  0xef   : > { %9461 = vmatpush3.bf16.msra.mxu1 %v9711_v31  ;;  %v3520_v31 = vsel %vm9957_vm4, %v8454_v23, %v3519_v24 }
  0xf0   : > { %9427 = vmatmul.mubr.bf16.gmra.mxu0 %v9702_v40  ;;  %9462 = vmatprep.subr.bf16.mxu1 %v9715_v3  ;;  %v9723_v40 = vld [vmem:[%s12224_s1 + $0x1c8] sm:$0xff]   ;;  %v8486_v34 = vcombine.low %v3520_v31, %v3523_v41  ;;  %v3550_v41 = vrot.slane %v8436_v28, 5  ;;  %v8443_v28 = vld [vmem:[%s9886_s11 + $0xc0] sm:$0xe] }
  0xf1   : > { %9430 = vmatprep.mubr.bf16.mxu0 %v9705_v19  ;;  %9507 = vmatpush3.bf16.msra.mxu0 %v9708_v43  ;;  %v8455_v43 = vrot.slane %v8425_v26, 9  ;;  %v8428_v19 = vld [vmem:[%s9886_s11 + $0x84] sm:$0xe]  ;;  %v8434_v26 = vld [vmem:[%s9886_s11 + $0x9c] sm:$0xe] }
  0xf2   : > { %9508 = vmatprep.subr.bf16.mxu0 %v9712_v0  ;;  %9383 = vmatmul.mubr.bf16.gmra.mxu1 %v8483_v57  ;;  %v8456_v54 = vrot.slane %v8428_v19, 9  ;;  %v8433_v57 = vld [vmem:[%s9886_s11 + $0x98] sm:$0x1]  ;;  %v8439_v19 = vld [vmem:[%s9886_s11 + $0xb0] sm:$0x1] }
  0xf3   : > { %9386 = vmatprep.mubr.bf16.mxu1 %v8484_v13  ;;  %9463 = vmatpush3.bf16.msra.mxu1 %v9715_v3  ;;  %v8432_v3 = vld [vmem:[%s9886_s11 + $0x94] sm:$0xf]  ;;  %v3527_v13 = vsel %vm9957_vm4, %v8455_v43, %v3526_v35  ;;  %v3543_v24 = vrot.slane %v8433_v57, 5  ;;  %v3549_v43 = vrot.slane %v3547_v29, 4 }
  0xf4   : > { %v10563_v32 = vpop.f32.mrf.mxu0  ;;  %v10565_v33 = vpop.f32.mrf.mxu1  ;;  %9464 = vmatprep.subr.bf16.mxu1 %v9719_v8  ;;  %v3540_v10 = vrot.slane %v8432_v3, 5  ;;  %v8487_v11 = vcombine.low %v3527_v13, %v3530_v14  ;;  %v8442_v13 = vld [vmem:[%s9886_s11 + $0xbc] sm:$0x1] }
  0xf5   : > { %9509 = vmatpush3.bf16.msra.mxu0 %v9712_v0  ;;  %v8431_v0 = vld [vmem:[%s9886_s11 + $0x90] sm:$0xe]  ;;  %v3551_v57 = vsel %vm9957_vm4, %v3549_v43, %v3550_v41  ;;  %v8461_v43 = vrot.slane %v8443_v28, 9 }
  0xf6   : > { %v10570_v38 = vpop.f32.mrf.mxu0  ;;  %v10572_v39 = vpop.f32.mrf.mxu1  ;;  %9510 = vmatprep.subr.bf16.mxu0 %v9716_v7  ;;  %v8457_v23 = vrot.slane %v8431_v0, 9  ;;  %v3542_v17 = vrot.slane %v3540_v10, 4 }
  0xf7   : > { %9465 = vmatpush3.bf16.msra.mxu1 %v9719_v8  ;;  %v9713_v8 = vld [vmem:[%s9886_s11 + $0x78] sm:$0xff]  }
  0xf8   : > { %v10582_v50 = vpop.f32.mrf.mxu0  ;;  %v10584_v51 = vpop.f32.mrf.mxu1  ;;  %9431 = vmatmul.mubr.bf16.gmra.mxu0 %v9706_v21  ;;  %9466 = vmatprep.subr.bf16.mxu1 %v9723_v40  ;;  %v3534_v21 = vsel %vm9957_vm4, %v8456_v54, %v3533_v58  ;;  %v3557_v54 = vrot.slane %v8439_v19, 5  ;;  %v3544_v0 = vsel %vm9957_vm4, %v3542_v17, %v3543_v24  ;;  %v3564_v24 = vrot.slane %v8442_v13, 5 }
  0xf9   : > { %9434 = vmatprep.mubr.bf16.mxu0 %v9709_v25  ;;  %9511 = vmatpush3.bf16.msra.mxu0 %v9716_v7 }
  0xfa   : > { %v10593_v59 = vpop.f32.mrf.mxu0  ;;  %v10595_v60 = vpop.f32.mrf.mxu1  ;;  %9512 = vmatprep.subr.bf16.mxu0 %v9720_v30  ;;  %9387 = vmatmul.mubr.bf16.gmra.mxu1 %v8485_v42  ;;  %v8437_v42 = vld [vmem:[%s9886_s11 + $0xa8] sm:$0xe] }
  0xfb   : > { %9390 = vmatprep.mubr.bf16.mxu1 %v8486_v34  ;;  %9467 = vmatpush3.bf16.msra.mxu1 %v9723_v40  ;;  %v8458_v40 = vrot.slane %v8434_v26, 9  ;;  %v8459_v34 = vrot.slane %v8437_v42, 9 }
  0xfc   : > { %v10605_v5 = vpop.f32.mrf.mxu0  ;;  %v10607_v6 = vpop.f32.mrf.mxu1  ;;  %9468 = vmatprep.subr.bf16.mxu1 %v9727_v49 }
  0xfd   : > { %9513 = vmatpush3.bf16.msra.mxu0 %v9720_v30  ;;  %v8488_v30 = vcombine.low %v3534_v21, %v3537_v22  ;;  %v3548_v3 = vsel %vm9957_vm4, %v8458_v40, %v3547_v29  ;;  %v8444_v29 = vld [vmem:[%s9886_s11 + $0xc4] sm:$0xf] }
  0xfe   : > { %v10619_v16 = vpop.f32.mrf.mxu0  ;;  %v10621_v18 = vpop.f32.mrf.mxu1  ;;  %9514 = vmatprep.subr.bf16.mxu0 %v9724_v55  ;;  %v8490_v1 = vcombine.low %v3548_v3, %v3551_v57  ;;  %v3568_v44 = vrot.slane %v8444_v29, 5 }
  0xff   : > { %9469 = vmatpush3.bf16.msra.mxu1 %v9727_v49  ;;  %v3541_v49 = vsel %vm9957_vm4, %v8457_v23, %v3540_v10  ;;  %v8441_v10 = vld [vmem:[%s9886_s11 + $0xb8] sm:$0xf] }
 0x100   : > { %v10627_v27 = vpop.f32.mrf.mxu0  ;;  %v10629_v20 = vpop.f32.mrf.mxu1  ;;  %9435 = vmatmul.mubr.bf16.gmra.mxu0 %v9710_v4  ;;  %v3556_v4 = vrot.slane %v3554_v53, 4  ;;  %v3561_v23 = vrot.slane %v8441_v10, 5  ;;  %v8489_v26 = vcombine.low %v3541_v49, %v3544_v0  ;;  %v9718_v49 = vld [vmem:[%s9886_s11 + $0x9c] sm:$0xff]   ;;  %v10750_v0 = vsel %vm9957_vm4, %v8461_v43, %v3568_v44 }
 0x101   : > { %12234 = vst [vmem:[#allocation6_spill] sm:$0xff] %v10629_v20  ;;  %9438 = vmatprep.mubr.bf16.mxu0 %v9713_v8  ;;  %9515 = vmatpush3.bf16.msra.mxu0 %v9724_v55  ;;  %v9714_v55 = vld [vmem:[%s9886_s11 + $0x84] sm:$0xff]   ;;  %v8440_v8 = vld [vmem:[%s9886_s11 + $0xb4] sm:$0xe]  ;;  %v3570_v3 = vrot.slane %v3568_v44, 4 }
 0x102   : > { %v10642_v36 = vpop.f32.mrf.mxu0  ;;  %v10644_v37 = vpop.f32.mrf.mxu1  ;;  %9516 = vmatprep.subr.bf16.mxu0 %v9728_v15  ;;  %9391 = vmatmul.mubr.bf16.gmra.mxu1 %v8487_v11  ;;  %v8460_v14 = vrot.slane %v8440_v8, 9  ;;  %v10729_v11 = vsel %vm9957_vm4, %v8459_v34, %v3554_v53  ;;  %v10733_v17 = vsel %vm9957_vm4, %v3556_v4, %v3557_v54  ;;  %v3563_v42 = vrot.slane %v3561_v23, 4  ;;  %v8574_v8 = vld [vmem:[%s9886_s11 + $0x18] sm:$0xf] }
 0x103   : > { %12235 = vst [vmem:[#allocation7_spill] sm:$0xff] %v10644_v37  ;;  %9394 = vmatprep.mubr.bf16.mxu1 %v8488_v30  ;;  %v8584_v37 = vld [vmem:[%s9886_s11 + $0x40] sm:$0xf] }
 0x104   : > { %v10652_v47 = vpop.f32.mrf.mxu0  ;;  %v10654_v48 = vpop.f32.mrf.mxu1  ;;  %v10740_v41 = vsel %vm9957_vm4, %v8460_v14, %v3561_v23  ;;  %v9721_v23 = vld [vmem:[%s9886_s11 + $0xa8] sm:$0xff]  }
 0x105   : > { %12236 = vst [vmem:[#allocation8_spill] sm:$0xff] %v10654_v48  ;;  %9517 = vmatpush3.bf16.msra.mxu0 %v9728_v15  ;;  %v8445_v15 = vld [vmem:[%s9886_s11 + $0xc8] sm:$0x1] }
 0x106   : > { %v10664_v62 = vpop.f32.mrf.mxu0  ;;  %v10666_v63 = vpop.f32.mrf.mxu1  ;;  %v3571_v19 = vrot.slane %v8445_v15, 5 }
 0x107   : > { %12237 = vst [vmem:[#allocation9_spill] sm:$0xff] %v10666_v63 }
 0x108   : > { %v10673_v12 = vpop.f32.mrf.mxu0  ;;  %v10675_v7 = vpop.f32.mrf.mxu1  ;;  %9439 = vmatmul.mubr.bf16.gmra.mxu0 %v9714_v55  ;;  %v10746_v55 = vsel %vm9957_vm4, %v3563_v42, %v3564_v24  ;;  %v8576_v24 = vld [vmem:[%s9886_s11 + $0x20] sm:$0x1] }
 0x109   : > { %12238 = vst [vmem:[#allocation10_spill] sm:$0xff] %v10675_v7  ;;  %9442 = vmatprep.mubr.bf16.mxu0 %v9717_v9  ;;  %v8492_v4 = vcombine.low %v10740_v41, %v10746_v55  ;;  %v8575_v9 = vld [vmem:[%s9886_s11 + $0x1c] sm:$0xf]  ;;  %v4478_v15 = vshll.u32 %v8576_v24, 16  ;;  %v8577_v24 = vld [vmem:[%s9886_s11 + $0x24] sm:$0xf] }
 0x10a   : > { %v10688_v25 = vpop.f32.mrf.mxu0  ;;  %v10690_v2 = vpop.f32.mrf.mxu1  ;;  %9395 = vmatmul.mubr.bf16.gmra.mxu1 %v8489_v26  ;;  %v4459_v26 = vshrl.u32 %v8574_v8, 16  ;;  %v4472_v29 = vshrl.u32 %v8575_v9, 16 }
 0x10b   : > { %12239 = vst [vmem:[#allocation11_spill] sm:$0xff] %v10690_v2  ;;  %9398 = vmatprep.mubr.bf16.mxu1 %v8490_v1  ;;  %v8580_v2 = vld [vmem:[%s9886_s11 + $0x30] sm:$0xf] }
 0x10c   : > { %v10695_v31 = vpop.f32.mrf.mxu0  ;;  %v10697_v35 = vpop.f32.mrf.mxu1  ;;  %v4461_v43 = vrot.slane %v4459_v26, 4  ;;  %v4474_v55 = vrot.slane %v4472_v29, 4  ;;  %v4483_v26 = vshrl.u32 %v8577_v24, 16 }
 0x10d   : > { %12240 = vst [vmem:[#allocation12_spill] sm:$0xff] %v10697_v35 }
 0x10e   : > { %v10702_v45 = vpop.f32.mrf.mxu0  ;;  %v10704_v52 = vpop.f32.mrf.mxu1 }
 0x10f   : > { %12241 = vst [vmem:[#allocation13_spill] sm:$0xff] %v10704_v52 }
 0x110   : > { %v10708_v58 = vpop.f32.mrf.mxu0  ;;  %v10710_v61 = vpop.f32.mrf.mxu1  ;;  %9443 = vmatmul.mubr.bf16.gmra.mxu0 %v9718_v49 }
 0x111   : > { %12242 = vst [vmem:[#allocation14_spill] sm:$0xff] %v10710_v61  ;;  %9446 = vmatprep.mubr.bf16.mxu0 %v9721_v23 }
 0x112   : > { %v10723_v21 = vpop.f32.mrf.mxu0  ;;  %v10725_v22 = vpop.f32.mrf.mxu1 }
 0x113   : > { %12243 = vst [vmem:[#allocation15_spill] sm:$0xff] %v10725_v22  ;;  %v4485_v22 = vrot.slane %v4483_v26, 4 }
 0x114   : > { %v9184_v30 = vpop.f32.mrf.mxu1  ;;  %v9232_v40 = vpop.f32.mrf.mxu0 }
 0x115   : > { %v1437_v34 = vadd.f32 %v9184_v30, %v10563_v32  ;;  %v8491_v32 = vcombine.low %v10729_v11, %v10733_v17  ;;  %v4462_v11 = vshll.u32 %v8574_v8, 16  ;;  %v4468_v17 = vshll.u32 %v8575_v9, 16  ;;  %v8662_v30 = vld [vmem:[%s9886_s11 + $0x18] sm:$0xe] }
 0x116   : > { %v1308_v53 = vpop.f32.mrf.mxu1  ;;  %v1905_v54 = vpop.f32.mrf.mxu0 }
 0x117   : > { %v1435_v57 = vadd.f32 %v1308_v53, %v10570_v38  ;;  %v10759_v10 = vadd.f32 %v9232_v40, %v1437_v34  ;;  %v10766_v38 = vsel %vm9957_vm4, %v3570_v3, %v3571_v19  ;;  %v8663_v40 = vld [vmem:[%s9886_s11 + $0x1c] sm:$0xf]  ;;  %v4464_v44 = vrot.slane %v4462_v11, 5  ;;  %v8664_v34 = vld [vmem:[%s9886_s11 + $0x20] sm:$0x1]  ;;  %9399 = vmatmul.mubr.bf16.gmra.mxu1 %v8491_v32 }
 0x118   : > { %v9185_v13 = vpop.f32.mrf.mxu1  ;;  %v10761_v14 = vpop.f32.mrf.mxu0  ;;  %v4470_v19 = vrot.slane %v4468_v17, 5  ;;  %v8710_v53 = vrot.slane %v8662_v30, 9  ;;  %v4480_v3 = vrot.slane %v4478_v15, 5  ;;  %v5326_v8 = vrot.slane %v8663_v40, 5  ;;  %9402 = vmatprep.mubr.bf16.mxu1 %v8492_v4 }
 0x119   : > { %12244 = vst [vmem:[#allocation16_spill] sm:$0xff] %v10759_v10  ;;  %v10773_v41 = vadd.f32 %v1905_v54, %v1435_v57  ;;  %v5329_v9 = vrot.slane %v8664_v34, 5  ;;  %v4465_v57 = vor.u32 %v4464_v44, %v4461_v43  ;;  %v8579_v10 = vld [vmem:[%s9886_s11 + $0x2c] sm:$0x1]  ;;  %v4486_v11 = vshll.u32 %v8577_v24, 16 }
 0x11a   : > { %v10775_v1 = vpop.f32.mrf.mxu1  ;;  %v10777_v42 = vpop.f32.mrf.mxu0  ;;  %v1438_v17 = vadd.f32 %v9185_v13, %v10582_v50  ;;  %v4475_v29 = vor.u32 %v4474_v55, %v4470_v19  ;;  %v10790_v15 = vsel %vm9957_vm4, %v8710_v53, %v5326_v8  ;;  %v5328_v30 = vrot.slane %v5326_v8, 4  ;;  %v8665_v34 = vld [vmem:[%s9886_s11 + $0x24] sm:$0xe]  ;;  %v8666_v50 = vld [vmem:[%s9886_s11 + $0x28] sm:$0xf] }
 0x11b   : > { %12245 = vst [vmem:[#allocation17_spill] sm:$0xff] %v10773_v41  ;;  %v8578_v41 = vld [vmem:[%s9886_s11 + $0x28] sm:$0xf]  ;;  %v4466_v44 = vrot.slane %v4465_v57, 4  ;;  %v4488_v24 = vrot.slane %v4486_v11, 5  ;;  %v4502_v55 = vshll.u32 %v8579_v10, 16 }
 0x11c   : > { %v10781_v28 = vpop.f32.mrf.mxu1  ;;  %v10783_v54 = vpop.f32.mrf.mxu0  ;;  %v4492_v40 = vshll.u32 %v8578_v41, 16  ;;  %v4496_v61 = vshrl.u32 %v8578_v41, 16  ;;  %v4476_v13 = vrot.slane %v4475_v29, 4  ;;  %v10800_v23 = vsel %vm9957_vm4, %v5328_v30, %v5329_v9  ;;  %v8667_v8 = vld [vmem:[%s9886_s11 + $0x2c] sm:$0x1]  ;;  %v9722_v57 = vld [vmem:[%s9886_s11 + $0xb4] sm:$0xff]  }
 0x11d   : > { %v4471_v41 = vsel %vm9976_vm5, %v4466_v44, %v4470_v19  ;;  %v4489_v26 = vor.u32 %v4488_v24, %v4485_v22  ;;  %v9725_v11 = vld [vmem:[%s9886_s11 + $0xc0] sm:$0xff]   ;;  %v4504_v29 = vrot.slane %v4502_v55, 5  ;;  %v8711_v30 = vrot.slane %v8665_v34, 9  ;;  %v8581_v22 = vld [vmem:[%s9886_s11 + $0x34] sm:$0xf]  ;;  %9447 = vmatmul.mubr.bf16.gmra.mxu0 %v9722_v57 }
 0x11e   : > { %v10793_v49 = vpop.f32.mrf.mxu1  ;;  %v10795_v43 = vpop.f32.mrf.mxu0  ;;  %v4494_v53 = vrot.slane %v4492_v40, 5  ;;  %v4498_v9 = vrot.slane %v4496_v61, 4  ;;  %v4481_v10 = vsel %vm9976_vm5, %v4476_v13, %v4480_v3  ;;  %v5333_v40 = vrot.slane %v8666_v50, 5  ;;  %v8582_v50 = vld [vmem:[%s9886_s11 + $0x38] sm:$0x1]  ;;  %9450 = vmatprep.mubr.bf16.mxu0 %v9725_v11 }
 0x11f   : > { %v8638_v19 = vcombine.low %v4471_v41, %v4481_v10  ;;  %v4490_v44 = vrot.slane %v4489_v26, 4  ;;  %v5336_v32 = vrot.slane %v8667_v8, 5  ;;  %v10826_v24 = vadd.f32 %v10761_v14, %v1438_v17  ;;  %v8668_v14 = vld [vmem:[%s9886_s11 + $0x30] sm:$0xe]  ;;  %v8670_v57 = vld [vmem:[%s9886_s11 + $0x38] sm:$0x1] }
 0x120   : > { %v10803_v52 = vpop.f32.mrf.mxu1  ;;  %v10805_v35 = vpop.f32.mrf.mxu0  ;;  %v4499_v63 = vor.u32 %v4498_v9, %v4494_v53  ;;  %v10823_v61 = vsel %vm9957_vm4, %v8711_v30, %v5333_v40  ;;  %v5335_v3 = vrot.slane %v5333_v40, 4  ;;  %v1436_v34 = vadd.f32 %v10775_v1, %v10593_v59  ;;  %v8669_v30 = vld [vmem:[%s9886_s11 + $0x34] sm:$0xf] }
 0x121   : > { %12246 = vst [vmem:[#allocation18_spill] sm:$0xff] %v10826_v24  ;;  %v4495_v8 = vsel %vm9976_vm5, %v4490_v44, %v4494_v53  ;;  %v4507_v26 = vshrl.u32 %v8580_v2, 16  ;;  %v4510_v9 = vshll.u32 %v8580_v2, 16  ;;  %v4516_v1 = vshll.u32 %v8581_v22, 16 }
 0x122   : > { %v10816_v7 = vpop.f32.mrf.mxu1  ;;  %v10818_v4 = vpop.f32.mrf.mxu0  ;;  %v4500_v41 = vrot.slane %v4499_v63, 4  ;;  %v10840_v17 = vsel %vm9957_vm4, %v5335_v3, %v5336_v32  ;;  %v10843_v59 = vadd.f32 %v10777_v42, %v1436_v34  ;;  %v4520_v10 = vshrl.u32 %v8581_v22, 16  ;;  %v8583_v42 = vld [vmem:[%s9886_s11 + $0x3c] sm:$0xf] }
 0x123   : > { %v4509_v32 = vrot.slane %v4507_v26, 4  ;;  %v4512_v11 = vrot.slane %v4510_v9, 5  ;;  %v12248_v44 = vcombine.low %v10750_v0, %v10766_v38  ;;  %v4518_v3 = vrot.slane %v4516_v1, 5 }
 0x124   : > { %v10831_v13 = vpop.f32.mrf.mxu1  ;;  %v10833_v55 = vpop.f32.mrf.mxu0  ;;  %12247 = vst [vmem:[#allocation19_spill] sm:$0xff] %v10843_v59  ;;  %v4505_v2 = vsel %vm9976_vm5, %v4500_v41, %v4504_v29  ;;  %v4522_v34 = vrot.slane %v4520_v10, 4  ;;  %v4526_v59 = vshll.u32 %v8582_v50, 16  ;;  %v9726_v29 = vld [vmem:[%s9886_s11 + $0xcc] sm:$0xff]   ;;  %v8712_v26 = vrot.slane %v8668_v14, 9 }
 0x125   : > { %9403 = vmatmul.mubr.bf16.gmra.mxu1 %v12248_v44  ;;  %v8639_v22 = vcombine.low %v4495_v8, %v4505_v2  ;;  %v4513_v41 = vor.u32 %v4512_v11, %v4509_v32  ;;  %v5340_v53 = vrot.slane %v8669_v30, 5  ;;  %v5343_v9 = vrot.slane %v8670_v57, 5  ;;  %v8671_v32 = vld [vmem:[%s9886_s11 + $0x3c] sm:$0xe]  ;;  %9451 = vmatmul.mubr.bf16.gmra.mxu0 %v9726_v29  ;;  %v8672_v44 = vld [vmem:[%s9886_s11 + $0x40] sm:$0xf] }
 0x126   : > { %v10847_v40 = vpop.f32.mrf.mxu1  ;;  %v10849_v63 = vpop.f32.mrf.mxu0  ;;  %9470 = vmatprep.mubr.bf16.mxu1 %v8638_v19  ;;  %v4523_v20 = vor.u32 %v4522_v34, %v4518_v3  ;;  %v4528_v0 = vrot.slane %v4526_v59, 5  ;;  %v1441_v38 = vadd.f32 %v10781_v28, %v10605_v5  ;;  %v4531_v8 = vshrl.u32 %v8583_v42, 16  ;;  %v8585_v19 = vld [vmem:[%s9886_s11 + $0x44] sm:$0x1] }
 0x127   : > { %v4514_v50 = vrot.slane %v4513_v41, 4  ;;  %v10869_v1 = vsel %vm9957_vm4, %v8712_v26, %v5340_v53  ;;  %v5342_v10 = vrot.slane %v5340_v53, 4  ;;  %v4534_v14 = vshll.u32 %v8583_v42, 16 }
 0x128   : > { %v10859_v24 = vpop.f32.mrf.mxu1  ;;  %v10861_v48 = vpop.f32.mrf.mxu0  ;;  %v4524_v30 = vrot.slane %v4523_v20, 4  ;;  %v10873_v57 = vadd.f32 %v10783_v54, %v1441_v38  ;;  %v4533_v2 = vrot.slane %v4531_v8, 4  ;;  %v4540_v59 = vshll.u32 %v8584_v37, 16  ;;  %v8673_v54 = vld [vmem:[%s9886_s11 + $0x44] sm:$0x1] }
 0x129   : > { %v4519_v28 = vsel %vm9976_vm5, %v4514_v50, %v4518_v3  ;;  %v5344_v53 = vsel %vm9957_vm4, %v5342_v10, %v5343_v9  ;;  %v4536_v42 = vrot.slane %v4534_v14, 5  ;;  %v4544_v20 = vshrl.u32 %v8584_v37, 16  ;;  %v8586_v10 = vld [vmem:[%s9886_s11 + $0x48] sm:$0xf] }
 0x12a   : > { %12249 = vst [vmem:[#allocation20_spill] sm:$0xff] %v10873_v57  ;;  %v10876_v11 = vpop.f32.mrf.mxu1  ;;  %v10878_v5 = vpop.f32.mrf.mxu0  ;;  %v12250_v34 = vcombine.low %v10790_v15, %v10800_v23  ;;  %v4529_v41 = vsel %vm9976_vm5, %v4524_v30, %v4528_v0  ;;  %v8744_v29 = vcombine.low %v10869_v1, %v5344_v53  ;;  %v4542_v26 = vrot.slane %v4540_v59, 5 }
 0x12b   : > { %v4550_v38 = vshll.u32 %v8585_v19, 16  ;;  %v8640_v8 = vcombine.low %v4519_v28, %v4529_v41  ;;  %v4537_v3 = vor.u32 %v4536_v42, %v4533_v2  ;;  %v4546_v50 = vrot.slane %v4544_v20, 4  ;;  %v8587_v2 = vld [vmem:[%s9886_s11 + $0x4c] sm:$0xf]  ;;  %v8674_v20 = vld [vmem:[%s9886_s11 + $0x48] sm:$0xe] }
 0x12c   : > { %9518 = vmatprep.mubr.bf16.mxu0 %v12250_v34  ;;  %v8713_v9 = vrot.slane %v8671_v32, 9  ;;  %v5347_v14 = vrot.slane %v8672_v44, 5  ;;  %v5350_v57 = vrot.slane %v8673_v54, 5  ;;  %v1439_v15 = vadd.f32 %v10793_v49, %v10619_v16  ;;  %v10895_v23 = vpop.f32.mrf.mxu1  ;;  %v10897_v0 = vpop.f32.mrf.mxu0  ;;  %v8588_v32 = vld [vmem:[%s9886_s11 + $0x50] sm:$0x1] }
 0x12d   : > { %9471 = vmatmul.mubr.bf16.vlgmr.msra.gmra.mxu1 %v8639_v22  ;;  %v4552_v37 = vrot.slane %v4550_v38, 5  ;;  %v4538_v1 = vrot.slane %v4537_v3, 4  ;;  %v4547_v19 = vor.u32 %v4546_v50, %v4542_v26  ;;  %v1442_v30 = vadd.f32 %v10803_v52, %v10627_v27  ;;  %v8676_v38 = vld [vmem:[%s9886_s11 + $0x50] sm:$0x1] }
 0x12e   : > { %9474 = vmatprep.mubr.bf16.mxu1 %v8640_v8  ;;  %v1440_v22 = vadd.f32 %v10816_v7, %v10642_v36  ;;  %v10906_v59 = vsel %vm9957_vm4, %v8713_v9, %v5347_v14  ;;  %v5349_v16 = vrot.slane %v5347_v14, 4  ;;  %v10909_v49 = vadd.f32 %v10795_v43, %v1439_v15  ;;  %v10912_v53 = vpop.f32.mrf.mxu1  ;;  %v10914_v42 = vpop.f32.mrf.mxu0  ;;  %v8675_v43 = vld [vmem:[%s9886_s11 + $0x4c] sm:$0xf]  ;;  %v8589_v9 = vld [vmem:[%s9886_s11 + $0x54] sm:$0xf] }
 0x12f   : > { %v4555_v28 = vshrl.u32 %v8586_v10, 16  ;;  %v4543_v27 = vsel %vm9976_vm5, %v4538_v1, %v4542_v26  ;;  %v4548_v36 = vrot.slane %v4547_v19, 4  ;;  %v10919_v7 = vadd.f32 %v10805_v35, %v1442_v30  ;;  %v8590_v19 = vld [vmem:[%s9886_s11 + $0x58] sm:$0xf] }
 0x130   : > { %v10922_v52 = vadd.f32 %v10818_v4, %v1440_v22  ;;  %v5351_v44 = vsel %vm9957_vm4, %v5349_v16, %v5350_v57  ;;  %v4558_v34 = vshll.u32 %v8586_v10, 16  ;;  %v4564_v41 = vshll.u32 %v8587_v2, 16  ;;  %v10929_v8 = vpop.f32.mrf.mxu1  ;;  %v10931_v26 = vpop.f32.mrf.mxu0 }
 0x131   : > { %v4557_v54 = vrot.slane %v4555_v28, 4  ;;  %v12251_v35 = vcombine.low %v10823_v61, %v10840_v17  ;;  %v4553_v4 = vsel %vm9976_vm5, %v4548_v36, %v4552_v37  ;;  %v8745_v3 = vcombine.low %v10906_v59, %v5351_v44  ;;  %v8677_v44 = vld [vmem:[%s9886_s11 + $0x54] sm:$0xe] }
 0x132   : > { %v4568_v50 = vshrl.u32 %v8587_v2, 16  ;;  %v4574_v57 = vshll.u32 %v8588_v32, 16  ;;  %v8641_v10 = vcombine.low %v4543_v27, %v4553_v4  ;;  %v4560_v14 = vrot.slane %v4558_v34, 5  ;;  %v10945_v32 = vpop.f32.mrf.mxu0 }
 0x133   : > { %9519 = vmatmul.mubr.bf16.vlgmr.msra.gmra.mxu0 %v12251_v35  ;;  %v4566_v15 = vrot.slane %v4564_v41, 5  ;;  %v8714_v1 = vrot.slane %v8674_v20, 9  ;;  %v5354_v61 = vrot.slane %v8675_v43, 5  ;;  %v5357_v17 = vrot.slane %v8676_v38, 5  ;;  %v8591_v20 = vld [vmem:[%s9886_s11 + $0x5c] sm:$0x1] }
 0x134   : > { %9522 = vmatprep.mubr.bf16.mxu0 %v8744_v29  ;;  %v4570_v30 = vrot.slane %v4568_v50, 4  ;;  %v4576_v22 = vrot.slane %v4574_v57, 5  ;;  %v4561_v16 = vor.u32 %v4560_v14, %v4557_v54  ;;  %v1445_v37 = vadd.f32 %v10831_v13, %v10652_v47  ;;  %v10943_v29 = vpop.f32.mrf.mxu1  ;;  %v8678_v41 = vld [vmem:[%s9886_s11 + $0x58] sm:$0xf]  ;;  %v8679_v57 = vld [vmem:[%s9886_s11 + $0x5c] sm:$0x1] }
 0x135   : > { %9475 = vmatmul.mubr.bf16.gmra.mxu1 %v8641_v10  ;;  %v4579_v2 = vshrl.u32 %v8589_v9, 16  ;;  %v4582_v59 = vshll.u32 %v8589_v9, 16  ;;  %v5355_v27 = vsel %vm9957_vm4, %v8714_v1, %v5354_v61  ;;  %v5356_v36 = vrot.slane %v5354_v61, 4 }
 0x136   : > { %v4571_v28 = vor.u32 %v4570_v30, %v4566_v15  ;;  %v4588_v43 = vshll.u32 %v8590_v19, 16  ;;  %v4562_v54 = vrot.slane %v4561_v16, 4  ;;  %v10952_v34 = vadd.f32 %v10833_v55, %v1445_v37  ;;  %v10962_v55 = vpop.f32.mrf.mxu0 }
 0x137   : > { %v4581_v47 = vrot.slane %v4579_v2, 4  ;;  %v4584_v13 = vrot.slane %v4582_v59, 5  ;;  %v5358_v35 = vsel %vm9957_vm4, %v5356_v36, %v5357_v17  ;;  %v4592_v50 = vshrl.u32 %v8590_v19, 16  ;;  %v8592_v2 = vld [vmem:[%s9886_s11 + $0x60] sm:$0xf] }
 0x138   : > { %v4572_v38 = vrot.slane %v4571_v28, 4  ;;  %v4590_v4 = vrot.slane %v4588_v43, 5  ;;  %v4567_v9 = vsel %vm9976_vm5, %v4562_v54, %v4566_v15  ;;  %v8746_v10 = vcombine.low %v5355_v27, %v5358_v35  ;;  %v10960_v30 = vpop.f32.mrf.mxu1  ;;  %v10969_v36 = vpop.f32.mrf.mxu0 }
 0x139   : > { %v4585_v14 = vor.u32 %v4584_v13, %v4581_v47  ;;  %v4598_v1 = vshll.u32 %v8591_v20, 16  ;;  %v4594_v16 = vrot.slane %v4592_v50, 4  ;;  %v8715_v37 = vrot.slane %v8677_v44, 9  ;;  %v8593_v13 = vld [vmem:[%s9886_s11 + $0x64] sm:$0xf] }
 0x13a   : > { %v4577_v61 = vsel %vm9976_vm5, %v4572_v38, %v4576_v22  ;;  %v5361_v17 = vrot.slane %v8678_v41, 5  ;;  %v5364_v28 = vrot.slane %v8679_v57, 5  ;;  %v10967_v27 = vpop.f32.mrf.mxu1  ;;  %v1443_v43 = vadd.f32 %v10847_v40, %v10664_v62  ;;  %v8594_v41 = vld [vmem:[%s9886_s11 + $0x68] sm:$0x1]  ;;  %v10985_v50 = vpop.f32.mrf.mxu0 }
 0x13b   : > { %9523 = vmatmul.mubr.bf16.gmra.mxu0 %v8745_v3  ;;  %v8642_v19 = vcombine.low %v4567_v9, %v4577_v61  ;;  %v4586_v15 = vrot.slane %v4585_v14, 4  ;;  %v4600_v59 = vrot.slane %v4598_v1, 5  ;;  %v4595_v20 = vor.u32 %v4594_v16, %v4590_v4  ;;  %v8682_v14 = vld [vmem:[%s9886_s11 + $0x68] sm:$0x1] }
 0x13c   : > { %9526 = vmatprep.mubr.bf16.mxu0 %v8746_v10  ;;  %v5362_v3 = vsel %vm9957_vm4, %v8715_v37, %v5361_v17  ;;  %v5363_v22 = vrot.slane %v5361_v17, 4  ;;  %v1446_v54 = vadd.f32 %v10859_v24, %v10673_v12  ;;  %v1444_v47 = vadd.f32 %v10876_v11, %v10688_v25  ;;  %v10983_v35 = vpop.f32.mrf.mxu1  ;;  %v8680_v12 = vld [vmem:[%s9886_s11 + $0x60] sm:$0xe]  ;;  %v8681_v24 = vld [vmem:[%s9886_s11 + $0x64] sm:$0xf] }
 0x13d   : > { %9478 = vmatprep.mubr.bf16.mxu1 %v8642_v19  ;;  %v4591_v44 = vsel %vm9976_vm5, %v4586_v15, %v4590_v4  ;;  %v4603_v38 = vshrl.u32 %v8592_v2, 16  ;;  %v4596_v57 = vrot.slane %v4595_v20, 4  ;;  %v10990_v40 = vadd.f32 %v10849_v63, %v1443_v43  ;;  %v8595_v15 = vld [vmem:[%s9886_s11 + $0x6c] sm:$0xf] }
 0x13e   : > { %v5365_v62 = vsel %vm9957_vm4, %v5363_v22, %v5364_v28  ;;  %v4606_v4 = vshll.u32 %v8592_v2, 16  ;;  %v10995_v11 = vadd.f32 %v10861_v48, %v1446_v54  ;;  %v10998_v9 = vadd.f32 %v10878_v5, %v1444_v47  ;;  %v11004_v48 = vpop.f32.mrf.mxu1  ;;  %v11006_v28 = vpop.f32.mrf.mxu0  ;;  %v8596_v22 = vld [vmem:[%s9886_s11 + $0x70] sm:$0xf] }
 0x13f   : > { %v8747_v25 = vcombine.low %v5362_v3, %v5365_v62  ;;  %v4605_v10 = vrot.slane %v4603_v38, 4  ;;  %v4601_v1 = vsel %vm9976_vm5, %v4596_v57, %v4600_v59  ;;  %v4612_v63 = vshll.u32 %v8593_v13, 16 }
 0x140   : > { %12252 = vst [vmem:[#allocation21_spill] sm:$0xff] %v10998_v9  ;;  %v4608_v61 = vrot.slane %v4606_v4, 5  ;;  %v4616_v16 = vshrl.u32 %v8593_v13, 16  ;;  %v8643_v37 = vcombine.low %v4591_v44, %v4601_v1  ;;  %v4622_v17 = vshll.u32 %v8594_v41, 16  ;;  %v8597_v13 = vld [vmem:[%s9886_s11 + $0x74] sm:$0x1] }
 0x141   : > { %v8716_v2 = vrot.slane %v8680_v12, 9  ;;  %v5368_v19 = vrot.slane %v8681_v24, 5  ;;  %v4614_v20 = vrot.slane %v4612_v63, 5  ;;  %v5371_v59 = vrot.slane %v8682_v14, 5  ;;  %v8683_v4 = vld [vmem:[%s9886_s11 + $0x6c] sm:$0xe] }
 0x142   : > { %v4609_v5 = vor.u32 %v4608_v61, %v4605_v10  ;;  %v4618_v3 = vrot.slane %v4616_v16, 4  ;;  %9479 = vmatmul.mubr.bf16.gmra.mxu1 %v8643_v37  ;;  %v4624_v43 = vrot.slane %v4622_v17, 5  ;;  %v1449_v47 = vadd.f32 %v10895_v23, %v10695_v31  ;;  %v8684_v14 = vld [vmem:[%s9886_s11 + $0x70] sm:$0xf]  ;;  %v8685_v1 = vld [vmem:[%s9886_s11 + $0x74] sm:$0x1]  ;;  %v11022_v61 = vpop.f32.mrf.mxu1  ;;  %v11024_v63 = vpop.f32.mrf.mxu0 }
 0x143   : > { %9527 = vmatmul.mubr.bf16.gmra.mxu0 %v8747_v25  ;;  %v5369_v44 = vsel %vm9957_vm4, %v8716_v2, %v5368_v19  ;;  %v5370_v54 = vrot.slane %v5368_v19, 4  ;;  %v4627_v57 = vshrl.u32 %v8595_v15, 16  ;;  %v4630_v62 = vshll.u32 %v8595_v15, 16 }
 0x144   : > { %v4610_v41 = vrot.slane %v4609_v5, 4  ;;  %v4619_v38 = vor.u32 %v4618_v3, %v4614_v20  ;;  %v11018_v24 = vadd.f32 %v10897_v0, %v1449_v47  ;;  %v4636_v25 = vshll.u32 %v8596_v22, 16  ;;  %v11028_v15 = vpop.f32.mrf.mxu1  ;;  %v11030_v5 = vpop.f32.mrf.mxu0 }
 0x145   : > { %v5372_v12 = vsel %vm9957_vm4, %v5370_v54, %v5371_v59  ;;  %v4640_v10 = vshrl.u32 %v8596_v22, 16  ;;  %v4629_v37 = vrot.slane %v4627_v57, 4  ;;  %v4632_v17 = vrot.slane %v4630_v62, 5 }
 0x146   : > { %12253 = vst [vmem:[#allocation22_spill] sm:$0xff] %v11018_v24  ;;  %v4615_v31 = vsel %vm9976_vm5, %v4610_v41, %v4614_v20  ;;  %v4620_v23 = vrot.slane %v4619_v38, 4  ;;  %v8748_v16 = vcombine.low %v5369_v44, %v5372_v12  ;;  %v4638_v2 = vrot.slane %v4636_v25, 5  ;;  %v8598_v20 = vld [vmem:[%s9886_s11 + $0x78] sm:$0xf]  ;;  %v11035_v57 = vpop.f32.mrf.mxu1 }
 0x147   : > { %v4642_v19 = vrot.slane %v4640_v10, 4  ;;  %v4646_v0 = vshll.u32 %v8597_v13, 16  ;;  %v8717_v59 = vrot.slane %v8683_v4, 9  ;;  %v5375_v22 = vrot.slane %v8684_v14, 5  ;;  %v11037_v13 = vpop.f32.mrf.mxu0  ;;  %v8599_v25 = vld [vmem:[%s9886_s11 + $0x7c] sm:$0xf] }
 0x148   : > { %v4625_v3 = vsel %vm9976_vm5, %v4620_v23, %v4624_v43  ;;  %9530 = vmatprep.mubr.bf16.mxu0 %v8748_v16  ;;  %v5378_v54 = vrot.slane %v8685_v1, 5  ;;  %v4633_v47 = vor.u32 %v4632_v17, %v4629_v37  ;;  %v1447_v4 = vadd.f32 %v10912_v53, %v10702_v45  ;;  %v8686_v53 = vld [vmem:[%s9886_s11 + $0x78] sm:$0xe] }
 0x149   : > { %v8644_v44 = vcombine.low %v4615_v31, %v4625_v3  ;;  %v4643_v41 = vor.u32 %v4642_v19, %v4638_v2  ;;  %v4648_v38 = vrot.slane %v4646_v0, 5  ;;  %v5376_v62 = vsel %vm9957_vm4, %v8717_v59, %v5375_v22  ;;  %v8600_v31 = vld [vmem:[%s9886_s11 + $0x80] sm:$0x1]  ;;  %v11069_v3 = vpop.f32.mrf.mxu0 }
 0x14a   : > { %v5377_v43 = vrot.slane %v5375_v22, 4  ;;  %v1450_v12 = vadd.f32 %v10929_v8, %v10708_v58  ;;  %v4634_v10 = vrot.slane %v4633_v47, 4  ;;  %v1448_v1 = vadd.f32 %v10943_v29, %v10723_v21  ;;  %v8687_v8 = vld [vmem:[%s9886_s11 + $0x7c] sm:$0xf]  ;;  %v8688_v0 = vld [vmem:[%s9886_s11 + $0x80] sm:$0x1] }
 0x14b   : > { %9482 = vmatprep.mubr.bf16.mxu1 %v8644_v44  ;;  %v4644_v14 = vrot.slane %v4643_v41, 4  ;;  %v4651_v23 = vshrl.u32 %v8598_v20, 16  ;;  %v11052_v37 = vadd.f32 %v10914_v42, %v1447_v4  ;;  %v4654_v58 = vshll.u32 %v8598_v20, 16  ;;  %v11067_v42 = vpop.f32.mrf.mxu1  ;;  %v8601_v41 = vld [vmem:[%s9886_s11 + $0x84] sm:$0xf] }
 0x14c   : > { %v5379_v16 = vsel %vm9957_vm4, %v5377_v43, %v5378_v54  ;;  %v11055_v45 = vadd.f32 %v10931_v26, %v1450_v12  ;;  %v4639_v17 = vsel %vm9976_vm5, %v4634_v10, %v4638_v2  ;;  %v11064_v19 = vadd.f32 %v10945_v32, %v1448_v1  ;;  %v8602_v4 = vld [vmem:[%s9886_s11 + $0x88] sm:$0xf]  ;;  %v8603_v1 = vld [vmem:[%s9886_s11 + $0x8c] sm:$0x1] }
 0x14d   : > { %12254 = vst [vmem:[#allocation23_spill] sm:$0xff] %v11052_v37  ;;  %v4649_v21 = vsel %vm9976_vm5, %v4644_v14, %v4648_v38  ;;  %v8749_v29 = vcombine.low %v5376_v62, %v5379_v16  ;;  %v4653_v59 = vrot.slane %v4651_v23, 4  ;;  %v4656_v22 = vrot.slane %v4654_v58, 5 }
 0x14e   : > { %12255 = vst [vmem:[#allocation24_spill] sm:$0xff] %v11055_v45  ;;  %12256 = vst [vmem:[#allocation25_spill] sm:$0xff] %v11064_v19  ;;  %v8645_v26 = vcombine.low %v4639_v17, %v4649_v21  ;;  %v4660_v54 = vshll.u32 %v8599_v25, 16  ;;  %v4664_v2 = vshrl.u32 %v8599_v25, 16  ;;  %v4670_v20 = vshll.u32 %v8600_v31, 16  ;;  %v11078_v31 = vpop.f32.mrf.mxu1  ;;  %v11080_v23 = vpop.f32.mrf.mxu0 }
 0x14f   : > { %9531 = vmatmul.mubr.bf16.gmra.mxu0 %v8749_v29  ;;  %v8718_v44 = vrot.slane %v8686_v53, 9  ;;  %v5382_v47 = vrot.slane %v8687_v8, 5  ;;  %v4657_v32 = vor.u32 %v4656_v22, %v4653_v59  ;;  %v5385_v62 = vrot.slane %v8688_v0, 5  ;;  %v8690_v0 = vld [vmem:[%s9886_s11 + $0x88] sm:$0xf] }
 0x150   : > { %9483 = vmatmul.mubr.bf16.gmra.mxu1 %v8645_v26  ;;  %v4662_v38 = vrot.slane %v4660_v54, 5  ;;  %v1453_v43 = vadd.f32 %v10960_v30, %v10565_v33  ;;  %v4666_v12 = vrot.slane %v4664_v2, 4  ;;  %v4672_v10 = vrot.slane %v4670_v20, 5  ;;  %v8689_v30 = vld [vmem:[%s9886_s11 + $0x84] sm:$0xe]  ;;  %v11090_v59 = vpop.f32.mrf.mxu1  ;;  %v11092_v22 = vpop.f32.mrf.mxu0 }
 0x151   : > { %v5383_v25 = vsel %vm9957_vm4, %v8718_v44, %v5382_v47  ;;  %v5384_v14 = vrot.slane %v5382_v47, 4  ;;  %v4658_v16 = vrot.slane %v4657_v32, 4  ;;  %v4675_v53 = vshrl.u32 %v8601_v41, 16  ;;  %v8691_v26 = vld [vmem:[%s9886_s11 + $0x8c] sm:$0x1] }
 0x152   : > { %v11083_v58 = vadd.f32 %v10962_v55, %v1453_v43  ;;  %v4678_v33 = vshll.u32 %v8601_v41, 16  ;;  %v4667_v8 = vor.u32 %v4666_v12, %v4662_v38  ;;  %v4684_v21 = vshll.u32 %v8602_v4, 16  ;;  %v11098_v43 = vpop.f32.mrf.mxu0 }
 0x153   : > { %v5386_v17 = vsel %vm9957_vm4, %v5384_v14, %v5385_v62  ;;  %v4688_v29 = vshrl.u32 %v8602_v4, 16  ;;  %v4663_v54 = vsel %vm9976_vm5, %v4658_v16, %v4662_v38  ;;  %v4677_v2 = vrot.slane %v4675_v53, 4  ;;  %v11096_v62 = vpop.f32.mrf.mxu1 }
 0x154   : > { %12257 = vst [vmem:[#allocation26_spill] sm:$0xff] %v11083_v58  ;;  %v8750_v55 = vcombine.low %v5383_v25, %v5386_v17  ;;  %v4680_v20 = vrot.slane %v4678_v33, 5  ;;  %v4668_v44 = vrot.slane %v4667_v8, 4  ;;  %v4686_v47 = vrot.slane %v4684_v21, 5 }
 0x155   : > { %v4690_v41 = vrot.slane %v4688_v29, 4  ;;  %v4694_v32 = vshll.u32 %v8603_v1, 16  ;;  %v8719_v12 = vrot.slane %v8689_v30, 9  ;;  %v5389_v14 = vrot.slane %v8690_v0, 5  ;;  %v8604_v1 = vld [vmem:[%s9886_s11 + $0x90] sm:$0xf] }
 0x156   : > { %9534 = vmatprep.mubr.bf16.mxu0 %v8750_v55  ;;  %v4681_v4 = vor.u32 %v4680_v20, %v4677_v2  ;;  %v5392_v58 = vrot.slane %v8691_v26, 5  ;;  %v4673_v38 = vsel %vm9976_vm5, %v4668_v44, %v4672_v10  ;;  %v1451_v53 = vadd.f32 %v10967_v27, %v10572_v39  ;;  %v8605_v39 = vld [vmem:[%s9886_s11 + $0x94] sm:$0xf]  ;;  %v8606_v27 = vld [vmem:[%s9886_s11 + $0x98] sm:$0x1]  ;;  %v11116_v26 = vpop.f32.mrf.mxu1 }
 0x157   : > { %v4691_v25 = vor.u32 %v4690_v41, %v4686_v47  ;;  %v4696_v16 = vrot.slane %v4694_v32, 5  ;;  %v8646_v33 = vcombine.low %v4663_v54, %v4673_v38  ;;  %v5390_v17 = vsel %vm9957_vm4, %v8719_v12, %v5389_v14  ;;  %v11118_v54 = vpop.f32.mrf.mxu0  ;;  %v8694_v32 = vld [vmem:[%s9886_s11 + $0x98] sm:$0x1] }
 0x158   : > { %v4682_v8 = vrot.slane %v4681_v4, 4  ;;  %v5391_v30 = vrot.slane %v5389_v14, 4  ;;  %v11108_v29 = vadd.f32 %v10969_v36, %v1451_v53  ;;  %v1454_v10 = vadd.f32 %v10983_v35, %v10584_v51  ;;  %v8692_v51 = vld [vmem:[%s9886_s11 + $0x90] sm:$0xe]  ;;  %v8693_v35 = vld [vmem:[%s9886_s11 + $0x94] sm:$0xf] }
 0x159   : > { %v4692_v21 = vrot.slane %v4691_v25, 4  ;;  %v1452_v0 = vadd.f32 %v11004_v48, %v10595_v60  ;;  %9486 = vmatprep.mubr.bf16.mxu1 %v8646_v33  ;;  %v4699_v2 = vshrl.u32 %v8604_v1, 16  ;;  %v4702_v20 = vshll.u32 %v8604_v1, 16 }
 0x15a   : > { %12258 = vst [vmem:[#allocation27_spill] sm:$0xff] %v11108_v29  ;;  %v4687_v55 = vsel %vm9976_vm5, %v4682_v8, %v4686_v47  ;;  %v5393_v36 = vsel %vm9957_vm4, %v5391_v30, %v5392_v58  ;;  %v11129_v44 = vadd.f32 %v10985_v50, %v1454_v10  ;;  %v4708_v12 = vshll.u32 %v8605_v39, 16  ;;  %v11136_v1 = vpop.f32.mrf.mxu1  ;;  %v11138_v50 = vpop.f32.mrf.mxu0  ;;  %v8608_v30 = vld [vmem:[%s9886_s11 + $0xa0] sm:$0xf] }
 0x15b   : > { %v4697_v60 = vsel %vm9976_vm5, %v4692_v21, %v4696_v16  ;;  %v8751_v48 = vcombine.low %v5390_v17, %v5393_v36  ;;  %v11132_v41 = vadd.f32 %v11006_v28, %v1452_v0  ;;  %v4701_v4 = vrot.slane %v4699_v2, 4  ;;  %v8607_v16 = vld [vmem:[%s9886_s11 + $0x9c] sm:$0xf] }
 0x15c   : > { %12259 = vst [vmem:[#allocation28_spill] sm:$0xff] %v11129_v44  ;;  %v8647_v47 = vcombine.low %v4687_v55, %v4697_v60  ;;  %v4704_v58 = vrot.slane %v4702_v20, 5  ;;  %v4712_v14 = vshrl.u32 %v8605_v39, 16  ;;  %v4718_v38 = vshll.u32 %v8606_v27, 16  ;;  %v8609_v27 = vld [vmem:[%s9886_s11 + $0xa4] sm:$0x1]  ;;  %v11146_v55 = vpop.f32.mrf.mxu1  ;;  %v11148_v36 = vpop.f32.mrf.mxu0 }
 0x15d   : > { %12260 = vst [vmem:[#allocation29_spill] sm:$0xff] %v11132_v41  ;;  %9535 = vmatmul.mubr.bf16.gmra.mxu0 %v8751_v48  ;;  %v8720_v25 = vrot.slane %v8692_v51, 9  ;;  %v5396_v53 = vrot.slane %v8693_v35, 5  ;;  %v4710_v33 = vrot.slane %v4708_v12, 5  ;;  %v5399_v8 = vrot.slane %v8694_v32, 5 }
 0x15e   : > { %9487 = vmatmul.mubr.bf16.gmra.mxu1 %v8647_v47  ;;  %v4705_v28 = vor.u32 %v4704_v58, %v4701_v4  ;;  %v1457_v17 = vadd.f32 %v11022_v61, %v10607_v6  ;;  %v4714_v21 = vrot.slane %v4712_v14, 4  ;;  %v4720_v10 = vrot.slane %v4718_v38, 5  ;;  %v8695_v61 = vld [vmem:[%s9886_s11 + $0x9c] sm:$0xe]  ;;  %v8696_v47 = vld [vmem:[%s9886_s11 + $0xa0] sm:$0xf]  ;;  %v11158_v58 = vpop.f32.mrf.mxu1  ;;  %v11160_v12 = vpop.f32.mrf.mxu0 }
 0x15f   : > { %v5397_v0 = vsel %vm9957_vm4, %v8720_v25, %v5396_v53  ;;  %v5398_v39 = vrot.slane %v5396_v53, 4  ;;  %v4723_v51 = vshrl.u32 %v8607_v16, 16  ;;  %v4726_v6 = vshll.u32 %v8607_v16, 16  ;;  %v8697_v4 = vld [vmem:[%s9886_s11 + $0xa4] sm:$0x1] }
 0x160   : > { %v4706_v2 = vrot.slane %v4705_v28, 4  ;;  %v11151_v20 = vadd.f32 %v11024_v63, %v1457_v17  ;;  %v4715_v35 = vor.u32 %v4714_v21, %v4710_v33  ;;  %v4732_v48 = vshll.u32 %v8608_v30, 16  ;;  %v11166_v41 = vpop.f32.mrf.mxu0 }
 0x161   : > { %v5400_v60 = vsel %vm9957_vm4, %v5398_v39, %v5399_v8  ;;  %v4736_v32 = vshrl.u32 %v8608_v30, 16  ;;  %v4725_v38 = vrot.slane %v4723_v51, 4  ;;  %v4728_v25 = vrot.slane %v4726_v6, 5  ;;  %v11164_v8 = vpop.f32.mrf.mxu1 }
 0x162   : > { %12261 = vst [vmem:[#allocation30_spill] sm:$0xff] %v11151_v20  ;;  %v4711_v14 = vsel %vm9976_vm5, %v4706_v2, %v4710_v33  ;;  %v8752_v63 = vcombine.low %v5397_v0, %v5400_v60  ;;  %v4716_v53 = vrot.slane %v4715_v35, 4  ;;  %v4734_v16 = vrot.slane %v4732_v48, 5 }
 0x163   : > { %v4738_v28 = vrot.slane %v4736_v32, 4  ;;  %v4742_v17 = vshll.u32 %v8609_v27, 16  ;;  %v4729_v30 = vor.u32 %v4728_v25, %v4725_v38  ;;  %v8721_v21 = vrot.slane %v8695_v61, 9  ;;  %v8610_v27 = vld [vmem:[%s9886_s11 + $0xa8] sm:$0xf]  ;;  %v11173_v6 = vpop.f32.mrf.mxu1 }
 0x164   : > { %9538 = vmatprep.mubr.bf16.mxu0 %v8752_v63  ;;  %v5403_v39 = vrot.slane %v8696_v47, 5  ;;  %v5406_v20 = vrot.slane %v8697_v4, 5  ;;  %v4721_v33 = vsel %vm9976_vm5, %v4716_v53, %v4720_v10  ;;  %v1455_v51 = vadd.f32 %v11028_v15, %v10621_v18  ;;  %v12263_v10 = vld [vmem:[#allocation6_spill] sm:$0xff]  ;;  %v12264_v63 = vld [vmem:[#allocation7_spill] sm:$0xff] }
 0x165   : > { %v4739_v0 = vor.u32 %v4738_v28, %v4734_v16  ;;  %v4744_v2 = vrot.slane %v4742_v17, 5  ;;  %v8648_v35 = vcombine.low %v4711_v14, %v4721_v33  ;;  %v4730_v61 = vrot.slane %v4729_v30, 4  ;;  %v8611_v15 = vld [vmem:[%s9886_s11 + $0xac] sm:$0xf]  ;;  %v8612_v14 = vld [vmem:[%s9886_s11 + $0xb0] sm:$0x1]  ;;  %v11186_v38 = vpop.f32.mrf.mxu1 }
 0x166   : > { %v5404_v60 = vsel %vm9957_vm4, %v8721_v21, %v5403_v39  ;;  %v5405_v48 = vrot.slane %v5403_v39, 4  ;;  %v11178_v47 = vadd.f32 %v11030_v5, %v1455_v51  ;;  %v1458_v4 = vadd.f32 %v11035_v57, %v12263_v10  ;;  %v8698_v17 = vld [vmem:[%s9886_s11 + $0xa8] sm:$0xe]  ;;  %v8699_v30 = vld [vmem:[%s9886_s11 + $0xac] sm:$0xf]  ;;  %v11194_v57 = vpop.f32.mrf.mxu0 }
 0x167   : > { %v4740_v32 = vrot.slane %v4739_v0, 4  ;;  %v1456_v18 = vadd.f32 %v11067_v42, %v12264_v63  ;;  %9490 = vmatprep.mubr.bf16.mxu1 %v8648_v35  ;;  %v4735_v25 = vsel %vm9976_vm5, %v4730_v61, %v4734_v16  ;;  %v4747_v5 = vshrl.u32 %v8610_v27, 16  ;;  %v8700_v16 = vld [vmem:[%s9886_s11 + $0xb0] sm:$0x1]  ;;  %v11205_v0 = vpop.f32.mrf.mxu1 }
 0x168   : > { %12262 = vst [vmem:[#allocation31_spill] sm:$0xff] %v11178_v47  ;;  %v5407_v53 = vsel %vm9957_vm4, %v5405_v48, %v5406_v20  ;;  %v4750_v28 = vshll.u32 %v8610_v27, 16  ;;  %v11199_v39 = vadd.f32 %v11037_v13, %v1458_v4  ;;  %v4756_v35 = vshll.u32 %v8611_v15, 16  ;;  %v11207_v61 = vpop.f32.mrf.mxu0 }
 0x169   : > { %v4745_v42 = vsel %vm9976_vm5, %v4740_v32, %v4744_v2  ;;  %v8753_v21 = vcombine.low %v5404_v60, %v5407_v53  ;;  %v11202_v33 = vadd.f32 %v11069_v3, %v1456_v18  ;;  %v4749_v51 = vrot.slane %v4747_v5, 4  ;;  %v8613_v32 = vld [vmem:[%s9886_s11 + $0xb4] sm:$0xf]  ;;  %v11210_v10 = vpop.f32.mrf.mxu1  ;;  %v8614_v53 = vld [vmem:[%s9886_s11 + $0xb8] sm:$0xf] }
 0x16a   : > { %12265 = vst [vmem:[#allocation6_spill] sm:$0xff] %v11199_v39  ;;  %v8649_v20 = vcombine.low %v4735_v25, %v4745_v42  ;;  %v4752_v27 = vrot.slane %v4750_v28, 5  ;;  %v4760_v2 = vshrl.u32 %v8611_v15, 16  ;;  %v4766_v48 = vshll.u32 %v8612_v14, 16  ;;  %v12267_v18 = vld [vmem:[#allocation8_spill] sm:$0xff]  ;;  %v11215_v5 = vpop.f32.mrf.mxu0 }
 0x16b   : > { %12266 = vst [vmem:[#allocation7_spill] sm:$0xff] %v11202_v33  ;;  %9539 = vmatmul.mubr.bf16.gmra.mxu0 %v8753_v21  ;;  %v8722_v60 = vrot.slane %v8698_v17, 9  ;;  %v5410_v13 = vrot.slane %v8699_v30, 5  ;;  %v4758_v4 = vrot.slane %v4756_v35, 5  ;;  %v5413_v63 = vrot.slane %v8700_v16, 5  ;;  %v11220_v42 = vpop.f32.mrf.mxu1 }
 0x16c   : > { %9491 = vmatmul.mubr.bf16.gmra.mxu1 %v8649_v20  ;;  %v4753_v3 = vor.u32 %v4752_v27, %v4749_v51  ;;  %v1461_v25 = vadd.f32 %v11078_v31, %v12267_v18  ;;  %v4762_v28 = vrot.slane %v4760_v2, 4  ;;  %v4768_v15 = vrot.slane %v4766_v48, 5  ;;  %v8615_v30 = vld [vmem:[%s9886_s11 + $0xbc] sm:$0x1]  ;;  %v8701_v51 = vld [vmem:[%s9886_s11 + $0xb4] sm:$0xe]  ;;  %v11226_v27 = vpop.f32.mrf.mxu0 }
 0x16d   : > { %v5411_v14 = vsel %vm9957_vm4, %v8722_v60, %v5410_v13  ;;  %v5412_v17 = vrot.slane %v5410_v13, 4  ;;  %v4771_v20 = vshrl.u32 %v8613_v32, 16  ;;  %v4774_v31 = vshll.u32 %v8613_v32, 16  ;;  %v8702_v60 = vld [vmem:[%s9886_s11 + $0xb8] sm:$0xf]  ;;  %v11232_v33 = vpop.f32.mrf.mxu1 }
 0x16e   : > { %v4754_v21 = vrot.slane %v4753_v3, 4  ;;  %v11223_v16 = vadd.f32 %v11080_v23, %v1461_v25  ;;  %v4763_v35 = vor.u32 %v4762_v28, %v4758_v4  ;;  %v4780_v48 = vshll.u32 %v8614_v53, 16  ;;  %v8703_v13 = vld [vmem:[%s9886_s11 + $0xbc] sm:$0x1]  ;;  %v11238_v19 = vpop.f32.mrf.mxu0 }
 0x16f   : > { %v5414_v2 = vsel %vm9957_vm4, %v5412_v17, %v5413_v63  ;;  %v4784_v18 = vshrl.u32 %v8614_v53, 16  ;;  %v4773_v25 = vrot.slane %v4771_v20, 4  ;;  %v4790_v28 = vshll.u32 %v8615_v30, 16  ;;  %v11236_v44 = vpop.f32.mrf.mxu1  ;;  %v12269_v20 = vld [vmem:[#allocation9_spill] sm:$0xff]  ;;  %v8616_v30 = vld [vmem:[%s9886_s11 + $0xc0] sm:$0xf] }
 0x170   : > { %12268 = vst [vmem:[#allocation8_spill] sm:$0xff] %v11223_v16  ;;  %v4759_v3 = vsel %vm9976_vm5, %v4754_v21, %v4758_v4  ;;  %v8754_v23 = vcombine.low %v5411_v14, %v5414_v2  ;;  %v4776_v16 = vrot.slane %v4774_v31, 5  ;;  %v4764_v32 = vrot.slane %v4763_v35, 4 }
 0x171   : > { %v4782_v39 = vrot.slane %v4780_v48, 5  ;;  %v4786_v47 = vrot.slane %v4784_v18, 4  ;;  %v8723_v53 = vrot.slane %v8701_v51, 9  ;;  %v5417_v17 = vrot.slane %v8702_v60, 5  ;;  %v11245_v35 = vpop.f32.mrf.mxu1  ;;  %v11249_v18 = vpop.f32.mrf.mxu0  ;;  %v12271_v60 = vld [vmem:[#allocation10_spill] sm:$0xff] }
 0x172   : > { %9542 = vmatprep.mubr.bf16.mxu0 %v8754_v23  ;;  %v4777_v63 = vor.u32 %v4776_v16, %v4773_v25  ;;  %v5420_v29 = vrot.slane %v8703_v13, 5  ;;  %v4769_v4 = vsel %vm9976_vm5, %v4764_v32, %v4768_v15  ;;  %v4792_v21 = vrot.slane %v4790_v28, 5  ;;  %v12272_v13 = vld [vmem:[#allocation11_spill] sm:$0xff] }
 0x173   : > { %v4787_v14 = vor.u32 %v4786_v47, %v4782_v39  ;;  %v1459_v31 = vadd.f32 %v11090_v59, %v12269_v20  ;;  %v8650_v2 = vcombine.low %v4759_v3, %v4769_v4  ;;  %v5418_v51 = vsel %vm9957_vm4, %v8723_v53, %v5417_v17  ;;  %v8617_v3 = vld [vmem:[%s9886_s11 + $0xc4] sm:$0xf]  ;;  %v8618_v25 = vld [vmem:[%s9886_s11 + $0xc8] sm:$0x1]  ;;  %v11260_v32 = vpop.f32.mrf.mxu1 }
 0x174   : > { %v4778_v16 = vrot.slane %v4777_v63, 4  ;;  %v5419_v48 = vrot.slane %v5417_v17, 4  ;;  %v1462_v59 = vadd.f32 %v11096_v62, %v12271_v60  ;;  %v1460_v23 = vadd.f32 %v11116_v26, %v12272_v13  ;;  %v8704_v17 = vld [vmem:[%s9886_s11 + $0xc0] sm:$0xe]  ;;  %v8705_v4 = vld [vmem:[%s9886_s11 + $0xc4] sm:$0xf]  ;;  %v11268_v62 = vpop.f32.mrf.mxu0 }
 0x175   : > { %v4788_v15 = vrot.slane %v4787_v14, 4  ;;  %v11252_v47 = vadd.f32 %v11092_v22, %v1459_v31  ;;  %9494 = vmatprep.mubr.bf16.mxu1 %v8650_v2  ;;  %v4795_v22 = vshrl.u32 %v8616_v30, 16  ;;  %v4798_v53 = vshll.u32 %v8616_v30, 16  ;;  %v11279_v2 = vpop.f32.mrf.mxu1 }
 0x176   : > { %v4783_v28 = vsel %vm9976_vm5, %v4778_v16, %v4782_v39  ;;  %v5421_v63 = vsel %vm9957_vm4, %v5419_v48, %v5420_v29  ;;  %v11273_v20 = vadd.f32 %v11098_v43, %v1462_v59  ;;  %v11276_v31 = vadd.f32 %v11118_v54, %v1460_v23  ;;  %v8706_v39 = vld [vmem:[%s9886_s11 + $0xc8] sm:$0x1]  ;;  %v11281_v60 = vpop.f32.mrf.mxu0  ;;  %v8619_v59 = vld [vmem:[%s9886_s11 + $0xcc] sm:$0xf] }
 0x177   : > { %12270 = vst [vmem:[#allocation9_spill] sm:$0xff] %v11252_v47  ;;  %v4793_v26 = vsel %vm9976_vm5, %v4788_v15, %v4792_v21  ;;  %v8755_v14 = vcombine.low %v5418_v51, %v5421_v63  ;;  %v4797_v30 = vrot.slane %v4795_v22, 4  ;;  %v4800_v16 = vrot.slane %v4798_v53, 5  ;;  %v11284_v13 = vpop.f32.mrf.mxu1  ;;  %v12276_v63 = vld [vmem:[#allocation12_spill] sm:$0xff] }
 0x178   : > { %12273 = vst [vmem:[#allocation10_spill] sm:$0xff] %v11273_v20  ;;  %12274 = vst [vmem:[#allocation11_spill] sm:$0xff] %v11276_v31  ;;  %v8651_v29 = vcombine.low %v4783_v28, %v4793_v26  ;;  %v4804_v48 = vshll.u32 %v8617_v3, 16  ;;  %v4808_v21 = vshrl.u32 %v8617_v3, 16  ;;  %v4814_v51 = vshll.u32 %v8618_v25, 16 }
 0x179   : > { %9543 = vmatmul.mubr.bf16.gmra.mxu0 %v8755_v14  ;;  %v8724_v15 = vrot.slane %v8704_v17, 9  ;;  %v5424_v43 = vrot.slane %v8705_v4, 5  ;;  %12275 = vst [vmem:[#allocation32_spill] sm:$0xff] %v11284_v13  ;;  %v4801_v54 = vor.u32 %v4800_v16, %v4797_v30  ;;  %v5427_v28 = vrot.slane %v8706_v39, 5  ;;  %v8620_v53 = vld [vmem:[%s9886_s11 + $0xd0] sm:$0xf]  ;;  %v11292_v4 = vpop.f32.mrf.mxu0 }
 0x17a   : > { %9495 = vmatmul.mubr.bf16.gmra.mxu1 %v8651_v29  ;;  %v4806_v23 = vrot.slane %v4804_v48, 5  ;;  %v1465_v22 = vadd.f32 %v11136_v1, %v12276_v63  ;;  %v4810_v26 = vrot.slane %v4808_v21, 4  ;;  %v4816_v14 = vrot.slane %v4814_v51, 5  ;;  %v8621_v17 = vld [vmem:[%s9886_s11 + $0xd4] sm:$0x1]  ;;  %v11294_v29 = vpop.f32.mrf.mxu1 }
 0x17b   : > { %v5425_v3 = vsel %vm9957_vm4, %v8724_v15, %v5424_v43  ;;  %v5426_v25 = vrot.slane %v5424_v43, 4  ;;  %12277 = vst [vmem:[#allocation12_spill] sm:$0xff] %v11294_v29  ;;  %v4802_v30 = vrot.slane %v4801_v54, 4  ;;  %v4819_v16 = vshrl.u32 %v8619_v59, 16  ;;  %v8707_v48 = vld [vmem:[%s9886_s11 + $0xcc] sm:$0xe]  ;;  %v11304_v20 = vpop.f32.mrf.mxu0 }
 0x17c   : > { %v11297_v39 = vadd.f32 %v11138_v50, %v1465_v22  ;;  %v4822_v1 = vshll.u32 %v8619_v59, 16  ;;  %v4811_v21 = vor.u32 %v4810_v26, %v4806_v23  ;;  %v4828_v63 = vshll.u32 %v8620_v53, 16  ;;  %v8708_v15 = vld [vmem:[%s9886_s11 + $0xd0] sm:$0xf]  ;;  %v8709_v43 = vld [vmem:[%s9886_s11 + $0xd4] sm:$0x1]  ;;  %v11306_v47 = vpop.f32.mrf.mxu1 }
 0x17d   : > { %v5428_v51 = vsel %vm9957_vm4, %v5426_v25, %v5427_v28  ;;  %v4832_v31 = vshrl.u32 %v8620_v53, 16  ;;  %12279 = vst [vmem:[#allocation34_spill] sm:$0xff] %v11306_v47  ;;  %v4807_v54 = vsel %vm9976_vm5, %v4802_v30, %v4806_v23  ;;  %v4821_v22 = vrot.slane %v4819_v16, 4  ;;  %v11310_v24 = vpop.f32.mrf.mxu0 }
 0x17e   : > { %12278 = vst [vmem:[#allocation33_spill] sm:$0xff] %v11297_v39  ;;  %v8756_v50 = vcombine.low %v5425_v3, %v5428_v51  ;;  %v4824_v39 = vrot.slane %v4822_v1, 5  ;;  %v4812_v59 = vrot.slane %v4811_v21, 4  ;;  %v4830_v45 = vrot.slane %v4828_v63, 5  ;;  %v2404_v28 = vpop.f32.mrf.mxu1  ;;  %v12280_v3 = vld [vmem:[#allocation13_spill] sm:$0xff]  ;;  %v12281_v63 = vld [vmem:[#allocation14_spill] sm:$0xff] }
 0x17f   : > { %v4834_v26 = vrot.slane %v4832_v31, 4  ;;  %v4838_v37 = vshll.u32 %v8621_v17, 16  ;;  %v8725_v25 = vrot.slane %v8707_v48, 9  ;;  %v5431_v29 = vrot.slane %v8708_v15, 5  ;;  %v3209_v16 = vpop.f32.mrf.mxu0  ;;  %v12282_v15 = vld [vmem:[#allocation15_spill] sm:$0xff] }
 0x180   : > { %9546 = vmatprep.mubr.bf16.mxu0 %v8756_v50  ;;  %v4825_v53 = vor.u32 %v4824_v39, %v4821_v22  ;;  %v5434_v9 = vrot.slane %v8709_v43, 5  ;;  %v4817_v47 = vsel %vm9976_vm5, %v4812_v59, %v4816_v14  ;;  %v1463_v30 = vadd.f32 %v11146_v55, %v12280_v3  ;;  %v9293_v1 = vpop.f32.mrf.mxu1 }
 0x181   : > { %v4835_v13 = vor.u32 %v4834_v26, %v4830_v45  ;;  %v4840_v23 = vrot.slane %v4838_v37, 5  ;;  %v8652_v31 = vcombine.low %v4807_v54, %v4817_v47  ;;  %v5432_v21 = vsel %vm9957_vm4, %v8725_v25, %v5431_v29  ;;  %v12283_v54 = vld [vmem:[#allocation16_spill] sm:$0xff]  ;;  %v12286_v26 = vld [vmem:[#allocation19_spill] sm:$0xff] }
 0x182   : > { %v4826_v17 = vrot.slane %v4825_v53, 4  ;;  %v5433_v51 = vrot.slane %v5431_v29, 4  ;;  %v11319_v48 = vadd.f32 %v11148_v36, %v1463_v30  ;;  %v1466_v14 = vadd.f32 %v11158_v58, %v12281_v63  ;;  %v2407_v43 = vpop.f32.mrf.mxu1  ;;  %v12284_v29 = vld [vmem:[#allocation17_spill] sm:$0xff]  ;;  %v12287_v53 = vld [vmem:[#allocation20_spill] sm:$0xff]  ;;  %v12291_v30 = vld [vmem:[#allocation22_spill] sm:$0xff] }
 0x183   : > { %v4836_v39 = vrot.slane %v4835_v13, 4  ;;  %v1464_v37 = vadd.f32 %v11164_v8, %v12282_v15  ;;  %9498 = vmatprep.mubr.bf16.mxu1 %v8652_v31  ;;  %v2485_v13 = vadd.f32 %v11173_v6, %v12283_v54  ;;  %v2483_v36 = vadd.f32 %v11186_v38, %v12284_v29  ;;  %v12285_v38 = vld [vmem:[#allocation18_spill] sm:$0xff] }
 0x184   : > { %v4831_v55 = vsel %vm9976_vm5, %v4826_v17, %v4830_v45  ;;  %v5435_v47 = vsel %vm9957_vm4, %v5433_v51, %v5434_v9  ;;  %v11336_v8 = vadd.f32 %v11160_v12, %v1466_v14  ;;  %v9340_v45 = vpop.f32.mrf.mxu0  ;;  %v9296_v59 = vpop.f32.mrf.mxu1  ;;  %v2486_v56 = vadd.f32 %v11205_v0, %v12285_v38  ;;  %v12293_v17 = vld [vmem:[#allocation23_spill] sm:$0xff]  ;;  %v12294_v51 = vld [vmem:[#allocation24_spill] sm:$0xff]  ;;  %v12296_v15 = vld [vmem:[#allocation26_spill] sm:$0xff] }
 0x185   : > { %v4841_v58 = vsel %vm9976_vm5, %v4836_v39, %v4840_v23  ;;  %v8757_v50 = vcombine.low %v5432_v21, %v5435_v47  ;;  %v11339_v22 = vadd.f32 %v11166_v41, %v1464_v37  ;;  %v11342_v9 = vadd.f32 %v11194_v57, %v2485_v13 }
 0x186   : > { %v8653_v46 = vcombine.low %v4831_v55, %v4841_v58  ;;  %v11345_v6 = vadd.f32 %v11207_v61, %v2483_v36  ;;  %v2484_v12 = vadd.f32 %v11210_v10, %v12286_v26  ;;  %v2489_v41 = vadd.f32 %v11220_v42, %v12287_v53  ;;  %v3222_v23 = vpop.f32.mrf.mxu0  ;;  %v2420_v3 = vpop.f32.mrf.mxu1  ;;  %v12298_v36 = vld [vmem:[#allocation28_spill] sm:$0xff]  ;;  %v12299_v58 = vld [vmem:[#allocation29_spill] sm:$0xff] }
 0x187   : > { %9547 = vmatmul.mubr.bf16.gmra.mxu0 %v8757_v50  ;;  %v2487_v25 = vadd.f32 %v11232_v33, %v10909_v49  ;;  %v2490_v57 = vadd.f32 %v11236_v44, %v10919_v7  ;;  %v11358_v61 = vadd.f32 %v11215_v5, %v2486_v56  ;;  %v2488_v0 = vadd.f32 %v11245_v35, %v10922_v52 }
 0x188   : > { %9499 = vmatmul.mubr.bf16.gmra.mxu1 %v8653_v46  ;;  %v2493_v10 = vadd.f32 %v11260_v32, %v10952_v34  ;;  %v2491_v42 = vadd.f32 %v11279_v2, %v10990_v40  ;;  %v11367_v49 = vadd.f32 %v11226_v27, %v2484_v12  ;;  %v11370_v7 = vadd.f32 %v11238_v19, %v2489_v41  ;;  %v9341_v5 = vpop.f32.mrf.mxu0  ;;  %v9297_v52 = vpop.f32.mrf.mxu1  ;;  %v12288_v19 = vld [vmem:[#allocation32_spill] sm:$0xff]  ;;  %v12289_v32 = vld [vmem:[#allocation21_spill] sm:$0xff]  ;;  %v12302_v41 = vld [vmem:[#allocation6_spill] sm:$0xff] }
 0x189   : > { %v11373_v44 = vadd.f32 %v11249_v18, %v2487_v25  ;;  %v11376_v33 = vadd.f32 %v11268_v62, %v2490_v57  ;;  %v11379_v35 = vadd.f32 %v11281_v60, %v2488_v0  ;;  %v2494_v27 = vadd.f32 %v12288_v19, %v10995_v11  ;;  %v12290_v18 = vld [vmem:[#allocation12_spill] sm:$0xff]  ;;  %v12292_v62 = vld [vmem:[#allocation34_spill] sm:$0xff]  ;;  %v12297_v11 = vld [vmem:[#allocation27_spill] sm:$0xff] }
 0x18a   : > { %v11382_v34 = vadd.f32 %v11292_v4, %v2493_v10  ;;  %v11385_v40 = vadd.f32 %v11304_v20, %v2491_v42  ;;  %v2492_v2 = vadd.f32 %v12290_v18, %v12289_v32  ;;  %v2497_v31 = vadd.f32 %v12292_v62, %v12291_v30  ;;  %v3225_v39 = vpop.f32.mrf.mxu0  ;;  %v2423_v63 = vpop.f32.mrf.mxu1  ;;  %v12295_v20 = vld [vmem:[#allocation25_spill] sm:$0xff]  ;;  %v12303_v0 = vld [vmem:[#allocation7_spill] sm:$0xff]  ;;  %v12304_v19 = vld [vmem:[#allocation8_spill] sm:$0xff] }
 0x18b   : > { %v2495_v21 = vadd.f32 %v2404_v28, %v12293_v17  ;;  %v2498_v60 = vadd.f32 %v9293_v1, %v12294_v51  ;;  %v11396_v4 = vadd.f32 %v11310_v24, %v2494_v27  ;;  %v2496_v14 = vadd.f32 %v2407_v43, %v12295_v20  ;;  %v12300_v43 = vld [vmem:[#allocation30_spill] sm:$0xff]  ;;  %v12307_v20 = vld [vmem:[#allocation11_spill] sm:$0xff] }
 0x18c   : > { %v2501_v37 = vadd.f32 %v9296_v59, %v12296_v15  ;;  %v2499_v55 = vadd.f32 %v2420_v3, %v12297_v11  ;;  %v11401_v47 = vadd.f32 %v3209_v16, %v2492_v2  ;;  %v11403_v54 = vadd.f32 %v9340_v45, %v2497_v31  ;;  %v9300_v1 = vpop.f32.mrf.mxu1  ;;  %v9344_v59 = vpop.f32.mrf.mxu0  ;;  %v12301_v16 = vld [vmem:[#allocation31_spill] sm:$0xff]  ;;  %v12305_v2 = vld [vmem:[#allocation9_spill] sm:$0xff] }
 0x18d   : > { %v11405_v13 = vadd.f32 %v3222_v23, %v2495_v21  ;;  %v11407_v28 = vadd.f32 %v9341_v5, %v2498_v60  ;;  %v11409_v29 = vadd.f32 %v3225_v39, %v2496_v14  ;;  %v2502_v24 = vadd.f32 %v9297_v52, %v12298_v36  ;;  %v12306_v21 = vld [vmem:[#allocation10_spill] sm:$0xff] }
 0x18e   : > { %v2500_v50 = vadd.f32 %v2423_v63, %v12299_v58  ;;  %v2505_v46 = vadd.f32 %v9300_v1, %v12300_v43  ;;  %v2436_v38 = vpop.f32.mrf.mxu1  ;;  %v11414_v56 = vadd.f32 %v9344_v59, %v2501_v37  ;;  %v3238_v26 = vpop.f32.mrf.mxu0 }
 0x18f   : > { %v2503_v45 = vadd.f32 %v2436_v38, %v12301_v16  ;;  %v11417_v53 = vadd.f32 %v3238_v26, %v2499_v55  ;;  %v12308_v55 = vld [vmem:[#allocation33_spill] sm:$0xff] }
 0x190   : > { %v9301_v12 = vpop.f32.mrf.mxu1  ;;  %v9345_v57 = vpop.f32.mrf.mxu0 }
 0x191   : > { %v2506_v25 = vadd.f32 %v9301_v12, %v12302_v41  ;;  %v11420_v3 = vadd.f32 %v9345_v57, %v2502_v24 }
 0x192   : > { %v2439_v23 = vpop.f32.mrf.mxu1  ;;  %v3241_v42 = vpop.f32.mrf.mxu0 }
 0x193   : > { %v2504_v10 = vadd.f32 %v2439_v23, %v12303_v0  ;;  %v11423_v52 = vadd.f32 %v3241_v42, %v2500_v50 }
 0x194   : > { %v9304_v5 = vpop.f32.mrf.mxu1  ;;  %v9348_v18 = vpop.f32.mrf.mxu0 }
 0x195   : > { %v2509_v27 = vadd.f32 %v9304_v5, %v12304_v19  ;;  %v11427_v62 = vadd.f32 %v9348_v18, %v2505_v46 }
 0x196   : > { %v2452_v32 = vpop.f32.mrf.mxu1  ;;  %v3254_v17 = vpop.f32.mrf.mxu0 }
 0x197   : > { %v2507_v30 = vadd.f32 %v2452_v32, %v12305_v2  ;;  %v11430_v60 = vadd.f32 %v3254_v17, %v2503_v45 }
 0x198   : > { %v9305_v31 = vpop.f32.mrf.mxu1  ;;  %v9349_v63 = vpop.f32.mrf.mxu0 }
 0x199   : > { %v2510_v51 = vadd.f32 %v9305_v31, %v12306_v21  ;;  %v11433_v15 = vadd.f32 %v9349_v63, %v2506_v25 }
 0x19a   : > { %v2455_v39 = vpop.f32.mrf.mxu1  ;;  %v3257_v11 = vpop.f32.mrf.mxu0 }
 0x19b   : > { %v2508_v14 = vadd.f32 %v2455_v39, %v12307_v20  ;;  %v11436_v36 = vadd.f32 %v3257_v11, %v2504_v10 }
 0x19c   : > { %v9308_v37 = vpop.f32.mrf.mxu1  ;;  %v9352_v58 = vpop.f32.mrf.mxu0 }
 0x19d   : > { %v2513_v1 = vadd.f32 %v9308_v37, %v12308_v55  ;;  %v11439_v43 = vadd.f32 %v9352_v58, %v2509_v27 }
 0x19e   : > { %v2468_v24 = vpop.f32.mrf.mxu1  ;;  %v3270_v59 = vpop.f32.mrf.mxu0 }
 0x19f   : > { %v2511_v50 = vadd.f32 %v2468_v24, %v11319_v48  ;;  %v11442_v16 = vadd.f32 %v3270_v59, %v2507_v30 }
 0x1a0   : > { %v9309_v46 = vpop.f32.mrf.mxu1  ;;  %v9353_v26 = vpop.f32.mrf.mxu0 }
 0x1a1   : > { %v2514_v38 = vadd.f32 %v9309_v46, %v11336_v8  ;;  %v11445_v41 = vadd.f32 %v9353_v26, %v2510_v51 }
 0x1a2   : > { %v2471_v45 = vpop.f32.mrf.mxu1  ;;  %v3273_v25 = vpop.f32.mrf.mxu0 }
 0x1a3   : > { %v2512_v12 = vadd.f32 %v2471_v45, %v11339_v22  ;;  %v11447_v57 = vadd.f32 %v3273_v25, %v2508_v14 }
 0x1a4   : > { %v9356_v23 = vpop.f32.mrf.mxu0  ;;  %v11453_v42 = vpop.f32.mrf.mxu1 }
 0x1a5   : > { %v11449_v0 = vadd.f32 %v9356_v23, %v2513_v1 }
 0x1a6   : > { %v3286_v48 = vpop.f32.mrf.mxu0  ;;  %v11457_v19 = vpop.f32.mrf.mxu1 }
 0x1a7   : > { %v11451_v10 = vadd.f32 %v3286_v48, %v2511_v50 }
 0x1a8   : > { %v9357_v8 = vpop.f32.mrf.mxu0  ;;  %v11461_v32 = vpop.f32.mrf.mxu1 }
 0x1a9   : > { %v11455_v5 = vadd.f32 %v9357_v8, %v2514_v38 }
 0x1aa   : > { %v3289_v27 = vpop.f32.mrf.mxu0  ;;  %v11465_v2 = vpop.f32.mrf.mxu1 }
 0x1ab   : > { %v11459_v22 = vadd.f32 %v3289_v27, %v2512_v12 }
 0x1ac   : > { %v11463_v18 = vpop.f32.mrf.mxu0  ;;  %v9380_v31 = vpop.f32.mrf.mxu1 }
 0x1ad   : > { %v3901_v21 = vadd.f32 %v9380_v31, %v11370_v7 }
 0x1ae   : > { %v11467_v30 = vpop.f32.mrf.mxu0  ;;  %v3784_v51 = vpop.f32.mrf.mxu1 }
 0x1af   : > { %v3899_v63 = vadd.f32 %v3784_v51, %v11373_v44 }
 0x1b0   : > { %v11469_v17 = vpop.f32.mrf.mxu0  ;;  %v9381_v20 = vpop.f32.mrf.mxu1 }
 0x1b1   : > { %v3902_v37 = vadd.f32 %v9381_v20, %v11376_v33 }
 0x1b2   : > { %v11472_v39 = vpop.f32.mrf.mxu0  ;;  %v3787_v55 = vpop.f32.mrf.mxu1 }
 0x1b3   : > { %v3900_v24 = vadd.f32 %v3787_v55, %v11379_v35 }
 0x1b4   : > { %v9428_v14 = vpop.f32.mrf.mxu0  ;;  %v9384_v50 = vpop.f32.mrf.mxu1 }
 0x1b5   : > { %v11476_v11 = vadd.f32 %v9428_v14, %v3901_v21  ;;  %v3905_v7 = vadd.f32 %v9384_v50, %v11382_v34 }
 0x1b6   : > { %v4235_v1 = vpop.f32.mrf.mxu0  ;;  %v3800_v38 = vpop.f32.mrf.mxu1 }
 0x1b7   : > { %v11479_v58 = vadd.f32 %v4235_v1, %v3899_v63  ;;  %v3903_v45 = vadd.f32 %v3800_v38, %v11385_v40 }
 0x1b8   : > { %v9429_v46 = vpop.f32.mrf.mxu0  ;;  %v9385_v33 = vpop.f32.mrf.mxu1 }
 0x1b9   : > { %v11482_v59 = vadd.f32 %v9429_v46, %v3902_v37  ;;  %v3906_v25 = vadd.f32 %v9385_v33, %v11396_v4 }
 0x1ba   : > { %v4238_v44 = vpop.f32.mrf.mxu0  ;;  %v3803_v35 = vpop.f32.mrf.mxu1 }
 0x1bb   : > { %v11485_v26 = vadd.f32 %v4238_v44, %v3900_v24  ;;  %v3904_v8 = vadd.f32 %v3803_v35, %v11401_v47 }
 0x1bc   : > { %v9432_v12 = vpop.f32.mrf.mxu0  ;;  %v9388_v34 = vpop.f32.mrf.mxu1 }
 0x1bd   : > { %v11488_v23 = vadd.f32 %v9432_v12, %v3905_v7  ;;  %v3909_v21 = vadd.f32 %v9388_v34, %v11403_v54 }
 0x1be   : > { %v4251_v48 = vpop.f32.mrf.mxu0  ;;  %v3816_v40 = vpop.f32.mrf.mxu1 }
 0x1bf   : > { %v11491_v27 = vadd.f32 %v4251_v48, %v3903_v45  ;;  %v3907_v20 = vadd.f32 %v3816_v40, %v11405_v13 }
 0x1c0   : > { %v9433_v31 = vpop.f32.mrf.mxu0  ;;  %v9389_v4 = vpop.f32.mrf.mxu1 }
 0x1c1   : > { %v11494_v51 = vadd.f32 %v9433_v31, %v3906_v25  ;;  %v3910_v55 = vadd.f32 %v9389_v4, %v11407_v28 }
 0x1c2   : > { %v4254_v63 = vpop.f32.mrf.mxu0  ;;  %v3819_v47 = vpop.f32.mrf.mxu1 }
 0x1c3   : > { %v11497_v14 = vadd.f32 %v4254_v63, %v3904_v8  ;;  %v3908_v50 = vadd.f32 %v3819_v47, %v11409_v29 }
 0x1c4   : > { %v9436_v37 = vpop.f32.mrf.mxu0  ;;  %v9392_v54 = vpop.f32.mrf.mxu1 }
 0x1c5   : > { %v11500_v1 = vadd.f32 %v9436_v37, %v3909_v21  ;;  %v3913_v38 = vadd.f32 %v9392_v54, %v11414_v56 }
 0x1c6   : > { %v4267_v24 = vpop.f32.mrf.mxu0  ;;  %v3832_v13 = vpop.f32.mrf.mxu1 }
 0x1c7   : > { %v11503_v46 = vadd.f32 %v4267_v24, %v3907_v20  ;;  %v3911_v33 = vadd.f32 %v3832_v13, %v11417_v53 }
 0x1c8   : > { %v9437_v7 = vpop.f32.mrf.mxu0  ;;  %v9393_v28 = vpop.f32.mrf.mxu1 }
 0x1c9   : > { %v11506_v44 = vadd.f32 %v9437_v7, %v3910_v55  ;;  %v3914_v35 = vadd.f32 %v9393_v28, %v11420_v3 }
 0x1ca   : > { %v4270_v45 = vpop.f32.mrf.mxu0  ;;  %v3835_v29 = vpop.f32.mrf.mxu1 }
 0x1cb   : > { %v11509_v12 = vadd.f32 %v4270_v45, %v3908_v50  ;;  %v3912_v34 = vadd.f32 %v3835_v29, %v11423_v52 }
 0x1cc   : > { %v9440_v25 = vpop.f32.mrf.mxu0  ;;  %v9396_v56 = vpop.f32.mrf.mxu1 }
 0x1cd   : > { %v11512_v48 = vadd.f32 %v9440_v25, %v3913_v38  ;;  %v3917_v40 = vadd.f32 %v9396_v56, %v11427_v62 }
 0x1ce   : > { %v4283_v8 = vpop.f32.mrf.mxu0  ;;  %v3848_v53 = vpop.f32.mrf.mxu1 }
 0x1cf   : > { %v11515_v31 = vadd.f32 %v4283_v8, %v3911_v33  ;;  %v3915_v4 = vadd.f32 %v3848_v53, %v11430_v60 }
 0x1d0   : > { %v9441_v21 = vpop.f32.mrf.mxu0  ;;  %v9397_v3 = vpop.f32.mrf.mxu1 }
 0x1d1   : > { %v11518_v63 = vadd.f32 %v9441_v21, %v3914_v35  ;;  %v3918_v47 = vadd.f32 %v9397_v3, %v11433_v15 }
 0x1d2   : > { %v4286_v20 = vpop.f32.mrf.mxu0  ;;  %v3851_v52 = vpop.f32.mrf.mxu1 }
 0x1d3   : > { %v11521_v37 = vadd.f32 %v4286_v20, %v3912_v34  ;;  %v3916_v54 = vadd.f32 %v3851_v52, %v11436_v36 }
 0x1d4   : > { %v9444_v55 = vpop.f32.mrf.mxu0 }
 0x1d5   : > { %v11524_v24 = vadd.f32 %v9444_v55, %v3917_v40 }
 0x1d6   : > { %v4299_v50 = vpop.f32.mrf.mxu0 }
 0x1d7   : > { %v11527_v7 = vadd.f32 %v4299_v50, %v3915_v4  ;;  %v9400_v62 = vpop.f32.mrf.mxu1  ;;  %v3895_v50 = vadd.f32 %v11457_v19, %v11345_v6  ;;  %v3896_v19 = vadd.f32 %v11465_v2, %v11367_v49 }
 0x1d8   : > { %v9445_v38 = vpop.f32.mrf.mxu0  ;;  %v3921_v13 = vadd.f32 %v9400_v62, %v11439_v43 }
 0x1d9   : > { %v11530_v45 = vadd.f32 %v9445_v38, %v3918_v47  ;;  %v3864_v60 = vpop.f32.mrf.mxu1  ;;  %v4346_v6 = vadd.f32 %v11467_v30, %v3895_v50  ;;  %v4347_v49 = vadd.f32 %v11472_v39, %v3896_v19 }
 0x1da   : > { %v4302_v33 = vpop.f32.mrf.mxu0  ;;  %v3919_v28 = vadd.f32 %v3864_v60, %v11442_v16 }
 0x1db   : > { %v11533_v25 = vadd.f32 %v4302_v33, %v3916_v54  ;;  %v9401_v15 = vpop.f32.mrf.mxu1  ;;  %v9795_v33 = vmov 1983009808  }
 0x1dc   : > { %v3922_v29 = vadd.f32 %v9401_v15, %v11445_v41  ;;  %v3897_v41 = vadd.f32 %v11453_v42, %v11342_v9  ;;  %v3898_v9 = vadd.f32 %v11461_v32, %v11358_v61 }
 0x1dd   : > { %v9448_v35 = vpop.f32.mrf.mxu0  ;;  %v3867_v36 = vpop.f32.mrf.mxu1 }
 0x1de   : > { %v11536_v8 = vadd.f32 %v9448_v35, %v3921_v13  ;;  %v3920_v56 = vadd.f32 %v3867_v36, %v11447_v57 }
 0x1df   : > { %v4315_v34 = vpop.f32.mrf.mxu0 }
 0x1e0   : > { %v11539_v21 = vadd.f32 %v4315_v34, %v3919_v28  ;;  %v6000_v28 = vlaneseq }
 0x1e1   : > { %v9449_v40 = vpop.f32.mrf.mxu0 }
 0x1e2   : > { %v11542_v20 = vadd.f32 %v9449_v40, %v3922_v29  ;;  %v4349_v29 = vadd.f32 %v11469_v17, %v3898_v9  ;;  %v6001_v30 = vshrl.u32 %v6000_v28, 7  ;;  %v11577_v17 = vld [vmem:[%s12226_s3] ss:$0 sm:$0xff] }
 0x1e3   : > { %v4318_v4 = vpop.f32.mrf.mxu0 }
 0x1e4   : > { %v11547_v55 = vadd.f32 %v4318_v4, %v3920_v56  ;;  %v11571_v56 = vld [vmem:[%s12225_s2] ss:$0 sm:$0xff] }
 0x1e5   : > { %v9404_v43 = vpop.f32.mrf.mxu1  ;;  %v9452_v52 = vpop.f32.mrf.mxu0 }
 0x1e6   : > { %v3925_v53 = vadd.f32 %v9404_v43, %v11449_v0 }
 0x1e7   : > { %v3880_v16 = vpop.f32.mrf.mxu1  ;;  %v4331_v62 = vpop.f32.mrf.mxu0 }
 0x1e8   : > { %v3923_v3 = vadd.f32 %v3880_v16, %v11451_v10  ;;  %v11552_v54 = vadd.f32 %v9452_v52, %v3925_v53  ;;  %v4348_v10 = vadd.f32 %v11463_v18, %v3897_v41 }
 0x1e9   : > { %v9405_v47 = vpop.f32.mrf.mxu1  ;;  %v9453_v60 = vpop.f32.mrf.mxu0 }
 0x1ea   : > { %v3926_v57 = vadd.f32 %v9405_v47, %v11455_v5  ;;  %v11558_v42 = vadd.f32 %v4331_v62, %v3923_v3  ;;  %v5998_v5 = vunpack.c.l.s4 %v9795_v33 }
 0x1eb   : > { %v3883_v0 = vpop.f32.mrf.mxu1  ;;  %v4334_v18 = vpop.f32.mrf.mxu0 }
 0x1ec   : > { %v3924_v38 = vadd.f32 %v3883_v0, %v11459_v22  ;;  %v11563_v15 = vadd.f32 %v9453_v60, %v3926_v57  ;;  %v5999_v43 = vunpack.c.0.s8 %v5998_v5 }
 0x1ed   : > { %v9472_v13 = vpop.f32.mrf.mxu1 }
 0x1ee   : > { %12309 = vst [vmem:[#allocation13_spill] sm:$0xff] %v11563_v15  ;;  %v5166_v22 = vadd.f32 %v9472_v13, %v4348_v10  ;;  %v11566_v61 = vadd.f32 %v4334_v18, %v3924_v38  ;;  %v11581_v50 = vsub.s32 %v5999_v43, %v6001_v30 }
 0x1ef   : > { %v5037_v35 = vpop.f32.mrf.mxu1 }
 0x1f0   : > { %12310 = vst [vmem:[#allocation14_spill] sm:$0xff] %v11566_v61  ;;  %v5164_v32 = vadd.f32 %v5037_v35, %v4346_v6 }
 0x1f1   : > { %v9473_v36 = vpop.f32.mrf.mxu1 }
 0x1f2   : > { %v5167_v40 = vadd.f32 %v9473_v36, %v4349_v29 }
 0x1f3   : > { %v9520_v34 = vpop.f32.mrf.mxu0  ;;  %v5040_v53 = vpop.f32.mrf.mxu1 }
 0x1f4   : > { %v5760_v2 = vadd.f32 %v9520_v34, %v5166_v22  ;;  %v5165_v41 = vadd.f32 %v5040_v53, %v4347_v49 }
 0x1f5   : > { %v5631_v16 = vpop.f32.mrf.mxu0  ;;  %v9476_v47 = vpop.f32.mrf.mxu1 }
 0x1f6   : > { %v5863_v4 = vmul.f32 %v11571_v56, %v5760_v2  ;;  %v5758_v3 = vadd.f32 %v5631_v16, %v5164_v32  ;;  %v5170_v10 = vadd.f32 %v9476_v47, %v11476_v11 }
 0x1f7   : > { %v9521_v52 = vpop.f32.mrf.mxu0  ;;  %v5053_v62 = vpop.f32.mrf.mxu1 }
 0x1f8   : > { %v5902_v57 = vadd.f32 %v11577_v17, %v5863_v4  ;;  %v5861_v39 = vmul.f32 %v11571_v56, %v5758_v3  ;;  %v5761_v0 = vadd.f32 %v9521_v52, %v5167_v40  ;;  %v11588_v28 = vadd.f32 %v5053_v62, %v11479_v58 }
 0x1f9   : > { %v5634_v38 = vpop.f32.mrf.mxu0  ;;  %v9477_v5 = vpop.f32.mrf.mxu1 }
 0x1fa   : > { %v5934_v9 = vmax.f32 %v5902_v57, 0.0  ;;  %v5900_v13 = vadd.f32 %v11577_v17, %v5861_v39  ;;  %v5864_v60 = vmul.f32 %v11571_v56, %v5761_v0  ;;  %v5759_v33 = vadd.f32 %v5634_v38, %v5165_v41 }
 0x1fb   : > { %v9524_v18 = vpop.f32.mrf.mxu0  ;;  %v5056_v29 = vpop.f32.mrf.mxu1  ;;  %v11596_v36 = vadd.f32 %v9477_v5, %v11482_v59 }
 0x1fc   : > { %v6030_v6 = vcombine.high %v5934_v9, %v5934_v9  ;;  %v6037_v19 = vrot.slane %v5934_v9, %v11581_v50  ;;  %v5932_v22 = vmax.f32 %v5900_v13, 0.0  ;;  %v5903_v35 = vadd.f32 %v11577_v17, %v5864_v60 }
 0x1fd   : > { %v5862_v11 = vmul.f32 %v11571_v56, %v5759_v33  ;;  %v11593_v32 = vadd.f32 %v9524_v18, %v5170_v10  ;;  %v11599_v34 = vadd.f32 %v5056_v29, %v11485_v26 }
 0x1fe   : > { %v6044_v58 = vrot.slane %v6030_v6, %v11581_v50  ;;  %v6045_v30 = vcombine.high %v6037_v19, %v6037_v19  ;;  %v6725_v49 = vsel %vm6668_vm6, %v6037_v19, -inf  ;;  %v5996_v2 = vcombine.high %v5932_v22, %v5932_v22 }
 0x1ff   : > { %v6726_v43 = vrot.slane %v6725_v49, 4  ;;  %v6003_v40 = vrot.slane %v5932_v22, %v11581_v50  ;;  %v5935_v53 = vmax.f32 %v5903_v35, 0.0  ;;  %v5901_v16 = vadd.f32 %v11577_v17, %v5862_v11 }
 0x200   : > { %v6046_v4 = vcombine.high %v6044_v58, %v6044_v58  ;;  %v6732_v3 = vsel %vm6668_vm6, %v6045_v30, -inf  ;;  %v6739_v59 = vsel %vm6668_vm6, %v6044_v58, -inf  ;;  %v6010_v26 = vrot.slane %v5996_v2, %v11581_v50 }
 0x201   : > { %v6727_v41 = vmax.f32 %v6725_v49, %v6726_v43  ;;  %v6733_v47 = vrot.slane %v6732_v3, 4  ;;  %v6740_v52 = vrot.slane %v6739_v59, 4  ;;  %v6011_v57 = vcombine.high %v6003_v40, %v6003_v40 }
 0x202   : > { %v6746_v39 = vsel %vm6668_vm6, %v6046_v4, -inf  ;;  %v6012_v0 = vcombine.high %v6010_v26, %v6010_v26  ;;  %v6669_v62 = vsel %vm6668_vm6, %v6003_v40, -inf  ;;  %v6683_v38 = vsel %vm6668_vm6, %v6010_v26, -inf }
 0x203   : > { %v6728_v10 = vrot.slane %v6727_v41, 2  ;;  %v6734_v9 = vmax.f32 %v6732_v3, %v6733_v47  ;;  %v6741_v13 = vmax.f32 %v6739_v59, %v6740_v52  ;;  %v6747_v60 = vrot.slane %v6746_v39, 4 }
 0x204   : > { %v6670_v33 = vrot.slane %v6669_v62, 4  ;;  %v6676_v5 = vsel %vm6668_vm6, %v6011_v57, -inf  ;;  %v6684_v6 = vrot.slane %v6683_v38, 4  ;;  %v6690_v19 = vsel %vm6668_vm6, %v6012_v0, -inf }
 0x205   : > { %v6729_v22 = vmax.f32 %v6727_v41, %v6728_v10  ;;  %v6735_v35 = vrot.slane %v6734_v9, 2  ;;  %v6742_v18 = vrot.slane %v6741_v13, 2  ;;  %v6748_v29 = vmax.f32 %v6746_v39, %v6747_v60 }
 0x206   : > { %v6671_v11 = vmax.f32 %v6669_v62, %v6670_v33  ;;  %v6677_v58 = vrot.slane %v6676_v5, 4  ;;  %v6685_v30 = vmax.f32 %v6683_v38, %v6684_v6  ;;  %v6691_v49 = vrot.slane %v6690_v19, 4 }
 0x207   : > { %v6730_v2 = vrot.slane %v6729_v22, 1  ;;  %v6736_v43 = vmax.f32 %v6734_v9, %v6735_v35  ;;  %v6743_v40 = vmax.f32 %v6741_v13, %v6742_v18  ;;  %v6749_v4 = vrot.slane %v6748_v29, 2 }
 0x208   : > { %v6672_v3 = vrot.slane %v6671_v11, 2  ;;  %v6678_v59 = vmax.f32 %v6676_v5, %v6677_v58  ;;  %v6686_v26 = vrot.slane %v6685_v30, 2  ;;  %v6692_v47 = vmax.f32 %v6690_v19, %v6691_v49 }
 0x209   : > { %v6731_v52 = vmax.f32 %v6729_v22, %v6730_v2  ;;  %v6737_v57 = vrot.slane %v6736_v43, 1  ;;  %v6744_v61 = vrot.slane %v6743_v40, 1  ;;  %v6750_v0 = vmax.f32 %v6748_v29, %v6749_v4 }
 0x20a   : > { %v6673_v41 = vmax.f32 %v6671_v11, %v6672_v3  ;;  %v6679_v10 = vrot.slane %v6678_v59, 2  ;;  %v6687_v15 = vmax.f32 %v6685_v30, %v6686_v26  ;;  %v6693_v39 = vrot.slane %v6692_v47, 2 }
 0x20b   : > { %v6738_v62 = vmax.f32 %v6736_v43, %v6737_v57  ;;  %v6745_v60 = vmax.f32 %v6743_v40, %v6744_v61  ;;  %v6751_v38 = vrot.slane %v6750_v0, 1  ;;  %v6047_v33 = vcombine.high %v5935_v53, %v5935_v53 }
 0x20c   : > { %v6674_v6 = vrot.slane %v6673_v41, 1  ;;  %v6680_v9 = vmax.f32 %v6678_v59, %v6679_v10  ;;  %v6688_v13 = vrot.slane %v6687_v15, 1  ;;  %v6694_v35 = vmax.f32 %v6692_v47, %v6693_v39 }
 0x20d   : > { %v6752_v18 = vmax.f32 %v6750_v0, %v6751_v38  ;;  %v6054_v5 = vrot.slane %v5935_v53, %v11581_v50  ;;  %v6061_v19 = vrot.slane %v6047_v33, %v11581_v50  ;;  %v5933_v22 = vmax.f32 %v5901_v16, 0.0 }
 0x20e   : > { %v6675_v29 = vmax.f32 %v6673_v41, %v6674_v6  ;;  %v6681_v11 = vrot.slane %v6680_v9, 1  ;;  %v6689_v58 = vmax.f32 %v6687_v15, %v6688_v13  ;;  %v6695_v30 = vrot.slane %v6694_v35, 1 }
 0x20f   : > { %v6062_v49 = vcombine.high %v6054_v5, %v6054_v5  ;;  %v6063_v61 = vcombine.high %v6061_v19, %v6061_v19  ;;  %v6753_v2 = vsel %vm6668_vm6, %v6054_v5, -inf  ;;  %v6767_v43 = vsel %vm6668_vm6, %v6061_v19, -inf }
 0x210   : > { %v6682_v40 = vmax.f32 %v6680_v9, %v6681_v11  ;;  %v6696_v4 = vmax.f32 %v6694_v35, %v6695_v30  ;;  %v7565_v3 = vmax.f32 %v6675_v29, %v6731_v52  ;;  %v7567_v59 = vmax.f32 %v6689_v58, %v6745_v60 }
 0x211   : > { %v6754_v26 = vrot.slane %v6753_v2, 4  ;;  %v6760_v53 = vsel %vm6668_vm6, %v6062_v49, -inf  ;;  %v6768_v47 = vrot.slane %v6767_v43, 4  ;;  %v6774_v16 = vsel %vm6668_vm6, %v6063_v61, -inf }
 0x212   : > { %v7566_v57 = vmax.f32 %v6682_v40, %v6738_v62  ;;  %v7568_v15 = vmax.f32 %v6696_v4, %v6752_v18  ;;  %v8837_v0 = vpack.c.bf16 %v7565_v3, %v7565_v3  ;;  %v8839_v41 = vpack.c.bf16 %v7567_v59, %v7567_v59 }
 0x213   : > { %v6755_v10 = vmax.f32 %v6753_v2, %v6754_v26  ;;  %v6761_v39 = vrot.slane %v6760_v53, 4  ;;  %v6769_v38 = vmax.f32 %v6767_v43, %v6768_v47  ;;  %v6775_v33 = vrot.slane %v6774_v16, 4  ;;  %v5647_v2 = vpop.f32.mrf.mxu0 }
 0x214   : > { %v8838_v6 = vpack.c.bf16 %v7566_v57, %v7566_v57  ;;  %v8840_v9 = vpack.c.bf16 %v7568_v15, %v7568_v15  ;;  %v7885_v13 = vunpack.c.l.b16 %v8837_v0  ;;  %v7887_v52 = vunpack.c.l.b16 %v8839_v41 }
 0x215   : > { %v6756_v60 = vrot.slane %v6755_v10, 2  ;;  %v6762_v35 = vmax.f32 %v6760_v53, %v6761_v39  ;;  %v6770_v5 = vrot.slane %v6769_v38, 2  ;;  %v6776_v19 = vmax.f32 %v6774_v16, %v6775_v33 }
 0x216   : > { %v7886_v29 = vunpack.c.l.b16 %v8838_v6  ;;  %v7888_v11 = vunpack.c.l.b16 %v8840_v9  ;;  %v6013_v58 = vcombine.high %v5933_v22, %v5933_v22  ;;  %v6020_v62 = vrot.slane %v5933_v22, %v11581_v50 }
 0x217   : > { %v6757_v18 = vmax.f32 %v6755_v10, %v6756_v60  ;;  %v6763_v30 = vrot.slane %v6762_v35, 2  ;;  %v6771_v49 = vmax.f32 %v6769_v38, %v6770_v5  ;;  %v6777_v61 = vrot.slane %v6776_v19, 2  ;;  %v9525_v38 = vpop.f32.mrf.mxu0 }
 0x218   : > { %v7950_v43 = vsel %vm7949_vm7, %v7886_v29, %v7885_v13  ;;  %v6027_v40 = vrot.slane %v6013_v58, %v11581_v50  ;;  %v6028_v4 = vcombine.high %v6020_v62, %v6020_v62  ;;  %v6697_v3 = vsel %vm6668_vm6, %v6020_v62, -inf }
 0x219   : > { %v7952_v59 = vsel %vm7951_vm8, %v7887_v52, %v7950_v43  ;;  %v6758_v26 = vrot.slane %v6757_v18, 1  ;;  %v6764_v53 = vmax.f32 %v6762_v35, %v6763_v30  ;;  %v6772_v47 = vrot.slane %v6771_v49, 1  ;;  %v5650_v43 = vpop.f32.mrf.mxu0 }
 0x21a   : > { %v6778_v16 = vmax.f32 %v6776_v19, %v6777_v61  ;;  %v6029_v57 = vcombine.high %v6027_v40, %v6027_v40  ;;  %v6698_v22 = vrot.slane %v6697_v3, 4  ;;  %v6704_v15 = vsel %vm6668_vm6, %v6028_v4, -inf }
 0x21b   : > { %v6759_v0 = vmax.f32 %v6757_v18, %v6758_v26  ;;  %v6765_v41 = vrot.slane %v6764_v53, 1  ;;  %v6773_v10 = vmax.f32 %v6771_v49, %v6772_v47  ;;  %v6705_v39 = vrot.slane %v6704_v15, 4 }
 0x21c   : > { %v6779_v33 = vrot.slane %v6778_v16, 1  ;;  %v6699_v6 = vmax.f32 %v6697_v3, %v6698_v22  ;;  %v6711_v9 = vsel %vm6668_vm6, %v6027_v40, -inf  ;;  %v6718_v13 = vsel %vm6668_vm6, %v6029_v57, -inf }
 0x21d   : > { %v6766_v52 = vmax.f32 %v6764_v53, %v6765_v41  ;;  %v6706_v60 = vmax.f32 %v6704_v15, %v6705_v39  ;;  %v6712_v35 = vrot.slane %v6711_v9, 4  ;;  %v6719_v5 = vrot.slane %v6718_v13, 4 }
 0x21e   : > { %v6780_v19 = vmax.f32 %v6778_v16, %v6779_v33  ;;  %v6700_v29 = vrot.slane %v6699_v6, 2  ;;  %v7954_v58 = vsel %vm7953_vm9, %v7888_v11, %v7952_v59  ;;  %v5867_v62 = vmul.f32 %v11571_v56, %v11593_v32 }
 0x21f   : > { %v6707_v18 = vrot.slane %v6706_v60, 2  ;;  %v6713_v30 = vmax.f32 %v6711_v9, %v6712_v35  ;;  %v6720_v49 = vmax.f32 %v6718_v13, %v6719_v5  ;;  %v5762_v61 = vadd.f32 %v5647_v2, %v11588_v28 }
 0x220   : > { %v6701_v40 = vmax.f32 %v6699_v6, %v6700_v29  ;;  %v5906_v4 = vadd.f32 %v11577_v17, %v5867_v62  ;;  %v5765_v3 = vadd.f32 %v9525_v38, %v11596_v36  ;;  %v5763_v26 = vadd.f32 %v5650_v43, %v11599_v34 }
 0x221   : > { %v6708_v53 = vmax.f32 %v6706_v60, %v6707_v18  ;;  %v6714_v47 = vrot.slane %v6713_v30, 2  ;;  %v6721_v16 = vrot.slane %v6720_v49, 2  ;;  %v5865_v11 = vmul.f32 %v11571_v56, %v5762_v61 }
 0x222   : > { %v6702_v32 = vrot.slane %v6701_v40, 1  ;;  %v5938_v59 = vmax.f32 %v5906_v4, 0.0  ;;  %v5868_v57 = vmul.f32 %v11571_v56, %v5765_v3  ;;  %v11637_v28 = vmul.f32 %v11571_v56, %v5763_v26 }
 0x223   : > { %v6709_v2 = vrot.slane %v6708_v53, 1  ;;  %v6715_v22 = vmax.f32 %v6713_v30, %v6714_v47  ;;  %v6722_v15 = vmax.f32 %v6720_v49, %v6721_v16  ;;  %v5904_v36 = vadd.f32 %v11577_v17, %v5865_v11 }
 0x224   : > { %v6703_v34 = vmax.f32 %v6701_v40, %v6702_v32  ;;  %v6098_v41 = vcombine.high %v5938_v59, %v5938_v59  ;;  %v6105_v39 = vrot.slane %v5938_v59, %v11581_v50  ;;  %v5907_v38 = vadd.f32 %v11577_v17, %v5868_v57 }
 0x225   : > { %v6710_v33 = vmax.f32 %v6708_v53, %v6709_v2  ;;  %v6716_v6 = vrot.slane %v6715_v22, 1  ;;  %v6723_v9 = vrot.slane %v6722_v15, 1  ;;  %v5936_v13 = vmax.f32 %v5904_v36, 0.0 }
 0x226   : > { %v7569_v60 = vmax.f32 %v6703_v34, %v6759_v0  ;;  %v6112_v35 = vrot.slane %v6098_v41, %v11581_v50  ;;  %v6113_v5 = vcombine.high %v6105_v39, %v6105_v39  ;;  %v6837_v29 = vsel %vm6668_vm6, %v6105_v39, -inf }
 0x227   : > { %v6717_v62 = vmax.f32 %v6715_v22, %v6716_v6  ;;  %v6724_v18 = vmax.f32 %v6722_v15, %v6723_v9  ;;  %v7570_v30 = vmax.f32 %v6710_v33, %v6766_v52  ;;  %v6838_v49 = vrot.slane %v6837_v29, 4 }
 0x228   : > { %v8841_v61 = vpack.c.bf16 %v7569_v60, %v7569_v60  ;;  %v6114_v43 = vcombine.high %v6112_v35, %v6112_v35  ;;  %v6844_v40 = vsel %vm6668_vm6, %v6113_v5, -inf  ;;  %v6851_v4 = vsel %vm6668_vm6, %v6112_v35, -inf }
 0x229   : > { %v7571_v3 = vmax.f32 %v6717_v62, %v6773_v10  ;;  %v7572_v26 = vmax.f32 %v6724_v18, %v6780_v19  ;;  %v8842_v0 = vpack.c.bf16 %v7570_v30, %v7570_v30  ;;  %v6839_v53 = vmax.f32 %v6837_v29, %v6838_v49 }
 0x22a   : > { %v7889_v47 = vunpack.c.l.b16 %v8841_v61  ;;  %v6845_v16 = vrot.slane %v6844_v40, 4  ;;  %v6852_v11 = vrot.slane %v6851_v4, 4  ;;  %v6858_v32 = vsel %vm6668_vm6, %v6114_v43, -inf }
 0x22b   : > { %v8843_v59 = vpack.c.bf16 %v7571_v3, %v7571_v3  ;;  %v8844_v52 = vpack.c.bf16 %v7572_v26, %v7572_v26  ;;  %v7890_v57 = vunpack.c.l.b16 %v8842_v0  ;;  %v6840_v2 = vrot.slane %v6839_v53, 2 }
 0x22c   : > { %v7956_v22 = vsel %vm7955_vm10, %v7889_v47, %v7954_v58  ;;  %v6846_v15 = vmax.f32 %v6844_v40, %v6845_v16  ;;  %v6853_v36 = vmax.f32 %v6851_v4, %v6852_v11  ;;  %v6859_v34 = vrot.slane %v6858_v32, 4 }
 0x22d   : > { %v7891_v10 = vunpack.c.l.b16 %v8843_v59  ;;  %v7892_v19 = vunpack.c.l.b16 %v8844_v52  ;;  %v7958_v41 = vsel %vm7957_vm11, %v7890_v57, %v7956_v22  ;;  %v6841_v39 = vmax.f32 %v6839_v53, %v6840_v2 }
 0x22e   : > { %v6847_v33 = vrot.slane %v6846_v15, 2  ;;  %v6854_v6 = vrot.slane %v6853_v36, 2  ;;  %v6860_v9 = vmax.f32 %v6858_v32, %v6859_v34  ;;  %v6064_v60 = vcombine.high %v5936_v13, %v5936_v13 }
 0x22f   : > { %v7960_v35 = vsel %vm7959_vm12, %v7891_v10, %v7958_v41  ;;  %v6842_v5 = vrot.slane %v6841_v39, 1  ;;  %v6071_v29 = vrot.slane %v5936_v13, %v11581_v50  ;;  %v5939_v58 = vmax.f32 %v5907_v38, 0.0 }
 0x230   : > { %v7962_v62 = vsel %vm7961_vm13, %v7892_v19, %v7960_v35  ;;  %v6848_v18 = vmax.f32 %v6846_v15, %v6847_v33  ;;  %v6855_v30 = vmax.f32 %v6853_v36, %v6854_v6  ;;  %v6861_v49 = vrot.slane %v6860_v9, 2 }
 0x231   : > { %v8012_v61 = vpack.c.b16 %v7962_v62, %v7962_v62  ;;  %v6843_v43 = vmax.f32 %v6841_v39, %v6842_v5  ;;  %v6078_v40 = vrot.slane %v6064_v60, %v11581_v50  ;;  %v6079_v4 = vcombine.high %v6071_v29, %v6071_v29 }
 0x232   : > { %v6849_v3 = vrot.slane %v6848_v18, 1  ;;  %v6856_v26 = vrot.slane %v6855_v30, 1  ;;  %v6862_v0 = vmax.f32 %v6860_v9, %v6861_v49  ;;  %v6781_v53 = vsel %vm6668_vm6, %v6071_v29, -inf }
 0x233   : > { %8028 = vst [vmem:[%s11657_s10] sm:$0xf] %v8012_v61  ;;  %v6080_v38 = vcombine.high %v6078_v40, %v6078_v40  ;;  %v6782_v13 = vrot.slane %v6781_v53, 4  ;;  %v6788_v47 = vsel %vm6668_vm6, %v6079_v4, -inf  ;;  %v6795_v16 = vsel %vm6668_vm6, %v6078_v40, -inf }
 0x234   : > { %v6850_v11 = vmax.f32 %v6848_v18, %v6849_v3  ;;  %v6857_v32 = vmax.f32 %v6855_v30, %v6856_v26  ;;  %v6863_v59 = vrot.slane %v6862_v0, 1  ;;  %v6789_v52 = vrot.slane %v6788_v47, 4 }
 0x235   : > { %v6783_v57 = vmax.f32 %v6781_v53, %v6782_v13  ;;  %v6796_v2 = vrot.slane %v6795_v16, 4  ;;  %v6802_v22 = vsel %vm6668_vm6, %v6080_v38, -inf  ;;  %v6115_v15 = vcombine.high %v5939_v58, %v5939_v58 }
 0x236   : > { %v6864_v36 = vmax.f32 %v6862_v0, %v6863_v59  ;;  %v6790_v34 = vmax.f32 %v6788_v47, %v6789_v52  ;;  %v6803_v10 = vrot.slane %v6802_v22, 4  ;;  %v6122_v19 = vrot.slane %v5939_v58, %v11581_v50 }
 0x237   : > { %v6784_v41 = vrot.slane %v6783_v57, 2  ;;  %v6797_v39 = vmax.f32 %v6795_v16, %v6796_v2  ;;  %v6129_v33 = vrot.slane %v6115_v15, %v11581_v50  ;;  %v5905_v6 = vadd.f32 %v11577_v17, %v11637_v28  ;;  %v9480_v28 = vpop.f32.mrf.mxu1 }
 0x238   : > { %v6791_v9 = vrot.slane %v6790_v34, 2  ;;  %v6804_v60 = vmax.f32 %v6802_v22, %v6803_v10  ;;  %v6130_v35 = vcombine.high %v6122_v19, %v6122_v19  ;;  %v6865_v5 = vsel %vm6668_vm6, %v6122_v19, -inf }
 0x239   : > { %v6785_v29 = vmax.f32 %v6783_v57, %v6784_v41  ;;  %v6798_v62 = vrot.slane %v6797_v39, 2  ;;  %v6131_v18 = vcombine.high %v6129_v33, %v6129_v33  ;;  %v6866_v30 = vrot.slane %v6865_v5, 4 }
 0x23a   : > { %v6792_v49 = vmax.f32 %v6790_v34, %v6791_v9  ;;  %v6805_v61 = vrot.slane %v6804_v60, 2  ;;  %v6872_v58 = vsel %vm6668_vm6, %v6130_v35, -inf  ;;  %v6879_v40 = vsel %vm6668_vm6, %v6129_v33, -inf  ;;  %v5069_v33 = vpop.f32.mrf.mxu1 }
 0x23b   : > { %v6786_v4 = vrot.slane %v6785_v29, 1  ;;  %v6799_v3 = vmax.f32 %v6797_v39, %v6798_v62  ;;  %v6867_v26 = vmax.f32 %v6865_v5, %v6866_v30  ;;  %v6873_v0 = vrot.slane %v6872_v58, 4  ;;  %v9528_v62 = vpop.f32.mrf.mxu0 }
 0x23c   : > { %v6793_v53 = vrot.slane %v6792_v49, 1  ;;  %v6806_v38 = vmax.f32 %v6804_v60, %v6805_v61  ;;  %v6880_v13 = vrot.slane %v6879_v40, 4  ;;  %v6886_v47 = vsel %vm6668_vm6, %v6131_v18, -inf }
 0x23d   : > { %v6787_v16 = vmax.f32 %v6785_v29, %v6786_v4  ;;  %v6800_v59 = vrot.slane %v6799_v3, 1  ;;  %v6868_v52 = vrot.slane %v6867_v26, 2  ;;  %v6874_v57 = vmax.f32 %v6872_v58, %v6873_v0 }
 0x23e   : > { %v6794_v2 = vmax.f32 %v6792_v49, %v6793_v53  ;;  %v6807_v22 = vrot.slane %v6806_v38, 1  ;;  %v6881_v15 = vmax.f32 %v6879_v40, %v6880_v13  ;;  %v6887_v34 = vrot.slane %v6886_v47, 4 }
 0x23f   : > { %v6801_v10 = vmax.f32 %v6799_v3, %v6800_v59  ;;  %v7573_v19 = vmax.f32 %v6787_v16, %v6843_v43  ;;  %v6869_v41 = vmax.f32 %v6867_v26, %v6868_v52  ;;  %v6875_v39 = vrot.slane %v6874_v57, 2  ;;  %v9481_v26 = vpop.f32.mrf.mxu1 }
 0x240   : > { %v6808_v9 = vmax.f32 %v6806_v38, %v6807_v22  ;;  %v7574_v35 = vmax.f32 %v6794_v2, %v6850_v11  ;;  %v6882_v5 = vrot.slane %v6881_v15, 2  ;;  %v6888_v60 = vmax.f32 %v6886_v47, %v6887_v34  ;;  %v5663_v47 = vpop.f32.mrf.mxu0 }
 0x241   : > { %v7575_v30 = vmax.f32 %v6801_v10, %v6857_v32  ;;  %v8845_v18 = vpack.c.bf16 %v7573_v19, %v7573_v19  ;;  %v6870_v29 = vrot.slane %v6869_v41, 1  ;;  %v6876_v61 = vmax.f32 %v6874_v57, %v6875_v39  ;;  %v5072_v39 = vpop.f32.mrf.mxu1 }
 0x242   : > { %v7576_v4 = vmax.f32 %v6808_v9, %v6864_v36  ;;  %v8846_v58 = vpack.c.bf16 %v7574_v35, %v7574_v35  ;;  %v6883_v49 = vmax.f32 %v6881_v15, %v6882_v5  ;;  %v6889_v0 = vrot.slane %v6888_v60, 2 }
 0x243   : > { %v8847_v40 = vpack.c.bf16 %v7575_v30, %v7575_v30  ;;  %v7893_v53 = vunpack.c.l.b16 %v8845_v18  ;;  %v11671_v3 = vmax.f32 %v6869_v41, %v6870_v29  ;;  %v6877_v43 = vrot.slane %v6876_v61, 1 }
 0x244   : > { %v8848_v13 = vpack.c.bf16 %v7576_v4, %v7576_v4  ;;  %v7894_v38 = vunpack.c.l.b16 %v8846_v58  ;;  %v6884_v11 = vrot.slane %v6883_v49, 1  ;;  %v6890_v16 = vmax.f32 %v6888_v60, %v6889_v0 }
 0x245   : > { %v7895_v59 = vunpack.c.l.b16 %v8847_v40  ;;  %v11673_v32 = vmax.f32 %v6876_v61, %v6877_v43  ;;  %v5937_v52 = vmax.f32 %v5905_v6, 0.0  ;;  %v5174_v36 = vadd.f32 %v9480_v28, %v11488_v23  ;;  %v9529_v28 = vpop.f32.mrf.mxu0 }
 0x246   : > { %v7896_v57 = vunpack.c.l.b16 %v8848_v13  ;;  %v7963_v2 = vsel %vm7949_vm7, %v7894_v38, %v7893_v53  ;;  %v11677_v22 = vmax.f32 %v6883_v49, %v6884_v11  ;;  %v6891_v15 = vrot.slane %v6890_v16, 1 }
 0x247   : > { %v7964_v34 = vsel %vm7951_vm8, %v7895_v59, %v7963_v2  ;;  %v6081_v10 = vcombine.high %v5937_v52, %v5937_v52  ;;  %v6088_v19 = vrot.slane %v5937_v52, %v11581_v50  ;;  %v5768_v41 = vadd.f32 %v9528_v62, %v5174_v36  ;;  %v5666_v43 = vpop.f32.mrf.mxu0 }
 0x248   : > { %v11681_v9 = vmax.f32 %v6890_v16, %v6891_v15  ;;  %v11684_v35 = vsel %vm7953_vm9, %v7896_v57, %v7964_v34  ;;  %v5172_v23 = vadd.f32 %v5069_v33, %v11491_v27  ;;  %v5175_v6 = vadd.f32 %v9481_v26, %v11494_v51 }
 0x249   : > { %v6095_v5 = vrot.slane %v6081_v10, %v11581_v50  ;;  %v6096_v60 = vcombine.high %v6088_v19, %v6088_v19  ;;  %v6809_v30 = vsel %vm6668_vm6, %v6088_v19, -inf  ;;  %v5871_v18 = vmul.f32 %v11571_v56, %v5768_v41 }
 0x24a   : > { %v6810_v29 = vrot.slane %v6809_v30, 4  ;;  %v5766_v62 = vadd.f32 %v5663_v47, %v5172_v23  ;;  %v5769_v61 = vadd.f32 %v9529_v28, %v5175_v6  ;;  %v5173_v4 = vadd.f32 %v5072_v39, %v11497_v14 }
 0x24b   : > { %v6097_v58 = vcombine.high %v6095_v5, %v6095_v5  ;;  %v6816_v49 = vsel %vm6668_vm6, %v6096_v60, -inf  ;;  %v6823_v27 = vsel %vm6668_vm6, %v6095_v5, -inf  ;;  %v5910_v51 = vadd.f32 %v11577_v17, %v5871_v18 }
 0x24c   : > { %v6811_v33 = vmax.f32 %v6809_v30, %v6810_v29  ;;  %v6817_v0 = vrot.slane %v6816_v49, 4  ;;  %v6824_v40 = vrot.slane %v6823_v27, 4  ;;  %v5869_v53 = vmul.f32 %v11571_v56, %v5766_v62 }
 0x24d   : > { %v6830_v26 = vsel %vm6668_vm6, %v6097_v58, -inf  ;;  %v5942_v13 = vmax.f32 %v5910_v51, 0.0  ;;  %v5872_v38 = vmul.f32 %v11571_v56, %v5769_v61  ;;  %v11698_v11 = vadd.f32 %v5666_v43, %v5173_v4 }
 0x24e   : > { %v6812_v14 = vrot.slane %v6811_v33, 2  ;;  %v6818_v16 = vmax.f32 %v6816_v49, %v6817_v0  ;;  %v6825_v47 = vmax.f32 %v6823_v27, %v6824_v40  ;;  %v6831_v59 = vrot.slane %v6830_v26, 4 }
 0x24f   : > { %v6166_v52 = vcombine.high %v5942_v13, %v5942_v13  ;;  %v6173_v36 = vrot.slane %v5942_v13, %v11581_v50  ;;  %v5908_v57 = vadd.f32 %v11577_v17, %v5869_v53  ;;  %v11703_v2 = vadd.f32 %v11577_v17, %v5872_v38 }
 0x250   : > { %v6813_v15 = vmax.f32 %v6811_v33, %v6812_v14  ;;  %v6819_v34 = vrot.slane %v6818_v16, 2  ;;  %v6826_v10 = vrot.slane %v6825_v47, 2  ;;  %v6832_v19 = vmax.f32 %v6830_v26, %v6831_v59 }
 0x251   : > { %v6180_v41 = vrot.slane %v6166_v52, %v11581_v50  ;;  %v6181_v39 = vcombine.high %v6173_v36, %v6173_v36  ;;  %v6949_v23 = vsel %vm6668_vm6, %v6173_v36, -inf  ;;  %v5940_v6 = vmax.f32 %v5908_v57, 0.0 }
 0x252   : > { %v6814_v28 = vrot.slane %v6813_v15, 1  ;;  %v6820_v5 = vmax.f32 %v6818_v16, %v6819_v34  ;;  %v6827_v60 = vmax.f32 %v6825_v47, %v6826_v10  ;;  %v6833_v30 = vrot.slane %v6832_v19, 2 }
 0x253   : > { %v6182_v18 = vcombine.high %v6180_v41, %v6180_v41  ;;  %v6950_v29 = vrot.slane %v6949_v23, 4  ;;  %v6956_v62 = vsel %vm6668_vm6, %v6181_v39, -inf  ;;  %v6963_v61 = vsel %vm6668_vm6, %v6180_v41, -inf }
 0x254   : > { %v6815_v4 = vmax.f32 %v6813_v15, %v6814_v28  ;;  %v6821_v58 = vrot.slane %v6820_v5, 1  ;;  %v6828_v49 = vrot.slane %v6827_v60, 1  ;;  %v6834_v27 = vmax.f32 %v6832_v19, %v6833_v30 }
 0x255   : > { %v6951_v51 = vmax.f32 %v6949_v23, %v6950_v29  ;;  %v6957_v33 = vrot.slane %v6956_v62, 4  ;;  %v6964_v0 = vrot.slane %v6963_v61, 4  ;;  %v6970_v40 = vsel %vm6668_vm6, %v6182_v18, -inf }
 0x256   : > { %v6822_v53 = vmax.f32 %v6820_v5, %v6821_v58  ;;  %v6829_v43 = vmax.f32 %v6827_v60, %v6828_v49  ;;  %v6835_v26 = vrot.slane %v6834_v27, 1  ;;  %v7577_v13 = vmax.f32 %v6815_v4, %v11671_v3 }
 0x257   : > { %v6952_v38 = vrot.slane %v6951_v51, 2  ;;  %v6958_v14 = vmax.f32 %v6956_v62, %v6957_v33  ;;  %v6965_v16 = vmax.f32 %v6963_v61, %v6964_v0  ;;  %v6971_v47 = vrot.slane %v6970_v40, 4 }
 0x258   : > { %v6836_v59 = vmax.f32 %v6834_v27, %v6835_v26  ;;  %v7578_v52 = vmax.f32 %v6822_v53, %v11673_v32  ;;  %v7579_v36 = vmax.f32 %v6829_v43, %v11677_v22  ;;  %v8849_v57 = vpack.c.bf16 %v7577_v13, %v7577_v13 }
 0x259   : > { %v6953_v15 = vmax.f32 %v6951_v51, %v6952_v38  ;;  %v6959_v34 = vrot.slane %v6958_v14, 2  ;;  %v6966_v10 = vrot.slane %v6965_v16, 2  ;;  %v6972_v19 = vmax.f32 %v6970_v40, %v6971_v47  ;;  %v9484_v47 = vpop.f32.mrf.mxu1 }
 0x25a   : > { %v7580_v41 = vmax.f32 %v6836_v59, %v11681_v9  ;;  %v8850_v39 = vpack.c.bf16 %v7578_v52, %v7578_v52  ;;  %v8851_v23 = vpack.c.bf16 %v7579_v36, %v7579_v36  ;;  %v7897_v28 = vunpack.c.l.b16 %v8849_v57 }
 0x25b   : > { %v6954_v3 = vrot.slane %v6953_v15, 1  ;;  %v6960_v5 = vmax.f32 %v6958_v14, %v6959_v34  ;;  %v6967_v60 = vmax.f32 %v6965_v16, %v6966_v10  ;;  %v6973_v30 = vrot.slane %v6972_v19, 2 }
 0x25c   : > { %v8852_v18 = vpack.c.bf16 %v7580_v41, %v7580_v41  ;;  %v7898_v29 = vunpack.c.l.b16 %v8850_v39  ;;  %v7899_v62 = vunpack.c.l.b16 %v8851_v23  ;;  %v7966_v32 = vsel %vm7955_vm10, %v7897_v28, %v11684_v35 }
 0x25d   : > { %v11716_v22 = vmax.f32 %v6953_v15, %v6954_v3  ;;  %v6961_v61 = vrot.slane %v6960_v5, 1  ;;  %v6968_v4 = vrot.slane %v6967_v60, 1  ;;  %v6974_v58 = vmax.f32 %v6972_v19, %v6973_v30 }
 0x25e   : > { %v7900_v49 = vunpack.c.l.b16 %v8852_v18  ;;  %v7967_v9 = vsel %vm7957_vm11, %v7898_v29, %v7966_v32  ;;  %v6132_v27 = vcombine.high %v5940_v6, %v5940_v6  ;;  %v6139_v51 = vrot.slane %v5940_v6, %v11581_v50 }
 0x25f   : > { %v7968_v33 = vsel %vm7959_vm12, %v7899_v62, %v7967_v9  ;;  %v11721_v0 = vmax.f32 %v6960_v5, %v6961_v61  ;;  %v11723_v40 = vmax.f32 %v6967_v60, %v6968_v4  ;;  %v6975_v53 = vrot.slane %v6974_v58, 1 }
 0x260   : > { %v7969_v35 = vsel %vm7961_vm13, %v7900_v49, %v7968_v33  ;;  %v6146_v43 = vrot.slane %v6132_v27, %v11581_v50  ;;  %v6147_v26 = vcombine.high %v6139_v51, %v6139_v51  ;;  %v6893_v13 = vsel %vm6668_vm6, %v6139_v51, -inf }
 0x261   : > { %v8013_v38 = vpack.c.b16 %v7969_v35, %v7969_v35  ;;  %v11728_v14 = vmax.f32 %v6974_v58, %v6975_v53  ;;  %v6894_v16 = vrot.slane %v6893_v13, 4  ;;  %v5943_v6 = vmax.f32 %v11703_v2, 0.0 }
 0x262   : > { %v6148_v59 = vcombine.high %v6146_v43, %v6146_v43  ;;  %v6900_v52 = vsel %vm6668_vm6, %v6147_v26, -inf  ;;  %v6907_v36 = vsel %vm6668_vm6, %v6146_v43, -inf  ;;  %v5870_v57 = vmul.f32 %v11571_v56, %v11698_v11 }
 0x263   : > { %8029 = vst [vmem:[%s11657_s10 + $0x4] sm:$0xf] %v8013_v38  ;;  %v6895_v15 = vmax.f32 %v6893_v13, %v6894_v16  ;;  %v6901_v34 = vrot.slane %v6900_v52, 4  ;;  %v6908_v10 = vrot.slane %v6907_v36, 4  ;;  %v6183_v19 = vcombine.high %v5943_v6, %v5943_v6 }
 0x264   : > { %v6914_v41 = vsel %vm6668_vm6, %v6148_v59, -inf  ;;  %v6190_v39 = vrot.slane %v5943_v6, %v11581_v50  ;;  %v5909_v2 = vadd.f32 %v11577_v17, %v5870_v57  ;;  %v11740_v23 = vadd.f32 %v9484_v47, %v11500_v1 }
 0x265   : > { %v6896_v28 = vrot.slane %v6895_v15, 2  ;;  %v6902_v3 = vmax.f32 %v6900_v52, %v6901_v34  ;;  %v6909_v5 = vmax.f32 %v6907_v36, %v6908_v10  ;;  %v6915_v60 = vrot.slane %v6914_v41, 4 }
 0x266   : > { %v6197_v56 = vrot.slane %v6183_v19, %v11581_v50  ;;  %v6198_v11 = vcombine.high %v6190_v39, %v6190_v39  ;;  %v6977_v30 = vsel %vm6668_vm6, %v6190_v39, -inf  ;;  %v11744_v18 = vmax.f32 %v5909_v2, 0.0 }
 0x267   : > { %v6897_v29 = vmax.f32 %v6895_v15, %v6896_v28  ;;  %v6903_v62 = vrot.slane %v6902_v3, 2  ;;  %v6910_v32 = vrot.slane %v6909_v5, 2  ;;  %v6916_v61 = vmax.f32 %v6914_v41, %v6915_v60 }
 0x268   : > { %v6199_v4 = vcombine.high %v6197_v56, %v6197_v56  ;;  %v6978_v17 = vrot.slane %v6977_v30, 4  ;;  %v6984_v1 = vsel %vm6668_vm6, %v6198_v11, -inf  ;;  %v6991_v58 = vsel %vm6668_vm6, %v6197_v56, -inf }
 0x269   : > { %v6898_v49 = vrot.slane %v6897_v29, 1  ;;  %v6904_v9 = vmax.f32 %v6902_v3, %v6903_v62  ;;  %v6911_v27 = vmax.f32 %v6909_v5, %v6910_v32  ;;  %v6917_v51 = vrot.slane %v6916_v61, 2  ;;  %v5085_v62 = vpop.f32.mrf.mxu1 }
 0x26a   : > { %v6979_v33 = vmax.f32 %v6977_v30, %v6978_v17  ;;  %v6985_v53 = vrot.slane %v6984_v1, 4  ;;  %v6992_v35 = vrot.slane %v6991_v58, 4  ;;  %v6998_v43 = vsel %vm6668_vm6, %v6199_v4, -inf }
 0x26b   : > { %v6899_v26 = vmax.f32 %v6897_v29, %v6898_v49  ;;  %v6905_v13 = vrot.slane %v6904_v9, 1  ;;  %v6912_v38 = vrot.slane %v6911_v27, 1  ;;  %v6918_v16 = vmax.f32 %v6916_v61, %v6917_v51  ;;  %v9532_v29 = vpop.f32.mrf.mxu0 }
 0x26c   : > { %v6980_v6 = vrot.slane %v6979_v33, 2  ;;  %v6986_v47 = vmax.f32 %v6984_v1, %v6985_v53  ;;  %v6993_v59 = vmax.f32 %v6991_v58, %v6992_v35  ;;  %v6999_v52 = vrot.slane %v6998_v43, 4 }
 0x26d   : > { %v6906_v36 = vmax.f32 %v6904_v9, %v6905_v13  ;;  %v6913_v57 = vmax.f32 %v6911_v27, %v6912_v38  ;;  %v6919_v15 = vrot.slane %v6918_v16, 1  ;;  %v7581_v34 = vmax.f32 %v6899_v26, %v11716_v22  ;;  %v5679_v35 = vpop.f32.mrf.mxu0 }
 0x26e   : > { %v6981_v10 = vmax.f32 %v6979_v33, %v6980_v6  ;;  %v6987_v19 = vrot.slane %v6986_v47, 2  ;;  %v6994_v41 = vrot.slane %v6993_v59, 2  ;;  %v7000_v39 = vmax.f32 %v6998_v43, %v6999_v52  ;;  %v9485_v43 = vpop.f32.mrf.mxu1 }
 0x26f   : > { %v6920_v2 = vmax.f32 %v6918_v16, %v6919_v15  ;;  %v7582_v28 = vmax.f32 %v6906_v36, %v11721_v0  ;;  %v7583_v3 = vmax.f32 %v6913_v57, %v11723_v40  ;;  %v8853_v5 = vpack.c.bf16 %v7581_v34, %v7581_v34 }
 0x270   : > { %v6982_v60 = vrot.slane %v6981_v10, 1  ;;  %v6988_v56 = vmax.f32 %v6986_v47, %v6987_v19  ;;  %v6995_v11 = vmax.f32 %v6993_v59, %v6994_v41  ;;  %v7001_v30 = vrot.slane %v7000_v39, 2 }
 0x271   : > { %v7584_v32 = vmax.f32 %v6920_v2, %v11728_v14  ;;  %v8854_v61 = vpack.c.bf16 %v7582_v28, %v7582_v28  ;;  %v8855_v22 = vpack.c.bf16 %v7583_v3, %v7583_v3  ;;  %v7901_v4 = vunpack.c.l.b16 %v8853_v5  ;;  %v5088_v2 = vpop.f32.mrf.mxu1 }
 0x272   : > { %v11753_v17 = vmax.f32 %v6981_v10, %v6982_v60  ;;  %v6989_v1 = vrot.slane %v6988_v56, 1  ;;  %v6996_v58 = vrot.slane %v6995_v11, 1  ;;  %v7002_v49 = vmax.f32 %v7000_v39, %v7001_v30  ;;  %v9533_v39 = vpop.f32.mrf.mxu0  ;;  %v11787_v30 = vld [vmem:[%s12226_s3] ss:$0 sm:$0xff] }
 0x273   : > { %v8856_v0 = vpack.c.bf16 %v7584_v32, %v7584_v32  ;;  %v7902_v9 = vunpack.c.l.b16 %v8854_v61  ;;  %v7903_v40 = vunpack.c.l.b16 %v8855_v22  ;;  %v6149_v27 = vcombine.high %v11744_v18, %v11744_v18 }
 0x274   : > { %v11757_v51 = vmax.f32 %v6988_v56, %v6989_v1  ;;  %v11759_v33 = vmax.f32 %v6995_v11, %v6996_v58  ;;  %v7003_v53 = vrot.slane %v7002_v49, 1  ;;  %v6156_v14 = vrot.slane %v11744_v18, %v11581_v50 }
 0x275   : > { %v7904_v26 = vunpack.c.l.b16 %v8856_v0  ;;  %v7970_v13 = vsel %vm7949_vm7, %v7902_v9, %v7901_v4  ;;  %v6163_v38 = vrot.slane %v6149_v27, %v11581_v50  ;;  %v5772_v16 = vadd.f32 %v9532_v29, %v11740_v23  ;;  %v11778_v23 = vld [vmem:[%s12225_s2] ss:$0 sm:$0xff] }
 0x276   : > { %v7971_v6 = vsel %vm7951_vm8, %v7903_v40, %v7970_v13  ;;  %v11767_v47 = vmax.f32 %v7002_v49, %v7003_v53  ;;  %v6164_v59 = vcombine.high %v6156_v14, %v6156_v14  ;;  %v6921_v52 = vsel %vm6668_vm6, %v6156_v14, -inf  ;;  %v5682_v49 = vpop.f32.mrf.mxu0 }
 0x277   : > { %v6165_v36 = vcombine.high %v6163_v38, %v6163_v38  ;;  %v6922_v57 = vrot.slane %v6921_v52, 4  ;;  %v6935_v18 = vsel %vm6668_vm6, %v6163_v38, -inf  ;;  %v11772_v15 = vsel %vm7953_vm9, %v7904_v26, %v7971_v6 }
 0x278   : > { %v6928_v34 = vsel %vm6668_vm6, %v6164_v59, -inf  ;;  %v6936_v10 = vrot.slane %v6935_v18, 4  ;;  %v5875_v19 = vmul.f32 %v11778_v23, %v5772_v16  ;;  %v5176_v41 = vadd.f32 %v5085_v62, %v11503_v46 }
 0x279   : > { %v6923_v28 = vmax.f32 %v6921_v52, %v6922_v57  ;;  %v6929_v3 = vrot.slane %v6928_v34, 4  ;;  %v6942_v5 = vsel %vm6668_vm6, %v6165_v36, -inf  ;;  %v5179_v60 = vadd.f32 %v9485_v43, %v11506_v44 }
 0x27a   : > { %v6937_v56 = vmax.f32 %v6935_v18, %v6936_v10  ;;  %v6943_v11 = vrot.slane %v6942_v5, 4  ;;  %v5914_v29 = vadd.f32 %v11787_v30, %v5875_v19  ;;  %v5770_v32 = vadd.f32 %v5679_v35, %v5176_v41 }
 0x27b   : > { %v6924_v61 = vrot.slane %v6923_v28, 2  ;;  %v6930_v46 = vmax.f32 %v6928_v34, %v6929_v3  ;;  %v5773_v62 = vadd.f32 %v9533_v39, %v5179_v60  ;;  %v5177_v22 = vadd.f32 %v5088_v2, %v11509_v12 }
 0x27c   : > { %v6938_v4 = vrot.slane %v6937_v56, 2  ;;  %v6944_v1 = vmax.f32 %v6942_v5, %v6943_v11  ;;  %v5946_v58 = vmax.f32 %v5914_v29, 0.0  ;;  %v5873_v44 = vmul.f32 %v11778_v23, %v5770_v32 }
 0x27d   : > { %v6925_v0 = vmax.f32 %v6923_v28, %v6924_v61  ;;  %v6931_v9 = vrot.slane %v6930_v46, 2  ;;  %v5876_v40 = vmul.f32 %v11778_v23, %v5773_v62  ;;  %v11793_v27 = vadd.f32 %v5682_v49, %v5177_v22 }
 0x27e   : > { %v6939_v53 = vmax.f32 %v6937_v56, %v6938_v4  ;;  %v6945_v14 = vrot.slane %v6944_v1, 2  ;;  %v6234_v35 = vcombine.high %v5946_v58, %v5946_v58  ;;  %v6241_v43 = vrot.slane %v5946_v58, %v11581_v50 }
 0x27f   : > { %v6926_v26 = vrot.slane %v6925_v0, 1  ;;  %v6932_v13 = vmax.f32 %v6930_v46, %v6931_v9  ;;  %v5912_v12 = vadd.f32 %v11787_v30, %v5873_v44  ;;  %v11798_v38 = vadd.f32 %v11787_v30, %v5876_v40 }
 0x280   : > { %v6940_v16 = vrot.slane %v6939_v53, 1  ;;  %v6946_v6 = vmax.f32 %v6944_v1, %v6945_v14  ;;  %v6248_v59 = vrot.slane %v6234_v35, %v11581_v50  ;;  %v6249_v52 = vcombine.high %v6241_v43, %v6241_v43 }
 0x281   : > { %v6927_v36 = vmax.f32 %v6925_v0, %v6926_v26  ;;  %v6933_v57 = vrot.slane %v6932_v13, 1  ;;  %v7061_v18 = vsel %vm6668_vm6, %v6241_v43, -inf  ;;  %v5944_v34 = vmax.f32 %v5912_v12, 0.0 }
 0x282   : > { %v6941_v10 = vmax.f32 %v6939_v53, %v6940_v16  ;;  %v6947_v19 = vrot.slane %v6946_v6, 1  ;;  %v6250_v41 = vcombine.high %v6248_v59, %v6248_v59  ;;  %v7062_v39 = vrot.slane %v7061_v18, 4 }
 0x283   : > { %v6934_v2 = vmax.f32 %v6932_v13, %v6933_v57  ;;  %v7585_v28 = vmax.f32 %v6927_v36, %v11753_v17  ;;  %v7068_v3 = vsel %vm6668_vm6, %v6249_v52, -inf  ;;  %v7075_v5 = vsel %vm6668_vm6, %v6248_v59, -inf }
 0x284   : > { %v6948_v60 = vmax.f32 %v6946_v6, %v6947_v19  ;;  %v7587_v56 = vmax.f32 %v6941_v10, %v11759_v33  ;;  %v7063_v11 = vmax.f32 %v7061_v18, %v7062_v39  ;;  %v7069_v29 = vrot.slane %v7068_v3, 4 }
 0x285   : > { %v7586_v32 = vmax.f32 %v6934_v2, %v11757_v51  ;;  %v8857_v61 = vpack.c.bf16 %v7585_v28, %v7585_v28  ;;  %v7076_v46 = vrot.slane %v7075_v5, 4  ;;  %v7082_v62 = vsel %vm6668_vm6, %v6250_v41, -inf }
 0x286   : > { %v7588_v22 = vmax.f32 %v6948_v60, %v11767_v47  ;;  %v8859_v4 = vpack.c.bf16 %v7587_v56, %v7587_v56  ;;  %v7064_v1 = vrot.slane %v7063_v11, 2  ;;  %v7070_v17 = vmax.f32 %v7068_v3, %v7069_v29 }
 0x287   : > { %v8858_v58 = vpack.c.bf16 %v7586_v32, %v7586_v32  ;;  %v7905_v44 = vunpack.c.l.b16 %v8857_v61  ;;  %v7077_v49 = vmax.f32 %v7075_v5, %v7076_v46  ;;  %v7083_v0 = vrot.slane %v7082_v62, 4 }
 0x288   : > { %v8860_v9 = vpack.c.bf16 %v7588_v22, %v7588_v22  ;;  %v7907_v40 = vunpack.c.l.b16 %v8859_v4  ;;  %v7065_v33 = vmax.f32 %v7063_v11, %v7064_v1  ;;  %v7071_v53 = vrot.slane %v7070_v17, 2 }
 0x289   : > { %v7906_v14 = vunpack.c.l.b16 %v8858_v58  ;;  %v7973_v51 = vsel %vm7955_vm10, %v7905_v44, %v11772_v15  ;;  %v7078_v35 = vrot.slane %v7077_v49, 2  ;;  %v7084_v43 = vmax.f32 %v7082_v62, %v7083_v0  ;;  %v9488_v62 = vpop.f32.mrf.mxu1 }
 0x28a   : > { %v7908_v26 = vunpack.c.l.b16 %v8860_v9  ;;  %v7066_v13 = vrot.slane %v7065_v33, 1  ;;  %v7072_v47 = vmax.f32 %v7070_v17, %v7071_v53  ;;  %v6200_v12 = vcombine.high %v5944_v34, %v5944_v34 }
 0x28b   : > { %v7974_v16 = vsel %vm7957_vm11, %v7906_v14, %v7973_v51  ;;  %v7079_v6 = vmax.f32 %v7077_v49, %v7078_v35  ;;  %v7085_v59 = vrot.slane %v7084_v43, 2  ;;  %v6207_v52 = vrot.slane %v5944_v34, %v11581_v50 }
 0x28c   : > { %v7975_v36 = vsel %vm7959_vm12, %v7907_v40, %v7974_v16  ;;  %v11814_v57 = vmax.f32 %v7065_v33, %v7066_v13  ;;  %v7073_v18 = vrot.slane %v7072_v47, 1  ;;  %v6214_v15 = vrot.slane %v6200_v12, %v11581_v50 }
 0x28d   : > { %v7976_v10 = vsel %vm7961_vm13, %v7908_v26, %v7975_v36  ;;  %v7080_v19 = vrot.slane %v7079_v6, 1  ;;  %v7086_v41 = vmax.f32 %v7084_v43, %v7085_v59  ;;  %v6215_v39 = vcombine.high %v6207_v52, %v6207_v52 }
 0x28e   : > { %v8014_v2 = vpack.c.b16 %v7976_v10, %v7976_v10  ;;  %v7074_v28 = vmax.f32 %v7072_v47, %v7073_v18  ;;  %v6216_v3 = vcombine.high %v6214_v15, %v6214_v15  ;;  %v7005_v5 = vsel %vm6668_vm6, %v6207_v52, -inf  ;;  %v5101_v18 = vpop.f32.mrf.mxu1 }
 0x28f   : > { %v7081_v60 = vmax.f32 %v7079_v6, %v7080_v19  ;;  %v7087_v34 = vrot.slane %v7086_v41, 1  ;;  %v7006_v56 = vrot.slane %v7005_v5, 4  ;;  %v7012_v11 = vsel %vm6668_vm6, %v6215_v39, -inf }
 0x290   : > { %8030 = vst [vmem:[%s11657_s10 + $0x8] sm:$0xf] %v8014_v2  ;;  %v7013_v29 = vrot.slane %v7012_v11, 4  ;;  %v7019_v32 = vsel %vm6668_vm6, %v6214_v15, -inf  ;;  %v7026_v61 = vsel %vm6668_vm6, %v6216_v3, -inf  ;;  %v5947_v46 = vmax.f32 %v11798_v38, 0.0 }
 0x291   : > { %v7088_v22 = vmax.f32 %v7086_v41, %v7087_v34  ;;  %v7007_v4 = vmax.f32 %v7005_v5, %v7006_v56  ;;  %v7020_v1 = vrot.slane %v7019_v32, 4  ;;  %v7027_v17 = vrot.slane %v7026_v61, 4  ;;  %v9536_v34 = vpop.f32.mrf.mxu0 }
 0x292   : > { %v7014_v58 = vmax.f32 %v7012_v11, %v7013_v29  ;;  %v6251_v44 = vcombine.high %v5947_v46, %v5947_v46  ;;  %v6258_v49 = vrot.slane %v5947_v46, %v11581_v50  ;;  %v11827_v0 = vmul.f32 %v11778_v23, %v11793_v27 }
 0x293   : > { %v7008_v9 = vrot.slane %v7007_v4, 2  ;;  %v7021_v40 = vmax.f32 %v7019_v32, %v7020_v1  ;;  %v7028_v33 = vmax.f32 %v7026_v61, %v7027_v17  ;;  %v5182_v53 = vadd.f32 %v9488_v62, %v11512_v48  ;;  %v9489_v1 = vpop.f32.mrf.mxu1 }
 0x294   : > { %v7015_v14 = vrot.slane %v7014_v58, 2  ;;  %v6265_v38 = vrot.slane %v6251_v44, %v11581_v50  ;;  %v6266_v51 = vcombine.high %v6258_v49, %v6258_v49  ;;  %v7089_v35 = vsel %vm6668_vm6, %v6258_v49, -inf }
 0x295   : > { %v7009_v43 = vmax.f32 %v7007_v4, %v7008_v9  ;;  %v7022_v26 = vrot.slane %v7021_v40, 2  ;;  %v7029_v13 = vrot.slane %v7028_v33, 2  ;;  %v7090_v47 = vrot.slane %v7089_v35, 4 }
 0x296   : > { %v7016_v12 = vmax.f32 %v7014_v58, %v7015_v14  ;;  %v6267_v16 = vcombine.high %v6265_v38, %v6265_v38  ;;  %v7096_v27 = vsel %vm6668_vm6, %v6266_v51, -inf  ;;  %v7103_v6 = vsel %vm6668_vm6, %v6265_v38, -inf  ;;  %v5695_v38 = vpop.f32.mrf.mxu0 }
 0x297   : > { %v7010_v59 = vrot.slane %v7009_v43, 1  ;;  %v7023_v52 = vmax.f32 %v7021_v40, %v7022_v26  ;;  %v7030_v36 = vmax.f32 %v7028_v33, %v7029_v13  ;;  %v7091_v48 = vmax.f32 %v7089_v35, %v7090_v47 }
 0x298   : > { %v7017_v15 = vrot.slane %v7016_v12, 1  ;;  %v7097_v10 = vrot.slane %v7096_v27, 4  ;;  %v7104_v19 = vrot.slane %v7103_v6, 4  ;;  %v7110_v41 = vsel %vm6668_vm6, %v6267_v16, -inf  ;;  %v5104_v16 = vpop.f32.mrf.mxu1 }
 0x299   : > { %v7011_v39 = vmax.f32 %v7009_v43, %v7010_v59  ;;  %v7024_v2 = vrot.slane %v7023_v52, 1  ;;  %v7031_v3 = vrot.slane %v7030_v36, 1  ;;  %v7092_v5 = vrot.slane %v7091_v48, 2 }
 0x29a   : > { %v7018_v56 = vmax.f32 %v7016_v12, %v7017_v15  ;;  %v7098_v11 = vmax.f32 %v7096_v27, %v7097_v10  ;;  %v7105_v29 = vmax.f32 %v7103_v6, %v7104_v19  ;;  %v7111_v32 = vrot.slane %v7110_v41, 4 }
 0x29b   : > { %v7025_v61 = vmax.f32 %v7023_v52, %v7024_v2  ;;  %v7032_v46 = vmax.f32 %v7030_v36, %v7031_v3  ;;  %v7589_v62 = vmax.f32 %v7011_v39, %v11814_v57  ;;  %v7093_v4 = vmax.f32 %v7091_v48, %v7092_v5  ;;  %v9537_v36 = vpop.f32.mrf.mxu0  ;;  %v9492_v5 = vpop.f32.mrf.mxu1 }
 0x29c   : > { %v7590_v17 = vmax.f32 %v7018_v56, %v7074_v28  ;;  %v7099_v58 = vrot.slane %v7098_v11, 2  ;;  %v7106_v44 = vrot.slane %v7105_v29, 2  ;;  %v7112_v49 = vmax.f32 %v7110_v41, %v7111_v32 }
 0x29d   : > { %v7591_v9 = vmax.f32 %v7025_v61, %v7081_v60  ;;  %v7592_v40 = vmax.f32 %v7032_v46, %v7088_v22  ;;  %v8861_v33 = vpack.c.bf16 %v7589_v62, %v7589_v62  ;;  %v7094_v14 = vrot.slane %v7093_v4, 1  ;;  %v5698_v46 = vpop.f32.mrf.mxu0 }
 0x29e   : > { %v8862_v51 = vpack.c.bf16 %v7590_v17, %v7590_v17  ;;  %v7100_v35 = vmax.f32 %v7098_v11, %v7099_v58  ;;  %v7107_v43 = vmax.f32 %v7105_v29, %v7106_v44  ;;  %v7113_v26 = vrot.slane %v7112_v49, 2 }
 0x29f   : > { %v8863_v13 = vpack.c.bf16 %v7591_v9, %v7591_v9  ;;  %v8864_v47 = vpack.c.bf16 %v7592_v40, %v7592_v40  ;;  %v7909_v12 = vunpack.c.l.b16 %v8861_v33  ;;  %v5913_v60 = vadd.f32 %v11787_v30, %v11827_v0 }
 0x2a0   : > { %v7910_v57 = vunpack.c.l.b16 %v8862_v51  ;;  %v7101_v27 = vrot.slane %v7100_v35, 1  ;;  %v7108_v6 = vrot.slane %v7107_v43, 1  ;;  %v7114_v28 = vmax.f32 %v7112_v49, %v7113_v26 }
 0x2a1   : > { %v7911_v59 = vunpack.c.l.b16 %v8863_v13  ;;  %v7912_v52 = vunpack.c.l.b16 %v8864_v47  ;;  %v5776_v22 = vadd.f32 %v9536_v34, %v5182_v53  ;;  %v11839_v15 = vmax.f32 %v7093_v4, %v7094_v14 }
 0x2a2   : > { %v7977_v48 = vsel %vm7949_vm7, %v7910_v57, %v7909_v12  ;;  %v11841_v10 = vmax.f32 %v7100_v35, %v7101_v27  ;;  %v7115_v19 = vrot.slane %v7114_v28, 1  ;;  %v5945_v39 = vmax.f32 %v5913_v60, 0.0 }
 0x2a3   : > { %v7978_v41 = vsel %vm7951_vm8, %v7911_v59, %v7977_v48  ;;  %v5879_v2 = vmul.f32 %v11778_v23, %v5776_v22  ;;  %v5180_v3 = vadd.f32 %v5101_v18, %v11515_v31  ;;  %v11846_v56 = vmax.f32 %v7107_v43, %v7108_v6 }
 0x2a4   : > { %v11849_v0 = vsel %vm7953_vm9, %v7912_v52, %v7978_v41  ;;  %v5183_v53 = vadd.f32 %v9489_v1, %v11518_v63  ;;  %v5181_v34 = vadd.f32 %v5104_v16, %v11521_v37  ;;  %v6217_v11 = vcombine.high %v5945_v39, %v5945_v39 }
 0x2a5   : > { %v6224_v29 = vrot.slane %v5945_v39, %v11581_v50  ;;  %v5918_v32 = vadd.f32 %v11787_v30, %v5879_v2  ;;  %v5774_v61 = vadd.f32 %v5695_v38, %v5180_v3  ;;  %v11855_v62 = vmax.f32 %v7114_v28, %v7115_v19 }
 0x2a6   : > { %v5777_v31 = vadd.f32 %v9537_v36, %v5183_v53  ;;  %v5775_v18 = vadd.f32 %v5698_v46, %v5181_v34  ;;  %v11858_v4 = vadd.f32 %v9492_v5, %v11524_v24  ;;  %v6231_v17 = vrot.slane %v6217_v11, %v11581_v50 }
 0x2a7   : > { %v6232_v58 = vcombine.high %v6224_v29, %v6224_v29  ;;  %v7033_v63 = vsel %vm6668_vm6, %v6224_v29, -inf  ;;  %v5950_v37 = vmax.f32 %v5918_v32, 0.0  ;;  %v5877_v44 = vmul.f32 %v11778_v23, %v5774_v61 }
 0x2a8   : > { %v7034_v1 = vrot.slane %v7033_v63, 4  ;;  %v5880_v49 = vmul.f32 %v11778_v23, %v5777_v31  ;;  %v11865_v9 = vmul.f32 %v11778_v23, %v5775_v18  ;;  %v6233_v40 = vcombine.high %v6231_v17, %v6231_v17 }
 0x2a9   : > { %v7040_v33 = vsel %vm6668_vm6, %v6232_v58, -inf  ;;  %v7047_v24 = vsel %vm6668_vm6, %v6231_v17, -inf  ;;  %v6302_v14 = vcombine.high %v5950_v37, %v5950_v37  ;;  %v6309_v43 = vrot.slane %v5950_v37, %v11581_v50 }
 0x2aa   : > { %v7035_v38 = vmax.f32 %v7033_v63, %v7034_v1  ;;  %v7041_v51 = vrot.slane %v7040_v33, 4  ;;  %v7048_v35 = vrot.slane %v7047_v24, 4  ;;  %v7054_v26 = vsel %vm6668_vm6, %v6233_v40, -inf }
 0x2ab   : > { %v6316_v13 = vrot.slane %v6302_v14, %v11581_v50  ;;  %v11873_v47 = vadd.f32 %v11787_v30, %v5877_v44  ;;  %v11876_v12 = vadd.f32 %v11787_v30, %v5880_v49  ;;  %v7055_v6 = vrot.slane %v7054_v26, 4 }
 0x2ac   : > { %v7036_v16 = vrot.slane %v7035_v38, 2  ;;  %v7042_v57 = vmax.f32 %v7040_v33, %v7041_v51  ;;  %v7049_v27 = vmax.f32 %v7047_v24, %v7048_v35  ;;  %v6317_v28 = vcombine.high %v6309_v43, %v6309_v43 }
 0x2ad   : > { %v6318_v59 = vcombine.high %v6316_v13, %v6316_v13  ;;  %v7173_v52 = vsel %vm6668_vm6, %v6309_v43, -inf  ;;  %v7187_v60 = vsel %vm6668_vm6, %v6316_v13, -inf  ;;  %v7056_v19 = vmax.f32 %v7054_v26, %v7055_v6 }
 0x2ae   : > { %v7037_v22 = vmax.f32 %v7035_v38, %v7036_v16  ;;  %v7043_v36 = vrot.slane %v7042_v57, 2  ;;  %v7050_v48 = vrot.slane %v7049_v27, 2  ;;  %v7174_v41 = vrot.slane %v7173_v52, 4 }
 0x2af   : > { %v7180_v39 = vsel %vm6668_vm6, %v6317_v28, -inf  ;;  %v7188_v2 = vrot.slane %v7187_v60, 4  ;;  %v7194_v3 = vsel %vm6668_vm6, %v6318_v59, -inf  ;;  %v7057_v11 = vrot.slane %v7056_v19, 2 }
 0x2b0   : > { %v7038_v5 = vrot.slane %v7037_v22, 1  ;;  %v7044_v53 = vmax.f32 %v7042_v57, %v7043_v36  ;;  %v7051_v34 = vmax.f32 %v7049_v27, %v7050_v48  ;;  %v7175_v29 = vmax.f32 %v7173_v52, %v7174_v41  ;;  %v5117_v57 = vpop.f32.mrf.mxu1 }
 0x2b1   : > { %v7181_v32 = vrot.slane %v7180_v39, 4  ;;  %v7189_v61 = vmax.f32 %v7187_v60, %v7188_v2  ;;  %v7195_v46 = vrot.slane %v7194_v3, 4  ;;  %v7058_v58 = vmax.f32 %v7056_v19, %v7057_v11 }
 0x2b2   : > { %v7039_v31 = vmax.f32 %v7037_v22, %v7038_v5  ;;  %v7045_v18 = vrot.slane %v7044_v53, 1  ;;  %v7052_v17 = vrot.slane %v7051_v34, 1  ;;  %v7176_v63 = vrot.slane %v7175_v29, 2 }
 0x2b3   : > { %v7182_v37 = vmax.f32 %v7180_v39, %v7181_v32  ;;  %v7190_v1 = vrot.slane %v7189_v61, 2  ;;  %v7196_v44 = vmax.f32 %v7194_v3, %v7195_v46  ;;  %v7059_v33 = vrot.slane %v7058_v58, 1 }
 0x2b4   : > { %v7046_v49 = vmax.f32 %v7044_v53, %v7045_v18  ;;  %v7053_v40 = vmax.f32 %v7051_v34, %v7052_v17  ;;  %v7593_v24 = vmax.f32 %v7039_v31, %v11839_v15  ;;  %v7177_v14 = vmax.f32 %v7175_v29, %v7176_v63  ;;  %v9540_v31 = vpop.f32.mrf.mxu0 }
 0x2b5   : > { %v7183_v38 = vrot.slane %v7182_v37, 2  ;;  %v7191_v51 = vmax.f32 %v7189_v61, %v7190_v1  ;;  %v7197_v35 = vrot.slane %v7196_v44, 2  ;;  %v7060_v43 = vmax.f32 %v7058_v58, %v7059_v33 }
 0x2b6   : > { %v7594_v26 = vmax.f32 %v7046_v49, %v11841_v10  ;;  %v7595_v13 = vmax.f32 %v7053_v40, %v11846_v56  ;;  %v8865_v16 = vpack.c.bf16 %v7593_v24, %v7593_v24  ;;  %v7178_v27 = vrot.slane %v7177_v14, 1 }
 0x2b7   : > { %v7184_v6 = vmax.f32 %v7182_v37, %v7183_v38  ;;  %v7192_v28 = vrot.slane %v7191_v51, 1  ;;  %v7198_v59 = vmax.f32 %v7196_v44, %v7197_v35  ;;  %v7596_v52 = vmax.f32 %v7060_v43, %v11855_v62 }
 0x2b8   : > { %v8866_v60 = vpack.c.bf16 %v7594_v26, %v7594_v26  ;;  %v8867_v22 = vpack.c.bf16 %v7595_v13, %v7595_v13  ;;  %v7913_v15 = vunpack.c.l.b16 %v8865_v16  ;;  %v11886_v36 = vmax.f32 %v7177_v14, %v7178_v27 }
 0x2b9   : > { %v7185_v48 = vrot.slane %v7184_v6, 1  ;;  %v7199_v19 = vrot.slane %v7198_v59, 1  ;;  %v11889_v41 = vadd.f32 %v5117_v57, %v11527_v7  ;;  %v8868_v10 = vpack.c.bf16 %v7596_v52, %v7596_v52 }
 0x2ba   : > { %v7914_v56 = vunpack.c.l.b16 %v8866_v60  ;;  %v7915_v39 = vunpack.c.l.b16 %v8867_v22  ;;  %v7980_v2 = vsel %vm7955_vm10, %v7913_v15, %v11849_v0  ;;  %v11895_v5 = vmax.f32 %v7191_v51, %v7192_v28 }
 0x2bb   : > { %v11893_v3 = vmax.f32 %v7184_v6, %v7185_v48  ;;  %v5948_v62 = vmax.f32 %v11873_v47, 0.0  ;;  %v5951_v53 = vmax.f32 %v11876_v12, 0.0  ;;  %v7916_v34 = vunpack.c.l.b16 %v8868_v10 }
 0x2bc   : > { %v7981_v11 = vsel %vm7957_vm11, %v7914_v56, %v7980_v2  ;;  %v11900_v29 = vmax.f32 %v7198_v59, %v7199_v19  ;;  %v5917_v7 = vadd.f32 %v11787_v30, %v11865_v9  ;;  %v5780_v17 = vadd.f32 %v9540_v31, %v11858_v4 }
 0x2bd   : > { %v7982_v32 = vsel %vm7959_vm12, %v7915_v39, %v7981_v11  ;;  %v6268_v61 = vcombine.high %v5948_v62, %v5948_v62  ;;  %v6275_v0 = vrot.slane %v5948_v62, %v11581_v50  ;;  %v6319_v46 = vcombine.high %v5951_v53, %v5951_v53 }
 0x2be   : > { %v7983_v47 = vsel %vm7961_vm13, %v7916_v34, %v7982_v32  ;;  %v6326_v12 = vrot.slane %v5951_v53, %v11581_v50  ;;  %v11908_v18 = vmax.f32 %v5917_v7, 0.0  ;;  %v5883_v31 = vmul.f32 %v11778_v23, %v5780_v17 }
 0x2bf   : > { %v8015_v58 = vpack.c.b16 %v7983_v47, %v7983_v47  ;;  %v6282_v63 = vrot.slane %v6268_v61, %v11581_v50  ;;  %v6283_v9 = vcombine.high %v6275_v0, %v6275_v0  ;;  %v7117_v37 = vsel %vm6668_vm6, %v6275_v0, -inf }
 0x2c0   : > { %v7118_v1 = vrot.slane %v7117_v37, 4  ;;  %v6333_v44 = vrot.slane %v6319_v46, %v11581_v50  ;;  %v6334_v49 = vcombine.high %v6326_v12, %v6326_v12  ;;  %v7201_v40 = vsel %vm6668_vm6, %v6326_v12, -inf }
 0x2c1   : > { %8031 = vst [vmem:[%s11657_s10 + $0xc] sm:$0xf] %v8015_v58  ;;  %v6284_v33 = vcombine.high %v6282_v63, %v6282_v63  ;;  %v7124_v24 = vsel %vm6668_vm6, %v6283_v9, -inf  ;;  %v7131_v14 = vsel %vm6668_vm6, %v6282_v63, -inf  ;;  %v7202_v38 = vrot.slane %v7201_v40, 4 }
 0x2c2   : > { %v7119_v4 = vmax.f32 %v7117_v37, %v7118_v1  ;;  %v7125_v51 = vrot.slane %v7124_v24, 4  ;;  %v7132_v35 = vrot.slane %v7131_v14, 4  ;;  %v6335_v43 = vcombine.high %v6333_v44, %v6333_v44 }
 0x2c3   : > { %v7138_v26 = vsel %vm6668_vm6, %v6284_v33, -inf  ;;  %v7203_v13 = vmax.f32 %v7201_v40, %v7202_v38  ;;  %v7208_v16 = vsel %vm6668_vm6, %v6334_v49, -inf  ;;  %v7215_v57 = vsel %vm6668_vm6, %v6333_v44, -inf }
 0x2c4   : > { %v7120_v27 = vrot.slane %v7119_v4, 2  ;;  %v7126_v6 = vmax.f32 %v7124_v24, %v7125_v51  ;;  %v7133_v28 = vmax.f32 %v7131_v14, %v7132_v35  ;;  %v7139_v59 = vrot.slane %v7138_v26, 4 }
 0x2c5   : > { %v7204_v52 = vrot.slane %v7203_v13, 2  ;;  %v7209_v60 = vrot.slane %v7208_v16, 4  ;;  %v7216_v22 = vrot.slane %v7215_v57, 4  ;;  %v7222_v15 = vsel %vm6668_vm6, %v6335_v43, -inf }
 0x2c6   : > { %v7121_v48 = vmax.f32 %v7119_v4, %v7120_v27  ;;  %v7127_v19 = vrot.slane %v7126_v6, 2  ;;  %v7134_v10 = vrot.slane %v7133_v28, 2  ;;  %v7140_v56 = vmax.f32 %v7138_v26, %v7139_v59 }
 0x2c7   : > { %v7205_v39 = vmax.f32 %v7203_v13, %v7204_v52  ;;  %v7210_v2 = vmax.f32 %v7208_v16, %v7209_v60  ;;  %v7217_v62 = vmax.f32 %v7215_v57, %v7216_v22  ;;  %v7223_v53 = vrot.slane %v7222_v15, 4 }
 0x2c8   : > { %v7122_v34 = vrot.slane %v7121_v48, 1  ;;  %v7128_v11 = vmax.f32 %v7126_v6, %v7127_v19  ;;  %v7135_v7 = vmax.f32 %v7133_v28, %v7134_v10  ;;  %v7141_v32 = vrot.slane %v7140_v56, 2 }
 0x2c9   : > { %v7211_v61 = vrot.slane %v7210_v2, 2  ;;  %v7218_v0 = vrot.slane %v7217_v62, 2  ;;  %v7224_v46 = vmax.f32 %v7222_v15, %v7223_v53  ;;  %v7206_v9 = vrot.slane %v7205_v39, 1 }
 0x2ca   : > { %v7123_v47 = vmax.f32 %v7121_v48, %v7122_v34  ;;  %v7129_v12 = vrot.slane %v7128_v11, 1  ;;  %v7136_v58 = vrot.slane %v7135_v7, 1  ;;  %v7142_v63 = vmax.f32 %v7140_v56, %v7141_v32 }
 0x2cb   : > { %v7212_v37 = vmax.f32 %v7210_v2, %v7211_v61  ;;  %v7219_v1 = vmax.f32 %v7217_v62, %v7218_v0  ;;  %v7225_v44 = vrot.slane %v7224_v46, 2  ;;  %v6285_v51 = vcombine.high %v11908_v18, %v11908_v18 }
 0x2cc   : > { %v7130_v49 = vmax.f32 %v7128_v11, %v7129_v12  ;;  %v7137_v40 = vmax.f32 %v7135_v7, %v7136_v58  ;;  %v7143_v33 = vrot.slane %v7142_v63, 1  ;;  %v7597_v24 = vmax.f32 %v7123_v47, %v11886_v36  ;;  %v9493_v12 = vpop.f32.mrf.mxu1 }
 0x2cd   : > { %v7213_v14 = vrot.slane %v7212_v37, 1  ;;  %v7220_v38 = vrot.slane %v7219_v1, 1  ;;  %v7226_v4 = vmax.f32 %v7224_v46, %v7225_v44  ;;  %v11928_v13 = vmax.f32 %v7205_v39, %v7206_v9 }
 0x2ce   : > { %v7144_v17 = vmax.f32 %v7142_v63, %v7143_v33  ;;  %v7598_v35 = vmax.f32 %v7130_v49, %v11893_v3  ;;  %v7599_v43 = vmax.f32 %v7137_v40, %v11895_v5  ;;  %v8869_v26 = vpack.c.bf16 %v7597_v24, %v7597_v24 }
 0x2cf   : > { %v11930_v16 = vmax.f32 %v7212_v37, %v7213_v14  ;;  %v11932_v57 = vmax.f32 %v7219_v1, %v7220_v38  ;;  %v6292_v36 = vrot.slane %v11908_v18, %v11581_v50  ;;  %v7227_v59 = vrot.slane %v7226_v4, 1  ;;  %v5711_v37 = vpop.f32.mrf.mxu0 }
 0x2d0   : > { %v7600_v27 = vmax.f32 %v7144_v17, %v11900_v29  ;;  %v8870_v6 = vpack.c.bf16 %v7598_v35, %v7598_v35  ;;  %v8871_v28 = vpack.c.bf16 %v7599_v43, %v7599_v43  ;;  %v7917_v52 = vunpack.c.l.b16 %v8869_v26  ;;  %v5120_v43 = vpop.f32.mrf.mxu1 }
 0x2d1   : > { %v6299_v3 = vrot.slane %v6285_v51, %v11581_v50  ;;  %v6300_v60 = vcombine.high %v6292_v36, %v6292_v36  ;;  %v7145_v5 = vsel %vm6668_vm6, %v6292_v36, -inf  ;;  %v5922_v29 = vadd.f32 %v11787_v30, %v5883_v31 }
 0x2d2   : > { %v8872_v22 = vpack.c.bf16 %v7600_v27, %v7600_v27  ;;  %v7918_v15 = vunpack.c.l.b16 %v8870_v6  ;;  %v7919_v48 = vunpack.c.l.b16 %v8871_v28  ;;  %v7146_v19 = vrot.slane %v7145_v5, 4 }
 0x2d3   : > { %v6301_v10 = vcombine.high %v6299_v3, %v6299_v3  ;;  %v7152_v56 = vsel %vm6668_vm6, %v6300_v60, -inf  ;;  %v7159_v18 = vsel %vm6668_vm6, %v6299_v3, -inf  ;;  %v5954_v32 = vmax.f32 %v5922_v29, 0.0 }
 0x2d4   : > { %v7920_v39 = vunpack.c.l.b16 %v8872_v22  ;;  %v7984_v2 = vsel %vm7949_vm7, %v7918_v15, %v7917_v52  ;;  %v7147_v62 = vmax.f32 %v7145_v5, %v7146_v19  ;;  %v7153_v53 = vrot.slane %v7152_v56, 4 }
 0x2d5   : > { %v7985_v34 = vsel %vm7951_vm8, %v7919_v48, %v7984_v2  ;;  %v7160_v11 = vrot.slane %v7159_v18, 4  ;;  %v7166_v7 = vsel %vm6668_vm6, %v6301_v10, -inf  ;;  %v7228_v58 = vmax.f32 %v7226_v4, %v7227_v59 }
 0x2d6   : > { %v7148_v61 = vrot.slane %v7147_v62, 2  ;;  %v7154_v0 = vmax.f32 %v7152_v56, %v7153_v53  ;;  %v7167_v46 = vrot.slane %v7166_v7, 4  ;;  %v11946_v47 = vsel %vm7953_vm9, %v7920_v39, %v7985_v34  ;;  %v9541_v56 = vpop.f32.mrf.mxu0 }
 0x2d7   : > { %v7161_v31 = vmax.f32 %v7159_v18, %v7160_v11  ;;  %v6370_v63 = vcombine.high %v5954_v32, %v5954_v32  ;;  %v6377_v9 = vrot.slane %v5954_v32, %v11581_v50  ;;  %v5778_v40 = vadd.f32 %v5711_v37, %v11889_v41  ;;  %v9496_v18 = vpop.f32.mrf.mxu1 }
 0x2d8   : > { %v7149_v1 = vmax.f32 %v7147_v62, %v7148_v61  ;;  %v7155_v44 = vrot.slane %v7154_v0, 2  ;;  %v7168_v49 = vmax.f32 %v7166_v7, %v7167_v46  ;;  %v5714_v37 = vpop.f32.mrf.mxu0 }
 0x2d9   : > { %v7162_v33 = vrot.slane %v7161_v31, 2  ;;  %v6384_v24 = vrot.slane %v6370_v63, %v11581_v50  ;;  %v6385_v14 = vcombine.high %v6377_v9, %v6377_v9  ;;  %v7285_v38 = vsel %vm6668_vm6, %v6377_v9, -inf }
 0x2da   : > { %v7150_v51 = vrot.slane %v7149_v1, 1  ;;  %v7156_v17 = vmax.f32 %v7154_v0, %v7155_v44  ;;  %v7169_v35 = vrot.slane %v7168_v49, 2  ;;  %v7286_v4 = vrot.slane %v7285_v38, 4 }
 0x2db   : > { %v7163_v26 = vmax.f32 %v7161_v31, %v7162_v33  ;;  %v6386_v36 = vcombine.high %v6384_v24, %v6384_v24  ;;  %v7292_v27 = vsel %vm6668_vm6, %v6385_v14, -inf  ;;  %v7299_v6 = vsel %vm6668_vm6, %v6384_v24, -inf }
 0x2dc   : > { %v7151_v28 = vmax.f32 %v7149_v1, %v7150_v51  ;;  %v7157_v59 = vrot.slane %v7156_v17, 1  ;;  %v7170_v41 = vmax.f32 %v7168_v49, %v7169_v35  ;;  %v7287_v52 = vmax.f32 %v7285_v38, %v7286_v4  ;;  %v5133_v1 = vpop.f32.mrf.mxu1 }
 0x2dd   : > { %v7164_v3 = vrot.slane %v7163_v26, 1  ;;  %v7293_v60 = vrot.slane %v7292_v27, 4  ;;  %v7300_v5 = vrot.slane %v7299_v6, 4  ;;  %v7306_v22 = vsel %vm6668_vm6, %v6386_v36, -inf }
 0x2de   : > { %v7158_v15 = vmax.f32 %v7156_v17, %v7157_v59  ;;  %v7171_v48 = vrot.slane %v7170_v41, 1  ;;  %v7601_v19 = vmax.f32 %v7151_v28, %v11928_v13  ;;  %v7288_v10 = vrot.slane %v7287_v52, 2  ;;  %v9497_v36 = vpop.f32.mrf.mxu1 }
 0x2df   : > { %v7165_v29 = vmax.f32 %v7163_v26, %v7164_v3  ;;  %v7294_v39 = vmax.f32 %v7292_v27, %v7293_v60  ;;  %v7301_v2 = vmax.f32 %v7299_v6, %v7300_v5  ;;  %v7307_v62 = vrot.slane %v7306_v22, 4  ;;  %v9544_v26 = vpop.f32.mrf.mxu0 }
 0x2e0   : > { %v7172_v53 = vmax.f32 %v7170_v41, %v7171_v48  ;;  %v7602_v34 = vmax.f32 %v7158_v15, %v11930_v16  ;;  %v8873_v11 = vpack.c.bf16 %v7601_v19, %v7601_v19  ;;  %v7289_v7 = vmax.f32 %v7287_v52, %v7288_v10 }
 0x2e1   : > { %v7603_v32 = vmax.f32 %v7165_v29, %v11932_v57  ;;  %v7295_v61 = vrot.slane %v7294_v39, 2  ;;  %v7302_v0 = vrot.slane %v7301_v2, 2  ;;  %v7308_v46 = vmax.f32 %v7306_v22, %v7307_v62  ;;  %v5727_v10 = vpop.f32.mrf.mxu0 }
 0x2e2   : > { %v7604_v31 = vmax.f32 %v7172_v53, %v7228_v58  ;;  %v8874_v63 = vpack.c.bf16 %v7602_v34, %v7602_v34  ;;  %v7921_v13 = vunpack.c.l.b16 %v8873_v11  ;;  %v5187_v9 = vadd.f32 %v9493_v12, %v11530_v45 }
 0x2e3   : > { %v8875_v44 = vpack.c.bf16 %v7603_v32, %v7603_v32  ;;  %v7296_v49 = vmax.f32 %v7294_v39, %v7295_v61  ;;  %v7303_v33 = vmax.f32 %v7301_v2, %v7302_v0  ;;  %v7309_v24 = vrot.slane %v7308_v46, 2 }
 0x2e4   : > { %v8876_v14 = vpack.c.bf16 %v7604_v31, %v7604_v31  ;;  %v7922_v16 = vunpack.c.l.b16 %v8874_v63  ;;  %v7987_v38 = vsel %vm7955_vm10, %v7921_v13, %v11946_v47  ;;  %v7290_v51 = vrot.slane %v7289_v7, 1 }
 0x2e5   : > { %v7923_v57 = vunpack.c.l.b16 %v8875_v44  ;;  %v7297_v17 = vrot.slane %v7296_v49, 1  ;;  %v7310_v35 = vmax.f32 %v7308_v46, %v7309_v24  ;;  %v5881_v45 = vmul.f32 %v11778_v23, %v5778_v40 }
 0x2e6   : > { %v7924_v58 = vunpack.c.l.b16 %v8876_v14  ;;  %v7988_v4 = vsel %vm7957_vm11, %v7922_v16, %v7987_v38  ;;  %v5781_v12 = vadd.f32 %v9541_v56, %v5187_v9  ;;  %v7304_v6 = vrot.slane %v7303_v33, 1  ;;  %v5136_v56 = vpop.f32.mrf.mxu1 }
 0x2e7   : > { %v7989_v27 = vsel %vm7959_vm12, %v7923_v57, %v7988_v4  ;;  %v7311_v28 = vrot.slane %v7310_v35, 1  ;;  %v5920_v47 = vadd.f32 %v11787_v30, %v5881_v45  ;;  %v5185_v52 = vadd.f32 %v5120_v43, %v11533_v25 }
 0x2e8   : > { %v7990_v59 = vsel %vm7961_vm13, %v7924_v58, %v7989_v27  ;;  %v5884_v41 = vmul.f32 %v11778_v23, %v5781_v12  ;;  %v11968_v60 = vmax.f32 %v7289_v7, %v7290_v51  ;;  %v5190_v40 = vadd.f32 %v9496_v18, %v11536_v8 }
 0x2e9   : > { %v8016_v3 = vpack.c.b16 %v7990_v59, %v7990_v59  ;;  %v5188_v5 = vadd.f32 %v5133_v1, %v11539_v21  ;;  %v11972_v22 = vmax.f32 %v7296_v49, %v7297_v17  ;;  %v5952_v15 = vmax.f32 %v5920_v47, 0.0 }
 0x2ea   : > { %v5923_v48 = vadd.f32 %v11787_v30, %v5884_v41  ;;  %v5779_v19 = vadd.f32 %v5714_v37, %v5185_v52  ;;  %v11976_v29 = vmax.f32 %v7303_v33, %v7304_v6  ;;  %v11978_v39 = vmax.f32 %v7310_v35, %v7311_v28 }
 0x2eb   : > { %8032 = vst [vmem:[%s11657_s10 + $0x10] sm:$0xf] %v8016_v3  ;;  %v5784_v25 = vadd.f32 %v9544_v26, %v5190_v40  ;;  %v5782_v43 = vadd.f32 %v5727_v10, %v5188_v5  ;;  %v6336_v2 = vcombine.high %v5952_v15, %v5952_v15  ;;  %v6343_v8 = vrot.slane %v5952_v15, %v11581_v50 }
 0x2ec   : > { %v5955_v18 = vmax.f32 %v5923_v48, 0.0  ;;  %v5882_v21 = vmul.f32 %v11778_v23, %v5779_v19  ;;  %v11987_v34 = vadd.f32 %v9497_v36, %v11542_v20  ;;  %v11990_v11 = vadd.f32 %v5136_v56, %v11547_v55 }
 0x2ed   : > { %v5887_v62 = vmul.f32 %v11778_v23, %v5784_v25  ;;  %v11984_v53 = vmul.f32 %v11778_v23, %v5782_v43  ;;  %v6350_v7 = vrot.slane %v6336_v2, %v11581_v50  ;;  %v6351_v32 = vcombine.high %v6343_v8, %v6343_v8 }
 0x2ee   : > { %v7229_v61 = vsel %vm6668_vm6, %v6343_v8, -inf  ;;  %v6387_v0 = vcombine.high %v5955_v18, %v5955_v18  ;;  %v6394_v31 = vrot.slane %v5955_v18, %v11581_v50  ;;  %v11996_v63 = vadd.f32 %v11787_v30, %v5882_v21 }
 0x2ef   : > { %v7230_v46 = vrot.slane %v7229_v61, 4  ;;  %v11999_v23 = vadd.f32 %v11787_v30, %v5887_v62  ;;  %v6352_v20 = vcombine.high %v6350_v7, %v6350_v7  ;;  %v7236_v13 = vsel %vm6668_vm6, %v6351_v32, -inf }
 0x2f0   : > { %v7243_v55 = vsel %vm6668_vm6, %v6350_v7, -inf  ;;  %v6401_v9 = vrot.slane %v6387_v0, %v11581_v50  ;;  %v7237_v1 = vrot.slane %v7236_v13, 4  ;;  %v6402_v49 = vcombine.high %v6394_v31, %v6394_v31 }
 0x2f1   : > { %v7231_v37 = vmax.f32 %v7229_v61, %v7230_v46  ;;  %v7244_v44 = vrot.slane %v7243_v55, 4  ;;  %v7250_v33 = vsel %vm6668_vm6, %v6352_v20, -inf  ;;  %v7313_v14 = vsel %vm6668_vm6, %v6394_v31, -inf  ;;  %v9500_v61 = vpop.f32.mrf.mxu1 }
 0x2f2   : > { %v6403_v24 = vcombine.high %v6401_v9, %v6401_v9  ;;  %v7327_v16 = vsel %vm6668_vm6, %v6401_v9, -inf  ;;  %v7238_v38 = vmax.f32 %v7236_v13, %v7237_v1  ;;  %v7251_v51 = vrot.slane %v7250_v33, 4  ;;  %v9545_v1 = vpop.f32.mrf.mxu0 }
 0x2f3   : > { %v7232_v30 = vrot.slane %v7231_v37, 2  ;;  %v7245_v57 = vmax.f32 %v7243_v55, %v7244_v44  ;;  %v7314_v17 = vrot.slane %v7313_v14, 4  ;;  %v7320_v35 = vsel %vm6668_vm6, %v6402_v49, -inf }
 0x2f4   : > { %v7328_v58 = vrot.slane %v7327_v16, 4  ;;  %v7334_v4 = vsel %vm6668_vm6, %v6403_v24, -inf  ;;  %v7239_v12 = vrot.slane %v7238_v38, 2  ;;  %v7252_v36 = vmax.f32 %v7250_v33, %v7251_v51 }
 0x2f5   : > { %v7233_v45 = vmax.f32 %v7231_v37, %v7232_v30  ;;  %v7246_v26 = vrot.slane %v7245_v57, 2  ;;  %v7315_v27 = vmax.f32 %v7313_v14, %v7314_v17  ;;  %v7321_v6 = vrot.slane %v7320_v35, 4 }
 0x2f6   : > { %v7329_v28 = vmax.f32 %v7327_v16, %v7328_v58  ;;  %v7335_v59 = vrot.slane %v7334_v4, 4  ;;  %v7240_v41 = vmax.f32 %v7238_v38, %v7239_v12  ;;  %v7253_v3 = vrot.slane %v7252_v36, 2 }
 0x2f7   : > { %v7234_v47 = vrot.slane %v7233_v45, 1  ;;  %v7247_v52 = vmax.f32 %v7245_v57, %v7246_v26  ;;  %v7316_v40 = vrot.slane %v7315_v27, 2  ;;  %v7322_v5 = vmax.f32 %v7320_v35, %v7321_v6 }
 0x2f8   : > { %v7330_v15 = vrot.slane %v7329_v28, 2  ;;  %v7336_v48 = vmax.f32 %v7334_v4, %v7335_v59  ;;  %v7241_v10 = vrot.slane %v7240_v41, 1  ;;  %v7254_v25 = vmax.f32 %v7252_v36, %v7253_v3 }
 0x2f9   : > { %v7235_v19 = vmax.f32 %v7233_v45, %v7234_v47  ;;  %v7248_v56 = vrot.slane %v7247_v52, 1  ;;  %v7317_v43 = vmax.f32 %v7315_v27, %v7316_v40  ;;  %v7323_v2 = vrot.slane %v7322_v5, 2 }
 0x2fa   : > { %v7331_v8 = vmax.f32 %v7329_v28, %v7330_v15  ;;  %v7337_v18 = vrot.slane %v7336_v48, 2  ;;  %v7242_v21 = vmax.f32 %v7240_v41, %v7241_v10  ;;  %v7255_v7 = vrot.slane %v7254_v25, 1 }
 0x2fb   : > { %v7249_v62 = vmax.f32 %v7247_v52, %v7248_v56  ;;  %v7605_v32 = vmax.f32 %v7235_v19, %v11968_v60  ;;  %v7318_v0 = vrot.slane %v7317_v43, 1  ;;  %v7324_v46 = vmax.f32 %v7322_v5, %v7323_v2 }
 0x2fc   : > { %v7332_v31 = vrot.slane %v7331_v8, 1  ;;  %v12010_v20 = vmax.f32 %v7336_v48, %v7337_v18  ;;  %v7256_v13 = vmax.f32 %v7254_v25, %v7255_v7  ;;  %v7606_v55 = vmax.f32 %v7242_v21, %v11972_v22 }
 0x2fd   : > { %v7607_v9 = vmax.f32 %v7249_v62, %v11976_v29  ;;  %v8877_v37 = vpack.c.bf16 %v7605_v32, %v7605_v32  ;;  %v12014_v44 = vmax.f32 %v7317_v43, %v7318_v0  ;;  %v7325_v49 = vrot.slane %v7324_v46, 1 }
 0x2fe   : > { %v12017_v33 = vadd.f32 %v9545_v1, %v11987_v34  ;;  %v12020_v60 = vadd.f32 %v9500_v61, %v11552_v54  ;;  %v7608_v24 = vmax.f32 %v7256_v13, %v11978_v39  ;;  %v8878_v14 = vpack.c.bf16 %v7606_v55, %v7606_v55  ;;  %v12031_v54 = vld [vmem:[%s12226_s3] ss:$0 sm:$0xff] }
 0x2ff   : > { %v8879_v16 = vpack.c.bf16 %v7607_v9, %v7607_v9  ;;  %v12023_v30 = vmax.f32 %v7331_v8, %v7332_v31  ;;  %v7925_v22 = vunpack.c.l.b16 %v8877_v37  ;;  %v7339_v29 = vrot.slane %v12010_v20, 1 }
 0x300   : > { %v5953_v38 = vmax.f32 %v11996_v63, 0.0  ;;  %v5958_v57 = vmax.f32 %v11999_v23, 0.0  ;;  %v8880_v51 = vpack.c.bf16 %v7608_v24, %v7608_v24  ;;  %v7926_v17 = vunpack.c.l.b16 %v8878_v14 }
 0x301   : > { %v7927_v34 = vunpack.c.l.b16 %v8879_v16  ;;  %v5924_v39 = vadd.f32 %v12031_v54, %v11984_v53  ;;  %v12038_v12 = vmax.f32 %v7324_v46, %v7325_v49 }
 0x302   : > { %v6353_v35 = vcombine.high %v5953_v38, %v5953_v38  ;;  %v6360_v58 = vrot.slane %v5953_v38, %v11581_v50  ;;  %v6438_v4 = vcombine.high %v5958_v57, %v5958_v57  ;;  %v6445_v45 = vrot.slane %v5958_v57, %v11581_v50 }
 0x303   : > { %v7928_v63 = vunpack.c.l.b16 %v8880_v51  ;;  %v7991_v23 = vsel %vm7949_vm7, %v7926_v17, %v7925_v22  ;;  %v12040_v26 = vmax.f32 %v5924_v39, 0.0 }
 0x304   : > { %v7992_v36 = vsel %vm7951_vm8, %v7927_v34, %v7991_v23  ;;  %v6367_v27 = vrot.slane %v6353_v35, %v11581_v50  ;;  %v6368_v6 = vcombine.high %v6360_v58, %v6360_v58  ;;  %v7257_v53 = vsel %vm6668_vm6, %v6360_v58, -inf }
 0x305   : > { %v7258_v28 = vrot.slane %v7257_v53, 4  ;;  %v12046_v59 = vsel %vm7953_vm9, %v7928_v63, %v7992_v36  ;;  %v6452_v47 = vrot.slane %v6438_v4, %v11581_v50  ;;  %v6453_v41 = vcombine.high %v6445_v45, %v6445_v45 }
 0x306   : > { %v6369_v52 = vcombine.high %v6367_v27, %v6367_v27  ;;  %v7264_v3 = vsel %vm6668_vm6, %v6368_v6, -inf  ;;  %v7271_v40 = vsel %vm6668_vm6, %v6367_v27, -inf  ;;  %v7397_v5 = vsel %vm6668_vm6, %v6445_v45, -inf }
 0x307   : > { %v7259_v15 = vmax.f32 %v7257_v53, %v7258_v28  ;;  %v7265_v48 = vrot.slane %v7264_v3, 4  ;;  %v7272_v19 = vrot.slane %v7271_v40, 4  ;;  %v6454_v10 = vcombine.high %v6452_v47, %v6452_v47  ;;  %v5730_v28 = vpop.f32.mrf.mxu0 }
 0x308   : > { %v7278_v56 = vsel %vm6668_vm6, %v6369_v52, -inf  ;;  %v7398_v25 = vrot.slane %v7397_v5, 4  ;;  %v7404_v43 = vsel %vm6668_vm6, %v6453_v41, -inf  ;;  %v7411_v2 = vsel %vm6668_vm6, %v6452_v47, -inf  ;;  %v12065_v52 = vld [vmem:[%s12225_s2] ss:$0 sm:$0xff] }
 0x309   : > { %v7260_v8 = vrot.slane %v7259_v15, 2  ;;  %v7266_v18 = vmax.f32 %v7264_v3, %v7265_v48  ;;  %v7273_v21 = vmax.f32 %v7271_v40, %v7272_v19  ;;  %v7279_v62 = vrot.slane %v7278_v56, 4 }
 0x30a   : > { %v7399_v7 = vmax.f32 %v7397_v5, %v7398_v25  ;;  %v7405_v32 = vrot.slane %v7404_v43, 4  ;;  %v7412_v61 = vrot.slane %v7411_v2, 4  ;;  %v7418_v0 = vsel %vm6668_vm6, %v6454_v10, -inf }
 0x30b   : > { %v7261_v46 = vmax.f32 %v7259_v15, %v7260_v8  ;;  %v7267_v31 = vrot.slane %v7266_v18, 2  ;;  %v7274_v13 = vrot.slane %v7273_v21, 2  ;;  %v7280_v55 = vmax.f32 %v7278_v56, %v7279_v62 }
 0x30c   : > { %v7400_v9 = vrot.slane %v7399_v7, 2  ;;  %v7406_v37 = vmax.f32 %v7404_v43, %v7405_v32  ;;  %v7413_v1 = vmax.f32 %v7411_v2, %v7412_v61  ;;  %v7419_v49 = vrot.slane %v7418_v0, 4 }
 0x30d   : > { %v7262_v24 = vrot.slane %v7261_v46, 1  ;;  %v7268_v14 = vmax.f32 %v7266_v18, %v7267_v31  ;;  %v7275_v16 = vmax.f32 %v7273_v21, %v7274_v13  ;;  %v7281_v22 = vrot.slane %v7280_v55, 2 }
 0x30e   : > { %v7401_v38 = vmax.f32 %v7399_v7, %v7400_v9  ;;  %v7407_v57 = vrot.slane %v7406_v37, 2  ;;  %v7414_v51 = vrot.slane %v7413_v1, 2  ;;  %v7420_v17 = vmax.f32 %v7418_v0, %v7419_v49 }
 0x30f   : > { %v7263_v34 = vmax.f32 %v7261_v46, %v7262_v24  ;;  %v7269_v39 = vrot.slane %v7268_v14, 1  ;;  %v7276_v35 = vrot.slane %v7275_v16, 1  ;;  %v7282_v58 = vmax.f32 %v7280_v55, %v7281_v22 }
 0x310   : > { %v7402_v4 = vrot.slane %v7401_v38, 1  ;;  %v7408_v45 = vmax.f32 %v7406_v37, %v7407_v57  ;;  %v12056_v63 = vmax.f32 %v7413_v1, %v7414_v51  ;;  %v7421_v23 = vrot.slane %v7420_v17, 2 }
 0x311   : > { %v7270_v36 = vmax.f32 %v7268_v14, %v7269_v39  ;;  %v7277_v27 = vmax.f32 %v7275_v16, %v7276_v35  ;;  %v7283_v6 = vrot.slane %v7282_v58, 1  ;;  %v7609_v53 = vmax.f32 %v7263_v34, %v12014_v44 }
 0x312   : > { %v7340_v47 = vmax.f32 %v12010_v20, %v7339_v29  ;;  %v7409_v41 = vrot.slane %v7408_v45, 1  ;;  %v5888_v3 = vmul.f32 %v12065_v52, %v12017_v33  ;;  %v12070_v40 = vadd.f32 %v5730_v28, %v11990_v11 }
 0x313   : > { %v7284_v5 = vmax.f32 %v7282_v58, %v7283_v6  ;;  %v7610_v44 = vmax.f32 %v7270_v36, %v12038_v12  ;;  %v7611_v15 = vmax.f32 %v7277_v27, %v12023_v30  ;;  %v8881_v48 = vpack.c.bf16 %v7609_v53, %v7609_v53 }
 0x314   : > { %v12074_v19 = vmax.f32 %v7401_v38, %v7402_v4  ;;  %v7416_v20 = vrot.slane %v12056_v63, 1  ;;  %v12077_v29 = vmax.f32 %v7420_v17, %v7421_v23  ;;  %v6404_v10 = vcombine.high %v12040_v26, %v12040_v26 }
 0x315   : > { %v7612_v56 = vmax.f32 %v7284_v5, %v7340_v47  ;;  %v8882_v33 = vpack.c.bf16 %v7610_v44, %v7610_v44  ;;  %v8883_v25 = vpack.c.bf16 %v7611_v15, %v7611_v15  ;;  %v7929_v11 = vunpack.c.l.b16 %v8881_v48 }
 0x316   : > { %v12081_v43 = vmax.f32 %v7408_v45, %v7409_v41  ;;  %v6411_v12 = vrot.slane %v12040_v26, %v11581_v50  ;;  %v6418_v30 = vrot.slane %v6404_v10, %v11581_v50  ;;  %v5927_v2 = vadd.f32 %v12031_v54, %v5888_v3 }
 0x317   : > { %v8884_v8 = vpack.c.bf16 %v7612_v56, %v7612_v56  ;;  %v7930_v18 = vunpack.c.l.b16 %v8882_v33  ;;  %v7931_v21 = vunpack.c.l.b16 %v8883_v25  ;;  %v7994_v62 = vsel %vm7955_vm10, %v7929_v11, %v12046_v59 }
 0x318   : > { %v6419_v7 = vcombine.high %v6411_v12, %v6411_v12  ;;  %v6420_v32 = vcombine.high %v6418_v30, %v6418_v30  ;;  %v7341_v61 = vsel %vm6668_vm6, %v6411_v12, -inf  ;;  %v7355_v0 = vsel %vm6668_vm6, %v6418_v30, -inf }
 0x319   : > { %v7932_v46 = vunpack.c.l.b16 %v8884_v8  ;;  %v7995_v31 = vsel %vm7957_vm11, %v7930_v18, %v7994_v62  ;;  %v7342_v26 = vrot.slane %v7341_v61, 4  ;;  %v7356_v13 = vrot.slane %v7355_v0, 4 }
 0x31a   : > { %v7996_v55 = vsel %vm7959_vm12, %v7931_v21, %v7995_v31  ;;  %v7348_v9 = vsel %vm6668_vm6, %v6419_v7, -inf  ;;  %v7362_v37 = vsel %vm6668_vm6, %v6420_v32, -inf  ;;  %v5959_v1 = vmax.f32 %v5927_v2, 0.0 }
 0x31b   : > { %v7997_v59 = vsel %vm7961_vm13, %v7932_v46, %v7996_v55  ;;  %v7343_v49 = vmax.f32 %v7341_v61, %v7342_v26  ;;  %v7349_v24 = vrot.slane %v7348_v9, 4  ;;  %v7357_v14 = vmax.f32 %v7355_v0, %v7356_v13 }
 0x31c   : > { %v8017_v16 = vpack.c.b16 %v7997_v59, %v7997_v59  ;;  %v7363_v22 = vrot.slane %v7362_v37, 4  ;;  %v6455_v38 = vcombine.high %v5959_v1, %v5959_v1  ;;  %v6462_v57 = vrot.slane %v5959_v1, %v11581_v50 }
 0x31d   : > { %v7423_v51 = vrot.slane %v12077_v29, 1  ;;  %v7344_v17 = vrot.slane %v7343_v49, 2  ;;  %v7350_v34 = vmax.f32 %v7348_v9, %v7349_v24  ;;  %v7358_v39 = vrot.slane %v7357_v14, 2 }
 0x31e   : > { %8033 = vst [vmem:[%s11657_s10 + $0x14] sm:$0xf] %v8017_v16  ;;  %v7364_v35 = vmax.f32 %v7362_v37, %v7363_v22  ;;  %v6469_v58 = vrot.slane %v6455_v38, %v11581_v50  ;;  %v6470_v4 = vcombine.high %v6462_v57, %v6462_v57  ;;  %v7425_v45 = vsel %vm6668_vm6, %v6462_v57, -inf }
 0x31f   : > { %v7345_v23 = vmax.f32 %v7343_v49, %v7344_v17  ;;  %v7351_v36 = vrot.slane %v7350_v34, 2  ;;  %v7359_v27 = vmax.f32 %v7357_v14, %v7358_v39  ;;  %v7426_v6 = vrot.slane %v7425_v45, 4  ;;  %v5149_v49 = vpop.f32.mrf.mxu1 }
 0x320   : > { %v7365_v53 = vrot.slane %v7364_v35, 2  ;;  %v6471_v28 = vcombine.high %v6469_v58, %v6469_v58  ;;  %v7432_v47 = vsel %vm6668_vm6, %v6470_v4, -inf  ;;  %v7439_v41 = vsel %vm6668_vm6, %v6469_v58, -inf }
 0x321   : > { %v7346_v3 = vrot.slane %v7345_v23, 1  ;;  %v7352_v5 = vmax.f32 %v7350_v34, %v7351_v36  ;;  %v7360_v44 = vrot.slane %v7359_v27, 1  ;;  %v7427_v15 = vmax.f32 %v7425_v45, %v7426_v6  ;;  %v9501_v58 = vpop.f32.mrf.mxu1 }
 0x322   : > { %v7366_v48 = vmax.f32 %v7364_v35, %v7365_v53  ;;  %v7433_v10 = vrot.slane %v7432_v47, 4  ;;  %v7440_v56 = vrot.slane %v7439_v41, 4  ;;  %v7446_v33 = vsel %vm6668_vm6, %v6471_v28, -inf }
 0x323   : > { %v7417_v25 = vmax.f32 %v12056_v63, %v7416_v20  ;;  %v7347_v11 = vmax.f32 %v7345_v23, %v7346_v3  ;;  %v7353_v12 = vrot.slane %v7352_v5, 1  ;;  %v7361_v30 = vmax.f32 %v7359_v27, %v7360_v44 }
 0x324   : > { %v7367_v2 = vrot.slane %v7366_v48, 1  ;;  %v7428_v8 = vrot.slane %v7427_v15, 2  ;;  %v7434_v18 = vmax.f32 %v7432_v47, %v7433_v10  ;;  %v7441_v21 = vmax.f32 %v7439_v41, %v7440_v56  ;;  %v12311_v41 = vld [vmem:[#allocation13_spill] sm:$0xff] }
 0x325   : > { %v7354_v62 = vmax.f32 %v7352_v5, %v7353_v12  ;;  %v7613_v7 = vmax.f32 %v7347_v11, %v12074_v19  ;;  %v7615_v32 = vmax.f32 %v7361_v30, %v7417_v25  ;;  %v7447_v61 = vrot.slane %v7446_v33, 4 }
 0x326   : > { %v7424_v0 = vmax.f32 %v12077_v29, %v7423_v51  ;;  %v7368_v46 = vmax.f32 %v7366_v48, %v7367_v2  ;;  %v7435_v31 = vrot.slane %v7434_v18, 2  ;;  %v7442_v26 = vrot.slane %v7441_v21, 2  ;;  %v9548_v29 = vpop.f32.mrf.mxu0 }
 0x327   : > { %v7614_v13 = vmax.f32 %v7354_v62, %v12081_v43  ;;  %v8885_v63 = vpack.c.bf16 %v7613_v7, %v7613_v7  ;;  %v8887_v20 = vpack.c.bf16 %v7615_v32, %v7615_v32  ;;  %v5886_v55 = vmul.f32 %v12065_v52, %v12070_v40 }
 0x328   : > { %v7616_v9 = vmax.f32 %v7368_v46, %v7424_v0  ;;  %v7429_v37 = vmax.f32 %v7427_v15, %v7428_v8  ;;  %v7448_v59 = vmax.f32 %v7446_v33, %v7447_v61  ;;  %v7436_v14 = vmax.f32 %v7434_v18, %v7435_v31 }
 0x329   : > { %v8886_v1 = vpack.c.bf16 %v7614_v13, %v7614_v13  ;;  %v7935_v24 = vunpack.c.l.b16 %v8887_v20  ;;  %v7443_v16 = vmax.f32 %v7441_v21, %v7442_v26  ;;  %v7933_v22 = vunpack.c.l.b16 %v8885_v63 }
 0x32a   : > { %v8888_v19 = vpack.c.bf16 %v7616_v9, %v7616_v9  ;;  %v5925_v57 = vadd.f32 %v12031_v54, %v5886_v55  ;;  %v5788_v43 = vadd.f32 %v9548_v29, %v12020_v60  ;;  %v7430_v17 = vrot.slane %v7429_v37, 1 }
 0x32b   : > { %v7934_v38 = vunpack.c.l.b16 %v8886_v1  ;;  %v5192_v40 = vadd.f32 %v5149_v49, %v11558_v42  ;;  %v7437_v45 = vrot.slane %v7436_v14, 1  ;;  %v7444_v23 = vrot.slane %v7443_v16, 1  ;;  %v5743_v42 = vpop.f32.mrf.mxu0 }
 0x32c   : > { %v7936_v51 = vunpack.c.l.b16 %v8888_v19  ;;  %v5957_v39 = vmax.f32 %v5925_v57, 0.0  ;;  %v5891_v35 = vmul.f32 %v12065_v52, %v5788_v43  ;;  %v7449_v36 = vrot.slane %v7448_v59, 2 }
 0x32d   : > { %v7998_v34 = vsel %vm7949_vm7, %v7934_v38, %v7933_v22  ;;  %v7431_v28 = vmax.f32 %v7429_v37, %v7430_v17  ;;  %v5786_v47 = vadd.f32 %v5743_v42, %v5192_v40  ;;  %v5195_v3 = vadd.f32 %v9501_v58, %v12311_v41  ;;  %v9549_v7 = vpop.f32.mrf.mxu0 }
 0x32e   : > { %v7999_v4 = vsel %vm7951_vm8, %v7935_v24, %v7998_v34  ;;  %v6421_v27 = vcombine.high %v5957_v39, %v5957_v39  ;;  %v6428_v6 = vrot.slane %v5957_v39, %v11581_v50  ;;  %v5930_v53 = vadd.f32 %v12031_v54, %v5891_v35 }
 0x32f   : > { %v12118_v60 = vsel %vm7953_vm9, %v7936_v51, %v7999_v4  ;;  %v7438_v10 = vmax.f32 %v7436_v14, %v7437_v45  ;;  %v7445_v56 = vmax.f32 %v7443_v16, %v7444_v23  ;;  %v7450_v33 = vmax.f32 %v7448_v59, %v7449_v36  ;;  %v5152_v45 = vpop.f32.mrf.mxu1 }
 0x330   : > { %v6435_v5 = vrot.slane %v6421_v27, %v11581_v50  ;;  %v6436_v44 = vcombine.high %v6428_v6, %v6428_v6  ;;  %v7369_v15 = vsel %vm6668_vm6, %v6428_v6, -inf  ;;  %v5962_v48 = vmax.f32 %v5930_v53, 0.0 }
 0x331   : > { %v7370_v25 = vrot.slane %v7369_v15, 4  ;;  %v5889_v0 = vmul.f32 %v12065_v52, %v5786_v47  ;;  %v5789_v46 = vadd.f32 %v9549_v7, %v5195_v3  ;;  %v7451_v51 = vrot.slane %v7450_v33, 1 }
 0x332   : > { %v6437_v11 = vcombine.high %v6435_v5, %v6435_v5  ;;  %v7376_v12 = vsel %vm6668_vm6, %v6436_v44, -inf  ;;  %v7383_v30 = vsel %vm6668_vm6, %v6435_v5, -inf  ;;  %v6506_v2 = vcombine.high %v5962_v48, %v5962_v48 }
 0x333   : > { %v7371_v8 = vmax.f32 %v7369_v15, %v7370_v25  ;;  %v7377_v18 = vrot.slane %v7376_v12, 4  ;;  %v7384_v21 = vrot.slane %v7383_v30, 4  ;;  %v6513_v62 = vrot.slane %v5962_v48, %v11581_v50  ;;  %v12312_v15 = vld [vmem:[#allocation14_spill] sm:$0xff] }
 0x334   : > { %v7390_v32 = vsel %vm6668_vm6, %v6437_v11, -inf  ;;  %v6520_v61 = vrot.slane %v6506_v2, %v11581_v50  ;;  %v5928_v34 = vadd.f32 %v12031_v54, %v5889_v0  ;;  %v5892_v6 = vmul.f32 %v12065_v52, %v5789_v46  ;;  %v5746_v0 = vpop.f32.mrf.mxu0 }
 0x335   : > { %v7372_v31 = vrot.slane %v7371_v8, 2  ;;  %v7378_v26 = vmax.f32 %v7376_v12, %v7377_v18  ;;  %v7385_v13 = vmax.f32 %v7383_v30, %v7384_v21  ;;  %v7391_v63 = vrot.slane %v7390_v32, 4 }
 0x336   : > { %v6521_v20 = vcombine.high %v6513_v62, %v6513_v62  ;;  %v6522_v55 = vcombine.high %v6520_v61, %v6520_v61  ;;  %v7509_v9 = vsel %vm6668_vm6, %v6513_v62, -inf  ;;  %v7523_v37 = vsel %vm6668_vm6, %v6520_v61, -inf }
 0x337   : > { %v7373_v1 = vmax.f32 %v7371_v8, %v7372_v31  ;;  %v7379_v59 = vrot.slane %v7378_v26, 2  ;;  %v7386_v49 = vrot.slane %v7385_v13, 2  ;;  %v7392_v19 = vmax.f32 %v7390_v32, %v7391_v63 }
 0x338   : > { %v7510_v24 = vrot.slane %v7509_v9, 4  ;;  %v7516_v14 = vsel %vm6668_vm6, %v6521_v20, -inf  ;;  %v7524_v16 = vrot.slane %v7523_v37, 4  ;;  %v7530_v29 = vsel %vm6668_vm6, %v6522_v55, -inf }
 0x339   : > { %v7374_v22 = vrot.slane %v7373_v1, 1  ;;  %v7380_v38 = vmax.f32 %v7378_v26, %v7379_v59  ;;  %v7387_v57 = vmax.f32 %v7385_v13, %v7386_v49  ;;  %v7393_v43 = vrot.slane %v7392_v19, 2 }
 0x33a   : > { %v7511_v17 = vmax.f32 %v7509_v9, %v7510_v24  ;;  %v7517_v40 = vrot.slane %v7516_v14, 4  ;;  %v7525_v36 = vmax.f32 %v7523_v37, %v7524_v16  ;;  %v7531_v27 = vrot.slane %v7530_v29, 4 }
 0x33b   : > { %v7375_v39 = vmax.f32 %v7373_v1, %v7374_v22  ;;  %v7381_v35 = vrot.slane %v7380_v38, 1  ;;  %v7388_v58 = vrot.slane %v7387_v57, 1  ;;  %v7394_v4 = vmax.f32 %v7392_v19, %v7393_v43 }
 0x33c   : > { %v7512_v23 = vrot.slane %v7511_v17, 2  ;;  %v7452_v3 = vmax.f32 %v7450_v33, %v7451_v51  ;;  %v7518_v5 = vmax.f32 %v7516_v14, %v7517_v40  ;;  %v5960_v44 = vmax.f32 %v5928_v34, 0.0 }
 0x33d   : > { %v7382_v53 = vmax.f32 %v7380_v38, %v7381_v35  ;;  %v7389_v42 = vmax.f32 %v7387_v57, %v7388_v58  ;;  %v7395_v47 = vrot.slane %v7394_v4, 1  ;;  %v7617_v41 = vmax.f32 %v7375_v39, %v7431_v28 }
 0x33e   : > { %v5193_v48 = vadd.f32 %v5152_v45, %v12312_v15  ;;  %v7513_v2 = vmax.f32 %v7511_v17, %v7512_v23  ;;  %v7526_v8 = vrot.slane %v7525_v36, 2  ;;  %v7532_v18 = vmax.f32 %v7530_v29, %v7531_v27 }
 0x33f   : > { %v7396_v25 = vmax.f32 %v7394_v4, %v7395_v47  ;;  %v7618_v11 = vmax.f32 %v7382_v53, %v7438_v10  ;;  %v7619_v12 = vmax.f32 %v7389_v42, %v7445_v56  ;;  %v8889_v30 = vpack.c.bf16 %v7617_v41, %v7617_v41 }
 0x340   : > { %v5931_v21 = vadd.f32 %v12031_v54, %v5892_v6  ;;  %v7519_v28 = vrot.slane %v7518_v5, 2  ;;  %v5787_v33 = vadd.f32 %v5746_v0, %v5193_v48  ;;  %v7527_v56 = vmax.f32 %v7525_v36, %v7526_v8 }
 0x341   : > { %v7620_v62 = vmax.f32 %v7396_v25, %v7452_v3  ;;  %v8890_v7 = vpack.c.bf16 %v7618_v11, %v7618_v11  ;;  %v8891_v32 = vpack.c.bf16 %v7619_v12, %v7619_v12  ;;  %v7937_v61 = vunpack.c.l.b16 %v8889_v30 }
 0x342   : > { %v7533_v13 = vrot.slane %v7532_v18, 2  ;;  %v6472_v63 = vcombine.high %v5960_v44, %v5960_v44  ;;  %v6479_v20 = vrot.slane %v5960_v44, %v11581_v50  ;;  %v7514_v37 = vrot.slane %v7513_v2, 1 }
 0x343   : > { %v8892_v46 = vpack.c.bf16 %v7620_v62, %v7620_v62  ;;  %v7938_v31 = vunpack.c.l.b16 %v8890_v7  ;;  %v7939_v26 = vunpack.c.l.b16 %v8891_v32  ;;  %v8001_v10 = vsel %vm7955_vm10, %v7937_v61, %v12118_v60 }
 0x344   : > { %v5963_v1 = vmax.f32 %v5931_v21, 0.0  ;;  %v6486_v49 = vrot.slane %v6472_v63, %v11581_v50  ;;  %v6487_v19 = vcombine.high %v6479_v20, %v6479_v20  ;;  %v7453_v24 = vsel %vm6668_vm6, %v6479_v20, -inf }
 0x345   : > { %v7940_v55 = vunpack.c.l.b16 %v8892_v46  ;;  %v8002_v9 = vsel %vm7957_vm11, %v7938_v31, %v8001_v10  ;;  %v7454_v14 = vrot.slane %v7453_v24, 4  ;;  %v7520_v39 = vmax.f32 %v7518_v5, %v7519_v28 }
 0x346   : > { %v8003_v59 = vsel %vm7959_vm12, %v7939_v26, %v8002_v9  ;;  %v6523_v16 = vcombine.high %v5963_v1, %v5963_v1  ;;  %v6530_v29 = vrot.slane %v5963_v1, %v11581_v50  ;;  %v6488_v38 = vcombine.high %v6486_v49, %v6486_v49 }
 0x347   : > { %v8004_v60 = vsel %vm7961_vm13, %v7940_v55, %v8003_v59  ;;  %v7460_v57 = vsel %vm6668_vm6, %v6487_v19, -inf  ;;  %v7467_v43 = vsel %vm6668_vm6, %v6486_v49, -inf  ;;  %v7455_v51 = vmax.f32 %v7453_v24, %v7454_v14 }
 0x348   : > { %v8018_v22 = vpack.c.b16 %v8004_v60, %v8004_v60  ;;  %v7461_v17 = vrot.slane %v7460_v57, 4  ;;  %v7468_v40 = vrot.slane %v7467_v43, 4  ;;  %v6537_v34 = vrot.slane %v6523_v16, %v11581_v50 }
 0x349   : > { %v7474_v35 = vsel %vm6668_vm6, %v6488_v38, -inf  ;;  %v6538_v58 = vcombine.high %v6530_v29, %v6530_v29  ;;  %v5890_v4 = vmul.f32 %v12065_v52, %v5787_v33  ;;  %v7456_v45 = vrot.slane %v7455_v51, 2 }
 0x34a   : > { %8034 = vst [vmem:[%s11657_s10 + $0x18] sm:$0xf] %v8018_v22  ;;  %v7462_v23 = vmax.f32 %v7460_v57, %v7461_v17  ;;  %v7469_v36 = vmax.f32 %v7467_v43, %v7468_v40  ;;  %v7475_v27 = vrot.slane %v7474_v35, 4  ;;  %v7515_v6 = vmax.f32 %v7513_v2, %v7514_v37 }
 0x34b   : > { %v7528_v53 = vrot.slane %v7527_v56, 1  ;;  %v7534_v42 = vmax.f32 %v7532_v18, %v7533_v13  ;;  %v6539_v47 = vcombine.high %v6537_v34, %v6537_v34  ;;  %v7457_v41 = vmax.f32 %v7455_v51, %v7456_v45 }
 0x34c   : > { %v7463_v3 = vrot.slane %v7462_v23, 2  ;;  %v7470_v44 = vrot.slane %v7469_v36, 2  ;;  %v7476_v15 = vmax.f32 %v7474_v35, %v7475_v27  ;;  %v7521_v48 = vrot.slane %v7520_v39, 1 }
 0x34d   : > { %v7537_v5 = vsel %vm6668_vm6, %v6530_v29, -inf  ;;  %v7544_v25 = vsel %vm6668_vm6, %v6538_v58, -inf  ;;  %v7551_v11 = vsel %vm6668_vm6, %v6537_v34, -inf  ;;  %v7458_v52 = vrot.slane %v7457_v41, 1 }
 0x34e   : > { %v7464_v12 = vmax.f32 %v7462_v23, %v7463_v3  ;;  %v7471_v30 = vmax.f32 %v7469_v36, %v7470_v44  ;;  %v7477_v8 = vrot.slane %v7476_v15, 2  ;;  %v7529_v21 = vmax.f32 %v7527_v56, %v7528_v53 }
 0x34f   : > { %v7535_v2 = vrot.slane %v7534_v42, 1  ;;  %v7558_v18 = vsel %vm6668_vm6, %v6539_v47, -inf  ;;  %v5929_v62 = vadd.f32 %v12031_v54, %v5890_v4  ;;  %v7459_v7 = vmax.f32 %v7457_v41, %v7458_v52 }
 0x350   : > { %v7465_v32 = vrot.slane %v7464_v12, 1  ;;  %v7472_v61 = vrot.slane %v7471_v30, 1  ;;  %v7478_v0 = vmax.f32 %v7476_v15, %v7477_v8  ;;  %v7522_v28 = vmax.f32 %v7520_v39, %v7521_v48 }
 0x351   : > { %v7538_v33 = vrot.slane %v7537_v5, 4  ;;  %v7545_v46 = vrot.slane %v7544_v25, 4  ;;  %v7552_v31 = vrot.slane %v7551_v11, 4  ;;  %v7621_v63 = vmax.f32 %v7459_v7, %v7515_v6 }
 0x352   : > { %v7466_v26 = vmax.f32 %v7464_v12, %v7465_v32  ;;  %v7473_v10 = vmax.f32 %v7471_v30, %v7472_v61  ;;  %v7479_v13 = vrot.slane %v7478_v0, 1  ;;  %v7536_v20 = vmax.f32 %v7534_v42, %v7535_v2 }
 0x353   : > { %v7559_v55 = vrot.slane %v7558_v18, 4  ;;  %v5961_v56 = vmax.f32 %v5929_v62, 0.0  ;;  %v8893_v59 = vpack.c.bf16 %v7621_v63, %v7621_v63  ;;  %v7539_v54 = vmax.f32 %v7537_v5, %v7538_v33 }
 0x354   : > { %v7480_v9 = vmax.f32 %v7478_v0, %v7479_v13  ;;  %v7622_v37 = vmax.f32 %v7466_v26, %v7522_v28  ;;  %v7623_v1 = vmax.f32 %v7473_v10, %v7529_v21  ;;  %v7546_v49 = vmax.f32 %v7544_v25, %v7545_v46 }
 0x355   : > { %v7553_v19 = vmax.f32 %v7551_v11, %v7552_v31  ;;  %v7941_v16 = vunpack.c.l.b16 %v8893_v59  ;;  %v7560_v29 = vmax.f32 %v7558_v18, %v7559_v55  ;;  %v6489_v22 = vcombine.high %v5961_v56, %v5961_v56 }
 0x356   : > { %v7624_v24 = vmax.f32 %v7480_v9, %v7536_v20  ;;  %v8894_v60 = vpack.c.bf16 %v7622_v37, %v7622_v37  ;;  %v8895_v14 = vpack.c.bf16 %v7623_v1, %v7623_v1  ;;  %v6496_v51 = vrot.slane %v5961_v56, %v11581_v50 }
 0x357   : > { %v7540_v17 = vrot.slane %v7539_v54, 2  ;;  %v7547_v40 = vrot.slane %v7546_v49, 2  ;;  %v7554_v34 = vrot.slane %v7553_v19, 2  ;;  %v6503_v39 = vrot.slane %v6489_v22, %v11581_v50 }
 0x358   : > { %v8896_v38 = vpack.c.bf16 %v7624_v24, %v7624_v24  ;;  %v7942_v57 = vunpack.c.l.b16 %v8894_v60  ;;  %v7943_v43 = vunpack.c.l.b16 %v8895_v14  ;;  %v6504_v4 = vcombine.high %v6496_v51, %v6496_v51 }
 0x359   : > { %v7481_v45 = vsel %vm6668_vm6, %v6496_v51, -inf  ;;  %v6505_v36 = vcombine.high %v6503_v39, %v6503_v39  ;;  %v7495_v6 = vsel %vm6668_vm6, %v6503_v39, -inf  ;;  %v7561_v53 = vrot.slane %v7560_v29, 2 }
 0x35a   : > { %v7944_v35 = vunpack.c.l.b16 %v8896_v38  ;;  %v8005_v58 = vsel %vm7949_vm7, %v7942_v57, %v7941_v16  ;;  %v7482_v27 = vrot.slane %v7481_v45, 4  ;;  %v7488_v42 = vsel %vm6668_vm6, %v6504_v4, -inf }
 0x35b   : > { %v8006_v23 = vsel %vm7951_vm8, %v7943_v43, %v8005_v58  ;;  %v7496_v47 = vrot.slane %v7495_v6, 4  ;;  %v7541_v3 = vmax.f32 %v7539_v54, %v7540_v17  ;;  %v7489_v44 = vrot.slane %v7488_v42, 4 }
 0x35c   : > { %v8007_v41 = vsel %vm7953_vm9, %v7944_v35, %v8006_v23  ;;  %v7483_v50 = vmax.f32 %v7481_v45, %v7482_v27  ;;  %v7502_v15 = vsel %vm6668_vm6, %v6505_v36, -inf  ;;  %v7555_v48 = vmax.f32 %v7553_v19, %v7554_v34 }
 0x35d   : > { %v7497_v5 = vmax.f32 %v7495_v6, %v7496_v47  ;;  %v7503_v25 = vrot.slane %v7502_v15, 4  ;;  %v7548_v11 = vmax.f32 %v7546_v49, %v7547_v40  ;;  %v7490_v12 = vmax.f32 %v7488_v42, %v7489_v44 }
 0x35e   : > { %v7484_v52 = vrot.slane %v7483_v50, 2  ;;  %v7562_v30 = vmax.f32 %v7560_v29, %v7561_v53  ;;  %v7542_v2 = vrot.slane %v7541_v3, 1  ;;  %v7556_v7 = vrot.slane %v7555_v48, 1 }
 0x35f   : > { %v7498_v8 = vrot.slane %v7497_v5, 2  ;;  %v7504_v21 = vmax.f32 %v7502_v15, %v7503_v25  ;;  %v7491_v62 = vrot.slane %v7490_v12, 2  ;;  %v7549_v0 = vrot.slane %v7548_v11, 1 }
 0x360   : > { %v7485_v18 = vmax.f32 %v7483_v50, %v7484_v52  ;;  %v7563_v46 = vrot.slane %v7562_v30, 1  ;;  %v7543_v10 = vmax.f32 %v7541_v3, %v7542_v2  ;;  %v7557_v20 = vmax.f32 %v7555_v48, %v7556_v7 }
 0x361   : > { %v7499_v32 = vmax.f32 %v7497_v5, %v7498_v8  ;;  %v7505_v61 = vrot.slane %v7504_v21, 2  ;;  %v7492_v33 = vmax.f32 %v7490_v12, %v7491_v62  ;;  %v7550_v9 = vmax.f32 %v7548_v11, %v7549_v0 }
 0x362   : > { %v7486_v28 = vrot.slane %v7485_v18, 1  ;;  %v7564_v59 = vmax.f32 %v7562_v30, %v7563_v46 }
 0x363   : > { %v7500_v31 = vrot.slane %v7499_v32, 1  ;;  %v7506_v26 = vmax.f32 %v7504_v21, %v7505_v61  ;;  %v7493_v63 = vrot.slane %v7492_v33, 1 }
 0x364   : > { %v7487_v13 = vmax.f32 %v7485_v18, %v7486_v28 }
 0x365   : > { %v7501_v55 = vmax.f32 %v7499_v32, %v7500_v31  ;;  %v7507_v56 = vrot.slane %v7506_v26, 1  ;;  %v7494_v37 = vmax.f32 %v7492_v33, %v7493_v63 }
 0x366   : > { %v7625_v1 = vmax.f32 %v7487_v13, %v7543_v10 }
 0x367   : > { %v7508_v54 = vmax.f32 %v7506_v26, %v7507_v56  ;;  %v7627_v49 = vmax.f32 %v7501_v55, %v7557_v20  ;;  %v7626_v19 = vmax.f32 %v7494_v37, %v7550_v9 }
 0x368   : > { %v8897_v24 = vpack.c.bf16 %v7625_v1, %v7625_v1 }
 0x369   : > { %v7628_v60 = vmax.f32 %v7508_v54, %v7564_v59  ;;  %v8899_v14 = vpack.c.bf16 %v7627_v49, %v7627_v49  ;;  %v8898_v16 = vpack.c.bf16 %v7626_v19, %v7626_v19 }
 0x36a   : > { %v7945_v29 = vunpack.c.l.b16 %v8897_v24 }
 0x36b   : > { %v8900_v22 = vpack.c.bf16 %v7628_v60, %v7628_v60  ;;  %v7947_v38 = vunpack.c.l.b16 %v8899_v14  ;;  %v7946_v57 = vunpack.c.l.b16 %v8898_v16 }
 0x36c   : > { %v8008_v43 = vsel %vm7955_vm10, %v7945_v29, %v8007_v41 }
 0x36d   : > { %v7948_v51 = vunpack.c.l.b16 %v8900_v22  ;;  %v8009_v17 = vsel %vm7957_vm11, %v7946_v57, %v8008_v43 }
 0x36e   : > { %v8010_v40 = vsel %vm7959_vm12, %v7947_v38, %v8009_v17 }
 0x36f   : > { %v8011_v34 = vsel %vm7961_vm13, %v7948_v51, %v8010_v40 }
 0x370   : > { %v8019_v39 = vpack.c.b16 %v8011_v34, %v8011_v34 }
 0x372   : > { %8035 = vst [vmem:[%s11657_s10 + $0x1c] sm:$0xf] %v8019_v39 }
 0x373   : > { %9746 = shalt.err (!%p9743_p3)
}
 0x374   : > { %s9747_s8 = scalar_lea.hbm %s12176_s6, 512  ;;  %s9751_s20 = scalar_lea.hbm %s12227_s4, 1024 }
 0x375   : > { %p9748_p4 = scmp.ne.s32.totalorder %s12176_s6, %s9747_s8  ;;  %p9752_p9 = scmp.lt.s32.totalorder %s12176_s6, %s12227_s4 }
 0x376   : > { %p9753_p10 = scmp.lt.s32.totalorder %s9751_s20, %s9747_s8 }
 0x377   : > { %p9749_p7 = pnand %p9748_p4, %p9862_p5 }
 0x378   : > { %p9754_p11 = por %p9753_p10, %p9752_p9 }
 0x379   : > { %p9750_p8 = pneg %p9749_p7 }
 0x37b   : > { %p9755_p12 = pnand %p9754_p11, %p9750_p8 }
 0x37d   : > { %9758 = shalt.err (!%p9755_p12)
}
 0x37e   : > { %s9797_s27 = smov 64   ;;  %s9798_s28 = smov 4  }
 0x37f   : > { %9567 = dma.vmem_to_hbm [thread:$0]  (%p9862_p5), %s12178_s30, 512, %s12176_s6, %s12183_s19, %s9797_s27, %s9797_s27, %s9798_s28  }
 0x380 PF: > { %p9573_p13 = scmp.ge.s32.totalorder %s9793_s18, 2  ;;  %s8065_s29 = sand.u32 1, %s9781_s15  }
 0x381   : > { %s8066_s11 = scalar_lea.sflag [#allocation4], %s8065_s29 }
 0x382   : > { %p9570_p0 = pnand %p9573_p13, %p9866_p6 }
 0x384   : > { %p9571_p1 = pneg %p9570_p0 }
 0x386   : > { %9776 = dma.done.wait (%p9571_p1), %s8066_s11, 512  }
 0x387   : > { %9778 = vsyncadd (%p9571_p1), %s8066_s11, 4294966784  ;;  %p14_p2 = scmp.ge.s32.totalorder %s9849_s21, 4   ;;  %s12313_s15 = smov %s9785_s16 }
 0x388   : > { %s12314_s16 = smov %s9789_s17  ;;  %s12315_s17 = smov %s9860_s24 }
 0x389   : > { %s12316_s18 = smov %s9849_s21  ;;  %16 = sbr.rel (!%p14_p2) target bundleno = 3 (0x3), region = 81 }
 0x38e   :  { %8071 = vsyncpa [#allocation4], 1 }
 0x38f   :  { %8073 = vsyncpa [#allocation4 + $0x1], 1 }

</bundles_post_ra>
